<compile_context>
chip_gen: v6e
topology: v6e:2x2x1
jax: 0.10.0
libtpu: 0.0.40
codegen_flags: <defaults>
</compile_context>

<pallas_src>
import numpy as np
import jax
import jax.numpy as jnp
from jax.experimental import pallas as pl
from jax.experimental.pallas import tpu as pltpu

PATCH = 7                       # must divide 28
IMG = 28
CHANNEL_DIM = 14                # hard-coded in the PyTorch module
CLASS_NUM = 10
HIDDEN = 32
DEPTH = 2
TOKENS = (IMG // PATCH) ** 2    # 16
P2 = PATCH * PATCH              # 49
CP = 16                         # channel dim padded 14 -> 16 (free reshapes)
P2PAD = 64                      # patch pixels padded 49 -> 64 (full-dim block)
KPAD = 128                      # classes padded 10 -> 128 (lane-dense store)
EPS = 1e-5                      # nn.LayerNorm default eps
INV_SQRT2 = 0.7071067811865476
BF16 = jnp.bfloat16


def _round_up(x, m):
    return ((x + m - 1) // m) * m


def _gelu(x):
    # exact (erf-based) GELU, matching torch.nn.GELU() default
    return 0.5 * x * (1.0 + jax.lax.erf(x * INV_SQRT2))


def _layernorm(x, gamma, beta):
    # unpadded reference LayerNorm (host-side validation only)
    mu = jnp.mean(x, axis=-1, keepdims=True)
    var = jnp.mean((x - mu) ** 2, axis=-1, keepdims=True)
    return (x - mu) * jax.lax.rsqrt(var + EPS) * gamma + beta


def _layernorm_masked(x, gamma, beta, mask):
    # LayerNorm over the 14 real channels of the 16-lane padded channel axis.
    # Padded lanes of the output are forced to 0 (mask * zero-padded gamma).
    xm = x * mask
    mu = jnp.sum(xm, axis=-1, keepdims=True) * (1.0 / CHANNEL_DIM)
    diff = (x - mu) * mask
    var = jnp.sum(diff * diff, axis=-1, keepdims=True) * (1.0 / CHANNEL_DIM)
    return diff * jax.lax.rsqrt(var + EPS) * gamma + beta


def mlp_mixer_kernel(patches_ref, conv_w_ref, conv_b_ref,
                     nw_ref, nb_ref,
                     m1w1_ref, m1b1_ref, m1w2_ref, m1b2_ref,
                     m2w1_ref, m2b1_ref, m2w2_ref, m2b2_ref,
                     fnw_ref, fnb_ref, fcw_ref, fcb_ref,
                     out_ref):
    bb = out_ref.shape[0]                        # images in this batch tile
    rows = bb * TOKENS                           # (image, token) rows

    # channel-validity mask: the last 2 of the 16 padded channel lanes are dead
    cmask = (jax.lax.broadcasted_iota(jnp.int32, (1, CP), 1)
             < CHANNEL_DIM).astype(jnp.float32)

    # ---- patch embedding: one (rows, 64) @ (64, 16) bf16 MXU matmul ----
    x = jnp.dot(patches_ref[...], conv_w_ref[...],
                preferred_element_type=jnp.float32) + conv_b_ref[...]

    # ---- mixer layers (DEPTH is a small static constant -> unrolled) ----
    for d in range(DEPTH):
        gamma = nw_ref[pl.ds(d, 1)]              # (1, CP) shared norm, layer d
        beta = nb_ref[pl.ds(d, 1)]               # (1, CP)

        # token mixing: relayout (b,t)-rows/chan-lanes -> (b,c)-rows/token-lanes
        # via free tile-aligned reshapes + batched 16x16 minor-dim transposes,
        # then two single 2-D MXU matmuls with M = bb*CP rows.
        xn = _layernorm_masked(x, gamma, beta, cmask)            # (rows, CP)
        xnT = jnp.swapaxes(xn.reshape(bb, TOKENS, CP), 1, 2)     # (bb, CP, T)
        xnT2 = xnT.reshape(bb * CP, TOKENS)                      # (bb*CP, T)
        g = jnp.dot(xnT2.astype(BF16), m1w1_ref[d],
                    preferred_element_type=jnp.float32) + m1b1_ref[d]
        g = _gelu(g)                                             # (bb*CP, H)
        tokT = jnp.dot(g.astype(BF16), m1w2_ref[d],
                       preferred_element_type=jnp.float32) + m1b2_ref[d]
        tok = jnp.swapaxes(tokT.reshape(bb, CP, TOKENS), 1, 2)   # (bb, T, CP)
        y = xn + tok.reshape(rows, CP)                           # (rows, CP)

        # channel mixing on the normalized skip: flat (rows, .) MXU matmuls
        xs = _layernorm_masked(y, gamma, beta, cmask)            # (rows, CP)
        h2 = _gelu(jnp.dot(xs.astype(BF16), m2w1_ref[d],
                           preferred_element_type=jnp.float32)
                   + m2b1_ref[d])                                # (rows, H)
        xc = jnp.dot(h2.astype(BF16), m2w2_ref[d],
                     preferred_element_type=jnp.float32) + m2b2_ref[d]
        x = xs + xc                                              # (rows, CP)

    # ---- final norm, per-image mean pool over tokens, classifier head ----
    x = _layernorm_masked(x, fnw_ref[...], fnb_ref[...], cmask)  # (rows, CP)
    xT = jnp.swapaxes(x.reshape(bb, TOKENS, CP), 1, 2)           # (bb, CP, T)
    pooled = jnp.sum(xT, axis=-1) * (1.0 / TOKENS)               # (bb, CP)
    # classifier (class dim zero-padded to 128 -> unmasked lane-dense store)
    out_ref[...] = (jnp.dot(pooled.astype(BF16), fcw_ref[...],
                            preferred_element_type=jnp.float32)
                    + fcb_ref[...])                              # (bb, 128)


def _full_spec(shape):
    return pl.BlockSpec(shape, lambda i: (0,) * len(shape))


def mlp_mixer_forward(data, params, *, block_b=256):
    """data: (B, 1, 28, 28) float32, NCHW.  Returns (B, CLASS_NUM) logits."""
    (conv_w, conv_b, nw, nb, m1w1, m1b1, m1w2, m1b2,
     m2w1, m2b1, m2w2, m2b2, fnw, fnb, fcw, fcb) = params
    B = data.shape[0]
    hp = IMG // PATCH

    # batch tile: multiple of 8 sublanes; keep >= 2 grid steps when possible
    # so the "parallel" batch axis can shard across TensorCores (v7x megacore).
    bb = min(block_b, B)
    if B > 8:
        bb = min(bb, (B + 1) // 2)
    bb = _round_up(max(bb, 8), 8)
    b_pad = _round_up(B, bb)

    # ---- host-side glue: patch extraction + padding + bf16 weight layout ----
    # (B,1,28,28) -> (B, T, P*P), row-major patches == Conv2d(stride=patch)
    patches = data.reshape(B, 1, hp, PATCH, hp, PATCH)
    patches = patches.transpose(0, 2, 4, 1, 3, 5).reshape(B, TOKENS, P2)
    if b_pad != B:
        patches = jnp.pad(patches, ((0, b_pad - B), (0, 0), (0, 0)))
    # fold (batch, token) onto rows; pad pixels 49 -> 64; bf16 to halve DMA
    patches2 = jnp.pad(patches.reshape(b_pad * TOKENS, P2),
                       ((0, 0), (0, P2PAD - P2))).astype(BF16)

    cpad = CP - CHANNEL_DIM
    conv_w_p = jnp.pad(conv_w, ((0, P2PAD - P2), (0, cpad))).astype(BF16)
    conv_b_p = jnp.pad(conv_b, ((0, 0), (0, cpad)))                # (1, CP)
    nw_p = jnp.pad(nw, ((0, 0), (0, cpad)))                        # (D, CP)
    nb_p = jnp.pad(nb, ((0, 0), (0, cpad)))
    m1w1_b = m1w1.astype(BF16)                                     # (D, T, H)
    m1b1_r = m1b1[:, None, :]                                      # (D, 1, H)
    m1w2_b = m1w2.astype(BF16)                                     # (D, H, T)
    m1b2_r = m1b2[:, None, :]                                      # (D, 1, T)
    m2w1_p = jnp.pad(m2w1, ((0, 0), (0, cpad), (0, 0))).astype(BF16)
    m2b1_r = m2b1[:, None, :]                                      # (D, 1, H)
    m2w2_p = jnp.pad(m2w2, ((0, 0), (0, 0), (0, cpad))).astype(BF16)
    m2b2_r = jnp.pad(m2b2, ((0, 0), (0, cpad)))[:, None, :]        # (D, 1, CP)
    fnw_p = jnp.pad(fnw, ((0, 0), (0, cpad)))                      # (1, CP)
    fnb_p = jnp.pad(fnb, ((0, 0), (0, cpad)))
    fcw_p = jnp.pad(fcw, ((0, cpad), (0, KPAD - CLASS_NUM))).astype(BF16)
    fcb_p = jnp.pad(fcb, ((0, 0), (0, KPAD - CLASS_NUM)))          # (1, 128)

    rows = bb * TOKENS
    in_specs = [
        pl.BlockSpec((rows, P2PAD), lambda i: (i, 0)),             # patches
        _full_spec((P2PAD, CP)),                                   # conv_w
        _full_spec((1, CP)),                                       # conv_b
        _full_spec((DEPTH, CP)),                                   # norm gamma
        _full_spec((DEPTH, CP)),                                   # norm beta
        _full_spec((DEPTH, TOKENS, HIDDEN)),                       # mlp1 w1
        _full_spec((DEPTH, 1, HIDDEN)),                            # mlp1 b1
        _full_spec((DEPTH, HIDDEN, TOKENS)),                       # mlp1 w2
        _full_spec((DEPTH, 1, TOKENS)),                            # mlp1 b2
        _full_spec((DEPTH, CP, HIDDEN)),                           # mlp2 w1
        _full_spec((DEPTH, 1, HIDDEN)),                            # mlp2 b1
        _full_spec((DEPTH, HIDDEN, CP)),                           # mlp2 w2
        _full_spec((DEPTH, 1, CP)),                                # mlp2 b2
        _full_spec((1, CP)),                                       # final gamma
        _full_spec((1, CP)),                                       # final beta
        _full_spec((CP, KPAD)),                                    # fc w (pad)
        _full_spec((1, KPAD)),                                     # fc b (pad)
    ]
    out = pl.pallas_call(
        mlp_mixer_kernel,
        out_shape=jax.ShapeDtypeStruct((b_pad, KPAD), jnp.float32),
        grid=(b_pad // bb,),
        in_specs=in_specs,
        out_specs=pl.BlockSpec((bb, KPAD), lambda i: (i, 0)),
        compiler_params=pltpu.CompilerParams(
            dimension_semantics=("parallel",),
            vmem_limit_bytes=32 * 1024 * 1024),
    )(patches2, conv_w_p, conv_b_p, nw_p, nb_p,
      m1w1_b, m1b1_r, m1w2_b, m1b2_r,
      m2w1_p, m2b1_r, m2w2_p, m2b2_r,
      fnw_p, fnb_p, fcw_p, fcb_p)
    return out[:B, :CLASS_NUM]


def init_params(key):
    ks = jax.random.split(key, 16)
    s = 0.1
    conv_w = s * jax.random.normal(ks[0], (P2, CHANNEL_DIM), jnp.float32)
    conv_b = s * jax.random.normal(ks[1], (1, CHANNEL_DIM), jnp.float32)
    nw = 1.0 + s * jax.random.normal(ks[2], (DEPTH, CHANNEL_DIM), jnp.float32)
    nb = s * jax.random.normal(ks[3], (DEPTH, CHANNEL_DIM), jnp.float32)
    m1w1 = s * jax.random.normal(ks[4], (DEPTH, TOKENS, HIDDEN), jnp.float32)
    m1b1 = s * jax.random.normal(ks[5], (DEPTH, HIDDEN), jnp.float32)
    m1w2 = s * jax.random.normal(ks[6], (DEPTH, HIDDEN, TOKENS), jnp.float32)
    m1b2 = s * jax.random.normal(ks[7], (DEPTH, TOKENS), jnp.float32)
    m2w1 = s * jax.random.normal(ks[8], (DEPTH, CHANNEL_DIM, HIDDEN), jnp.float32)
    m2b1 = s * jax.random.normal(ks[9], (DEPTH, HIDDEN), jnp.float32)
    m2w2 = s * jax.random.normal(ks[10], (DEPTH, HIDDEN, CHANNEL_DIM), jnp.float32)
    m2b2 = s * jax.random.normal(ks[11], (DEPTH, CHANNEL_DIM), jnp.float32)
    fnw = 1.0 + s * jax.random.normal(ks[12], (1, CHANNEL_DIM), jnp.float32)
    fnb = s * jax.random.normal(ks[13], (1, CHANNEL_DIM), jnp.float32)
    fcw = s * jax.random.normal(ks[14], (CHANNEL_DIM, CLASS_NUM), jnp.float32)
    fcb = s * jax.random.normal(ks[15], (1, CLASS_NUM), jnp.float32)
    return (conv_w, conv_b, nw, nb, m1w1, m1b1, m1w2, m1b2,
            m2w1, m2b1, m2w2, m2b2, fnw, fnb, fcw, fcb)


def reference_forward(data, params):
    """Pure-JAX reference mirroring the PyTorch forward (for validation)."""
    (conv_w, conv_b, nw, nb, m1w1, m1b1, m1w2, m1b2,
     m2w1, m2b1, m2w2, m2b2, fnw, fnb, fcw, fcb) = params
    B = data.shape[0]
    hp = IMG // PATCH
    patches = data.reshape(B, 1, hp, PATCH, hp, PATCH)
    patches = patches.transpose(0, 2, 4, 1, 3, 5).reshape(B, TOKENS, P2)
    x = patches @ conv_w + conv_b                       # (B, T, C)
    for d in range(DEPTH):
        gamma, beta = nw[d], nb[d]
        xt = jnp.swapaxes(_layernorm(x, gamma, beta), 1, 2)   # (B, C, T)
        h = _gelu(xt @ m1w1[d] + m1b1[d])
        x_token = h @ m1w2[d] + m1b2[d]
        y = xt + x_token
        x_skip = _layernorm(jnp.swapaxes(y, 1, 2), gamma, beta)
        h2 = _gelu(x_skip @ m2w1[d] + m2b1[d])
        x_channel = h2 @ m2w2[d] + m2b2[d]
        x = x_skip + x_channel
    x = _layernorm(x, fnw[0], fnb[0])
    pooled = jnp.mean(x, axis=1)                        # (B, C)
    return pooled @ fcw + fcb[0]


if __name__ == "__main__":
    key = jax.random.PRNGKey(0)
    k_data, k_param = jax.random.split(key)
    B = 13                                  # exercises batch padding (13 -> 16)
    data = jax.random.normal(k_data, (B, 1, IMG, IMG), jnp.float32)
    params = init_params(k_param)

    # small batch tile (8) so the demo also exercises a multi-step grid
    out = mlp_mixer_forward(data, params, block_b=8)
    out = jax.block_until_ready(out)

    ref = reference_forward(data, params)
    assert out.shape == (B, CLASS_NUM)
    if not np.allclose(np.asarray(out), np.asarray(ref), rtol=2e-2, atol=2e-2):
        raise AssertionError("Pallas kernel output mismatch vs reference")
    print("KERNEL_OK")
</pallas_src>

<mosaic_0001>
module attributes {stable_mosaic.version = 11 : i64} {
  func.func @mlp_mixer_kernel(%arg0: i32, %arg1: memref<128x64xbf16, #tpu.memory_space<vmem>>, %arg2: memref<64x16xbf16, #tpu.memory_space<vmem>>, %arg3: memref<1x16xf32, #tpu.memory_space<vmem>>, %arg4: memref<2x16xf32, #tpu.memory_space<vmem>>, %arg5: memref<2x16xf32, #tpu.memory_space<vmem>>, %arg6: memref<2x16x32xbf16, #tpu.memory_space<vmem>>, %arg7: memref<2x1x32xf32, #tpu.memory_space<vmem>>, %arg8: memref<2x32x16xbf16, #tpu.memory_space<vmem>>, %arg9: memref<2x1x16xf32, #tpu.memory_space<vmem>>, %arg10: memref<2x16x32xbf16, #tpu.memory_space<vmem>>, %arg11: memref<2x1x32xf32, #tpu.memory_space<vmem>>, %arg12: memref<2x32x16xbf16, #tpu.memory_space<vmem>>, %arg13: memref<2x1x16xf32, #tpu.memory_space<vmem>>, %arg14: memref<1x16xf32, #tpu.memory_space<vmem>>, %arg15: memref<1x16xf32, #tpu.memory_space<vmem>>, %arg16: memref<16x128xbf16, #tpu.memory_space<vmem>>, %arg17: memref<1x128xf32, #tpu.memory_space<vmem>>, %arg18: memref<8x128xf32, #tpu.memory_space<vmem>>) attributes {dimension_semantics = [#tpu.dimension_semantics<parallel>], iteration_bounds = array<i64: 2>, scalar_prefetch = 0 : i64, scratch_operands = 0 : i64, tpu.core_type = #tpu.core_type<tc>, window_params = [{transform_indices = @transform_0, window_bounds = array<i64: 128, 64>}, {pipeline_mode = #tpu.pipeline_mode<synchronous>, transform_indices = @transform_1, window_bounds = array<i64: 64, 16>}, {pipeline_mode = #tpu.pipeline_mode<synchronous>, transform_indices = @transform_2, window_bounds = array<i64: 1, 16>}, {pipeline_mode = #tpu.pipeline_mode<synchronous>, transform_indices = @transform_3, window_bounds = array<i64: 2, 16>}, {pipeline_mode = #tpu.pipeline_mode<synchronous>, transform_indices = @transform_4, window_bounds = array<i64: 2, 16>}, {pipeline_mode = #tpu.pipeline_mode<synchronous>, transform_indices = @transform_5, window_bounds = array<i64: 2, 16, 32>}, {pipeline_mode = #tpu.pipeline_mode<synchronous>, transform_indices = @transform_6, window_bounds = array<i64: 2, 1, 32>}, {pipeline_mode = #tpu.pipeline_mode<synchronous>, transform_indices = @transform_7, window_bounds = array<i64: 2, 32, 16>}, {pipeline_mode = #tpu.pipeline_mode<synchronous>, transform_indices = @transform_8, window_bounds = array<i64: 2, 1, 16>}, {pipeline_mode = #tpu.pipeline_mode<synchronous>, transform_indices = @transform_9, window_bounds = array<i64: 2, 16, 32>}, {pipeline_mode = #tpu.pipeline_mode<synchronous>, transform_indices = @transform_10, window_bounds = array<i64: 2, 1, 32>}, {pipeline_mode = #tpu.pipeline_mode<synchronous>, transform_indices = @transform_11, window_bounds = array<i64: 2, 32, 16>}, {pipeline_mode = #tpu.pipeline_mode<synchronous>, transform_indices = @transform_12, window_bounds = array<i64: 2, 1, 16>}, {pipeline_mode = #tpu.pipeline_mode<synchronous>, transform_indices = @transform_13, window_bounds = array<i64: 1, 16>}, {pipeline_mode = #tpu.pipeline_mode<synchronous>, transform_indices = @transform_14, window_bounds = array<i64: 1, 16>}, {pipeline_mode = #tpu.pipeline_mode<synchronous>, transform_indices = @transform_15, window_bounds = array<i64: 16, 128>}, {pipeline_mode = #tpu.pipeline_mode<synchronous>, transform_indices = @transform_16, window_bounds = array<i64: 1, 128>}, {transform_indices = @transform_17, window_bounds = array<i64: 8, 128>}]} {
    %0 = tpu.iota {dimensions = array<i32: 1>} : vector<1x16xi32>
    %c14_i32 = arith.constant 14 : i32
    %1 = vector.broadcast %c14_i32 : i32 to vector<1x16xi32>
    %2 = arith.cmpi slt, %0, %1 : vector<1x16xi32>
    %3 = arith.extui %2 : vector<1x16xi1> to vector<1x16xi32>
    %4 = arith.sitofp %3 : vector<1x16xi32> to vector<1x16xf32>
    %c0 = arith.constant 0 : index
    %c0_0 = arith.constant 0 : index
    %5 = vector.load %arg1[%c0, %c0_0] : memref<128x64xbf16, #tpu.memory_space<vmem>>, vector<128x64xbf16>
    %c0_1 = arith.constant 0 : index
    %c0_2 = arith.constant 0 : index
    %6 = vector.load %arg2[%c0_1, %c0_2] : memref<64x16xbf16, #tpu.memory_space<vmem>>, vector<64x16xbf16>
    %cst = arith.constant dense<0.000000e+00> : vector<128x16xf32>
    %7 = tpu.matmul %5, %6, %cst {dimension_numbers = #tpu.dot_dimension_numbers<[1], [0], [0], [1], [0, 0, 1, 1], [], []>} : vector<128x64xbf16>, vector<64x16xbf16>, vector<128x16xf32> -> vector<128x16xf32>
    %c0_3 = arith.constant 0 : index
    %c0_4 = arith.constant 0 : index
    %8 = vector.load %arg3[%c0_3, %c0_4] : memref<1x16xf32, #tpu.memory_space<vmem>>, vector<1x16xf32>
    %9 = vector.broadcast %8 : vector<1x16xf32> to vector<128x16xf32>
    %10 = arith.addf %7, %9 : vector<128x16xf32>
    %c0_5 = arith.constant 0 : index
    %c0_6 = arith.constant 0 : index
    %11 = vector.load %arg4[%c0_5, %c0_6] : memref<2x16xf32, #tpu.memory_space<vmem>>, vector<1x16xf32>
    %c0_7 = arith.constant 0 : index
    %c0_8 = arith.constant 0 : index
    %12 = vector.load %arg5[%c0_7, %c0_8] : memref<2x16xf32, #tpu.memory_space<vmem>>, vector<1x16xf32>
    %13 = vector.broadcast %4 : vector<1x16xf32> to vector<128x16xf32>
    %14 = arith.mulf %10, %13 : vector<128x16xf32>
    %cst_9 = arith.constant dense<0.000000e+00> : vector<128xf32>
    %15 = vector.multi_reduction <add>, %14, %cst_9 [1] : vector<128x16xf32> to vector<128xf32>
    %16 = vector.shape_cast %15 : vector<128xf32> to vector<128x1xf32>
    %cst_10 = arith.constant 0.0714285746 : f32
    %17 = vector.broadcast %cst_10 : f32 to vector<128x1xf32>
    %18 = arith.mulf %16, %17 : vector<128x1xf32>
    %19 = vector.broadcast %18 : vector<128x1xf32> to vector<128x16xf32>
    %20 = arith.subf %10, %19 : vector<128x16xf32>
    %21 = vector.broadcast %4 : vector<1x16xf32> to vector<128x16xf32>
    %22 = arith.mulf %20, %21 : vector<128x16xf32>
    %23 = arith.mulf %22, %22 : vector<128x16xf32>
    %cst_11 = arith.constant dense<0.000000e+00> : vector<128xf32>
    %24 = vector.multi_reduction <add>, %23, %cst_11 [1] : vector<128x16xf32> to vector<128xf32>
    %25 = vector.shape_cast %24 : vector<128xf32> to vector<128x1xf32>
    %cst_12 = arith.constant 0.0714285746 : f32
    %26 = vector.broadcast %cst_12 : f32 to vector<128x1xf32>
    %27 = arith.mulf %25, %26 : vector<128x1xf32>
    %cst_13 = arith.constant 9.99999974E-6 : f32
    %28 = vector.broadcast %cst_13 : f32 to vector<128x1xf32>
    %29 = arith.addf %27, %28 : vector<128x1xf32>
    %30 = math.rsqrt %29 : vector<128x1xf32>
    %31 = vector.broadcast %30 : vector<128x1xf32> to vector<128x16xf32>
    %32 = arith.mulf %22, %31 : vector<128x16xf32>
    %33 = vector.broadcast %11 : vector<1x16xf32> to vector<128x16xf32>
    %34 = arith.mulf %32, %33 : vector<128x16xf32>
    %35 = vector.broadcast %12 : vector<1x16xf32> to vector<128x16xf32>
    %36 = arith.addf %34, %35 : vector<128x16xf32>
    %37 = vector.shape_cast %36 : vector<128x16xf32> to vector<8x16x16xf32>
    %38 = tpu.transpose %37, [0, 2, 1] : vector<8x16x16xf32> -> vector<8x16x16xf32>
    %39 = vector.shape_cast %38 : vector<8x16x16xf32> to vector<128x16xf32>
    %40 = arith.truncf %39 : vector<128x16xf32> to vector<128x16xbf16>
    %c0_14 = arith.constant 0 : index
    %c0_15 = arith.constant 0 : index
    %c0_16 = arith.constant 0 : index
    %41 = vector.load %arg6[%c0_14, %c0_15, %c0_16] : memref<2x16x32xbf16, #tpu.memory_space<vmem>>, vector<1x16x32xbf16>
    %42 = vector.shape_cast %41 : vector<1x16x32xbf16> to vector<16x32xbf16>
    %cst_17 = arith.constant dense<0.000000e+00> : vector<128x32xf32>
    %43 = tpu.matmul %40, %42, %cst_17 {dimension_numbers = #tpu.dot_dimension_numbers<[1], [0], [0], [1], [0, 0, 1, 1], [], []>} : vector<128x16xbf16>, vector<16x32xbf16>, vector<128x32xf32> -> vector<128x32xf32>
    %c0_18 = arith.constant 0 : index
    %c0_19 = arith.constant 0 : index
    %c0_20 = arith.constant 0 : index
    %44 = vector.load %arg7[%c0_18, %c0_19, %c0_20] : memref<2x1x32xf32, #tpu.memory_space<vmem>>, vector<1x1x32xf32>
    %45 = vector.shape_cast %44 : vector<1x1x32xf32> to vector<1x32xf32>
    %46 = vector.broadcast %45 : vector<1x32xf32> to vector<128x32xf32>
    %47 = arith.addf %43, %46 : vector<128x32xf32>
    %cst_21 = arith.constant 5.000000e-01 : f32
    %48 = vector.broadcast %cst_21 : f32 to vector<128x32xf32>
    %49 = arith.mulf %48, %47 : vector<128x32xf32>
    %cst_22 = arith.constant 0.707106769 : f32
    %50 = vector.broadcast %cst_22 : f32 to vector<128x32xf32>
    %51 = arith.mulf %47, %50 : vector<128x32xf32>
    %52 = math.erf %51 : vector<128x32xf32>
    %cst_23 = arith.constant 1.000000e+00 : f32
    %53 = vector.broadcast %cst_23 : f32 to vector<128x32xf32>
    %54 = arith.addf %53, %52 : vector<128x32xf32>
    %55 = arith.mulf %49, %54 : vector<128x32xf32>
    %56 = arith.truncf %55 : vector<128x32xf32> to vector<128x32xbf16>
    %c0_24 = arith.constant 0 : index
    %c0_25 = arith.constant 0 : index
    %c0_26 = arith.constant 0 : index
    %57 = vector.load %arg8[%c0_24, %c0_25, %c0_26] : memref<2x32x16xbf16, #tpu.memory_space<vmem>>, vector<1x32x16xbf16>
    %58 = vector.shape_cast %57 : vector<1x32x16xbf16> to vector<32x16xbf16>
    %cst_27 = arith.constant dense<0.000000e+00> : vector<128x16xf32>
    %59 = tpu.matmul %56, %58, %cst_27 {dimension_numbers = #tpu.dot_dimension_numbers<[1], [0], [0], [1], [0, 0, 1, 1], [], []>} : vector<128x32xbf16>, vector<32x16xbf16>, vector<128x16xf32> -> vector<128x16xf32>
    %c0_28 = arith.constant 0 : index
    %c0_29 = arith.constant 0 : index
    %c0_30 = arith.constant 0 : index
    %60 = vector.load %arg9[%c0_28, %c0_29, %c0_30] : memref<2x1x16xf32, #tpu.memory_space<vmem>>, vector<1x1x16xf32>
    %61 = vector.shape_cast %60 : vector<1x1x16xf32> to vector<1x16xf32>
    %62 = vector.broadcast %61 : vector<1x16xf32> to vector<128x16xf32>
    %63 = arith.addf %59, %62 : vector<128x16xf32>
    %64 = vector.shape_cast %63 : vector<128x16xf32> to vector<8x16x16xf32>
    %65 = tpu.transpose %64, [0, 2, 1] : vector<8x16x16xf32> -> vector<8x16x16xf32>
    %66 = vector.shape_cast %65 : vector<8x16x16xf32> to vector<128x16xf32>
    %67 = arith.addf %36, %66 : vector<128x16xf32>
    %68 = vector.broadcast %4 : vector<1x16xf32> to vector<128x16xf32>
    %69 = arith.mulf %67, %68 : vector<128x16xf32>
    %cst_31 = arith.constant dense<0.000000e+00> : vector<128xf32>
    %70 = vector.multi_reduction <add>, %69, %cst_31 [1] : vector<128x16xf32> to vector<128xf32>
    %71 = vector.shape_cast %70 : vector<128xf32> to vector<128x1xf32>
    %cst_32 = arith.constant 0.0714285746 : f32
    %72 = vector.broadcast %cst_32 : f32 to vector<128x1xf32>
    %73 = arith.mulf %71, %72 : vector<128x1xf32>
    %74 = vector.broadcast %73 : vector<128x1xf32> to vector<128x16xf32>
    %75 = arith.subf %67, %74 : vector<128x16xf32>
    %76 = vector.broadcast %4 : vector<1x16xf32> to vector<128x16xf32>
    %77 = arith.mulf %75, %76 : vector<128x16xf32>
    %78 = arith.mulf %77, %77 : vector<128x16xf32>
    %cst_33 = arith.constant dense<0.000000e+00> : vector<128xf32>
    %79 = vector.multi_reduction <add>, %78, %cst_33 [1] : vector<128x16xf32> to vector<128xf32>
    %80 = vector.shape_cast %79 : vector<128xf32> to vector<128x1xf32>
    %cst_34 = arith.constant 0.0714285746 : f32
    %81 = vector.broadcast %cst_34 : f32 to vector<128x1xf32>
    %82 = arith.mulf %80, %81 : vector<128x1xf32>
    %cst_35 = arith.constant 9.99999974E-6 : f32
    %83 = vector.broadcast %cst_35 : f32 to vector<128x1xf32>
    %84 = arith.addf %82, %83 : vector<128x1xf32>
    %85 = math.rsqrt %84 : vector<128x1xf32>
    %86 = vector.broadcast %85 : vector<128x1xf32> to vector<128x16xf32>
    %87 = arith.mulf %77, %86 : vector<128x16xf32>
    %88 = vector.broadcast %11 : vector<1x16xf32> to vector<128x16xf32>
    %89 = arith.mulf %87, %88 : vector<128x16xf32>
    %90 = vector.broadcast %12 : vector<1x16xf32> to vector<128x16xf32>
    %91 = arith.addf %89, %90 : vector<128x16xf32>
    %92 = arith.truncf %91 : vector<128x16xf32> to vector<128x16xbf16>
    %c0_36 = arith.constant 0 : index
    %c0_37 = arith.constant 0 : index
    %c0_38 = arith.constant 0 : index
    %93 = vector.load %arg10[%c0_36, %c0_37, %c0_38] : memref<2x16x32xbf16, #tpu.memory_space<vmem>>, vector<1x16x32xbf16>
    %94 = vector.shape_cast %93 : vector<1x16x32xbf16> to vector<16x32xbf16>
    %cst_39 = arith.constant dense<0.000000e+00> : vector<128x32xf32>
    %95 = tpu.matmul %92, %94, %cst_39 {dimension_numbers = #tpu.dot_dimension_numbers<[1], [0], [0], [1], [0, 0, 1, 1], [], []>} : vector<128x16xbf16>, vector<16x32xbf16>, vector<128x32xf32> -> vector<128x32xf32>
    %c0_40 = arith.constant 0 : index
    %c0_41 = arith.constant 0 : index
    %c0_42 = arith.constant 0 : index
    %96 = vector.load %arg11[%c0_40, %c0_41, %c0_42] : memref<2x1x32xf32, #tpu.memory_space<vmem>>, vector<1x1x32xf32>
    %97 = vector.shape_cast %96 : vector<1x1x32xf32> to vector<1x32xf32>
    %98 = vector.broadcast %97 : vector<1x32xf32> to vector<128x32xf32>
    %99 = arith.addf %95, %98 : vector<128x32xf32>
    %cst_43 = arith.constant 5.000000e-01 : f32
    %100 = vector.broadcast %cst_43 : f32 to vector<128x32xf32>
    %101 = arith.mulf %100, %99 : vector<128x32xf32>
    %cst_44 = arith.constant 0.707106769 : f32
    %102 = vector.broadcast %cst_44 : f32 to vector<128x32xf32>
    %103 = arith.mulf %99, %102 : vector<128x32xf32>
    %104 = math.erf %103 : vector<128x32xf32>
    %cst_45 = arith.constant 1.000000e+00 : f32
    %105 = vector.broadcast %cst_45 : f32 to vector<128x32xf32>
    %106 = arith.addf %105, %104 : vector<128x32xf32>
    %107 = arith.mulf %101, %106 : vector<128x32xf32>
    %108 = arith.truncf %107 : vector<128x32xf32> to vector<128x32xbf16>
    %c0_46 = arith.constant 0 : index
    %c0_47 = arith.constant 0 : index
    %c0_48 = arith.constant 0 : index
    %109 = vector.load %arg12[%c0_46, %c0_47, %c0_48] : memref<2x32x16xbf16, #tpu.memory_space<vmem>>, vector<1x32x16xbf16>
    %110 = vector.shape_cast %109 : vector<1x32x16xbf16> to vector<32x16xbf16>
    %cst_49 = arith.constant dense<0.000000e+00> : vector<128x16xf32>
    %111 = tpu.matmul %108, %110, %cst_49 {dimension_numbers = #tpu.dot_dimension_numbers<[1], [0], [0], [1], [0, 0, 1, 1], [], []>} : vector<128x32xbf16>, vector<32x16xbf16>, vector<128x16xf32> -> vector<128x16xf32>
    %c0_50 = arith.constant 0 : index
    %c0_51 = arith.constant 0 : index
    %c0_52 = arith.constant 0 : index
    %112 = vector.load %arg13[%c0_50, %c0_51, %c0_52] : memref<2x1x16xf32, #tpu.memory_space<vmem>>, vector<1x1x16xf32>
    %113 = vector.shape_cast %112 : vector<1x1x16xf32> to vector<1x16xf32>
    %114 = vector.broadcast %113 : vector<1x16xf32> to vector<128x16xf32>
    %115 = arith.addf %111, %114 : vector<128x16xf32>
    %116 = arith.addf %91, %115 : vector<128x16xf32>
    %c1 = arith.constant 1 : index
    %c0_53 = arith.constant 0 : index
    %117 = vector.load %arg4[%c1, %c0_53] : memref<2x16xf32, #tpu.memory_space<vmem>>, vector<1x16xf32>
    %c1_54 = arith.constant 1 : index
    %c0_55 = arith.constant 0 : index
    %118 = vector.load %arg5[%c1_54, %c0_55] : memref<2x16xf32, #tpu.memory_space<vmem>>, vector<1x16xf32>
    %119 = vector.broadcast %4 : vector<1x16xf32> to vector<128x16xf32>
    %120 = arith.mulf %116, %119 : vector<128x16xf32>
    %cst_56 = arith.constant dense<0.000000e+00> : vector<128xf32>
    %121 = vector.multi_reduction <add>, %120, %cst_56 [1] : vector<128x16xf32> to vector<128xf32>
    %122 = vector.shape_cast %121 : vector<128xf32> to vector<128x1xf32>
    %cst_57 = arith.constant 0.0714285746 : f32
    %123 = vector.broadcast %cst_57 : f32 to vector<128x1xf32>
    %124 = arith.mulf %122, %123 : vector<128x1xf32>
    %125 = vector.broadcast %124 : vector<128x1xf32> to vector<128x16xf32>
    %126 = arith.subf %116, %125 : vector<128x16xf32>
    %127 = vector.broadcast %4 : vector<1x16xf32> to vector<128x16xf32>
    %128 = arith.mulf %126, %127 : vector<128x16xf32>
    %129 = arith.mulf %128, %128 : vector<128x16xf32>
    %cst_58 = arith.constant dense<0.000000e+00> : vector<128xf32>
    %130 = vector.multi_reduction <add>, %129, %cst_58 [1] : vector<128x16xf32> to vector<128xf32>
    %131 = vector.shape_cast %130 : vector<128xf32> to vector<128x1xf32>
    %cst_59 = arith.constant 0.0714285746 : f32
    %132 = vector.broadcast %cst_59 : f32 to vector<128x1xf32>
    %133 = arith.mulf %131, %132 : vector<128x1xf32>
    %cst_60 = arith.constant 9.99999974E-6 : f32
    %134 = vector.broadcast %cst_60 : f32 to vector<128x1xf32>
    %135 = arith.addf %133, %134 : vector<128x1xf32>
    %136 = math.rsqrt %135 : vector<128x1xf32>
    %137 = vector.broadcast %136 : vector<128x1xf32> to vector<128x16xf32>
    %138 = arith.mulf %128, %137 : vector<128x16xf32>
    %139 = vector.broadcast %117 : vector<1x16xf32> to vector<128x16xf32>
    %140 = arith.mulf %138, %139 : vector<128x16xf32>
    %141 = vector.broadcast %118 : vector<1x16xf32> to vector<128x16xf32>
    %142 = arith.addf %140, %141 : vector<128x16xf32>
    %143 = vector.shape_cast %142 : vector<128x16xf32> to vector<8x16x16xf32>
    %144 = tpu.transpose %143, [0, 2, 1] : vector<8x16x16xf32> -> vector<8x16x16xf32>
    %145 = vector.shape_cast %144 : vector<8x16x16xf32> to vector<128x16xf32>
    %146 = arith.truncf %145 : vector<128x16xf32> to vector<128x16xbf16>
    %c1_61 = arith.constant 1 : index
    %c0_62 = arith.constant 0 : index
    %c0_63 = arith.constant 0 : index
    %147 = vector.load %arg6[%c1_61, %c0_62, %c0_63] : memref<2x16x32xbf16, #tpu.memory_space<vmem>>, vector<1x16x32xbf16>
    %148 = vector.shape_cast %147 : vector<1x16x32xbf16> to vector<16x32xbf16>
    %cst_64 = arith.constant dense<0.000000e+00> : vector<128x32xf32>
    %149 = tpu.matmul %146, %148, %cst_64 {dimension_numbers = #tpu.dot_dimension_numbers<[1], [0], [0], [1], [0, 0, 1, 1], [], []>} : vector<128x16xbf16>, vector<16x32xbf16>, vector<128x32xf32> -> vector<128x32xf32>
    %c1_65 = arith.constant 1 : index
    %c0_66 = arith.constant 0 : index
    %c0_67 = arith.constant 0 : index
    %150 = vector.load %arg7[%c1_65, %c0_66, %c0_67] : memref<2x1x32xf32, #tpu.memory_space<vmem>>, vector<1x1x32xf32>
    %151 = vector.shape_cast %150 : vector<1x1x32xf32> to vector<1x32xf32>
    %152 = vector.broadcast %151 : vector<1x32xf32> to vector<128x32xf32>
    %153 = arith.addf %149, %152 : vector<128x32xf32>
    %cst_68 = arith.constant 5.000000e-01 : f32
    %154 = vector.broadcast %cst_68 : f32 to vector<128x32xf32>
    %155 = arith.mulf %154, %153 : vector<128x32xf32>
    %cst_69 = arith.constant 0.707106769 : f32
    %156 = vector.broadcast %cst_69 : f32 to vector<128x32xf32>
    %157 = arith.mulf %153, %156 : vector<128x32xf32>
    %158 = math.erf %157 : vector<128x32xf32>
    %cst_70 = arith.constant 1.000000e+00 : f32
    %159 = vector.broadcast %cst_70 : f32 to vector<128x32xf32>
    %160 = arith.addf %159, %158 : vector<128x32xf32>
    %161 = arith.mulf %155, %160 : vector<128x32xf32>
    %162 = arith.truncf %161 : vector<128x32xf32> to vector<128x32xbf16>
    %c1_71 = arith.constant 1 : index
    %c0_72 = arith.constant 0 : index
    %c0_73 = arith.constant 0 : index
    %163 = vector.load %arg8[%c1_71, %c0_72, %c0_73] : memref<2x32x16xbf16, #tpu.memory_space<vmem>>, vector<1x32x16xbf16>
    %164 = vector.shape_cast %163 : vector<1x32x16xbf16> to vector<32x16xbf16>
    %cst_74 = arith.constant dense<0.000000e+00> : vector<128x16xf32>
    %165 = tpu.matmul %162, %164, %cst_74 {dimension_numbers = #tpu.dot_dimension_numbers<[1], [0], [0], [1], [0, 0, 1, 1], [], []>} : vector<128x32xbf16>, vector<32x16xbf16>, vector<128x16xf32> -> vector<128x16xf32>
    %c1_75 = arith.constant 1 : index
    %c0_76 = arith.constant 0 : index
    %c0_77 = arith.constant 0 : index
    %166 = vector.load %arg9[%c1_75, %c0_76, %c0_77] : memref<2x1x16xf32, #tpu.memory_space<vmem>>, vector<1x1x16xf32>
    %167 = vector.shape_cast %166 : vector<1x1x16xf32> to vector<1x16xf32>
    %168 = vector.broadcast %167 : vector<1x16xf32> to vector<128x16xf32>
    %169 = arith.addf %165, %168 : vector<128x16xf32>
    %170 = vector.shape_cast %169 : vector<128x16xf32> to vector<8x16x16xf32>
    %171 = tpu.transpose %170, [0, 2, 1] : vector<8x16x16xf32> -> vector<8x16x16xf32>
    %172 = vector.shape_cast %171 : vector<8x16x16xf32> to vector<128x16xf32>
    %173 = arith.addf %142, %172 : vector<128x16xf32>
    %174 = vector.broadcast %4 : vector<1x16xf32> to vector<128x16xf32>
    %175 = arith.mulf %173, %174 : vector<128x16xf32>
    %cst_78 = arith.constant dense<0.000000e+00> : vector<128xf32>
    %176 = vector.multi_reduction <add>, %175, %cst_78 [1] : vector<128x16xf32> to vector<128xf32>
    %177 = vector.shape_cast %176 : vector<128xf32> to vector<128x1xf32>
    %cst_79 = arith.constant 0.0714285746 : f32
    %178 = vector.broadcast %cst_79 : f32 to vector<128x1xf32>
    %179 = arith.mulf %177, %178 : vector<128x1xf32>
    %180 = vector.broadcast %179 : vector<128x1xf32> to vector<128x16xf32>
    %181 = arith.subf %173, %180 : vector<128x16xf32>
    %182 = vector.broadcast %4 : vector<1x16xf32> to vector<128x16xf32>
    %183 = arith.mulf %181, %182 : vector<128x16xf32>
    %184 = arith.mulf %183, %183 : vector<128x16xf32>
    %cst_80 = arith.constant dense<0.000000e+00> : vector<128xf32>
    %185 = vector.multi_reduction <add>, %184, %cst_80 [1] : vector<128x16xf32> to vector<128xf32>
    %186 = vector.shape_cast %185 : vector<128xf32> to vector<128x1xf32>
    %cst_81 = arith.constant 0.0714285746 : f32
    %187 = vector.broadcast %cst_81 : f32 to vector<128x1xf32>
    %188 = arith.mulf %186, %187 : vector<128x1xf32>
    %cst_82 = arith.constant 9.99999974E-6 : f32
    %189 = vector.broadcast %cst_82 : f32 to vector<128x1xf32>
    %190 = arith.addf %188, %189 : vector<128x1xf32>
    %191 = math.rsqrt %190 : vector<128x1xf32>
    %192 = vector.broadcast %191 : vector<128x1xf32> to vector<128x16xf32>
    %193 = arith.mulf %183, %192 : vector<128x16xf32>
    %194 = vector.broadcast %117 : vector<1x16xf32> to vector<128x16xf32>
    %195 = arith.mulf %193, %194 : vector<128x16xf32>
    %196 = vector.broadcast %118 : vector<1x16xf32> to vector<128x16xf32>
    %197 = arith.addf %195, %196 : vector<128x16xf32>
    %198 = arith.truncf %197 : vector<128x16xf32> to vector<128x16xbf16>
    %c1_83 = arith.constant 1 : index
    %c0_84 = arith.constant 0 : index
    %c0_85 = arith.constant 0 : index
    %199 = vector.load %arg10[%c1_83, %c0_84, %c0_85] : memref<2x16x32xbf16, #tpu.memory_space<vmem>>, vector<1x16x32xbf16>
    %200 = vector.shape_cast %199 : vector<1x16x32xbf16> to vector<16x32xbf16>
    %cst_86 = arith.constant dense<0.000000e+00> : vector<128x32xf32>
    %201 = tpu.matmul %198, %200, %cst_86 {dimension_numbers = #tpu.dot_dimension_numbers<[1], [0], [0], [1], [0, 0, 1, 1], [], []>} : vector<128x16xbf16>, vector<16x32xbf16>, vector<128x32xf32> -> vector<128x32xf32>
    %c1_87 = arith.constant 1 : index
    %c0_88 = arith.constant 0 : index
    %c0_89 = arith.constant 0 : index
    %202 = vector.load %arg11[%c1_87, %c0_88, %c0_89] : memref<2x1x32xf32, #tpu.memory_space<vmem>>, vector<1x1x32xf32>
    %203 = vector.shape_cast %202 : vector<1x1x32xf32> to vector<1x32xf32>
    %204 = vector.broadcast %203 : vector<1x32xf32> to vector<128x32xf32>
    %205 = arith.addf %201, %204 : vector<128x32xf32>
    %cst_90 = arith.constant 5.000000e-01 : f32
    %206 = vector.broadcast %cst_90 : f32 to vector<128x32xf32>
    %207 = arith.mulf %206, %205 : vector<128x32xf32>
    %cst_91 = arith.constant 0.707106769 : f32
    %208 = vector.broadcast %cst_91 : f32 to vector<128x32xf32>
    %209 = arith.mulf %205, %208 : vector<128x32xf32>
    %210 = math.erf %209 : vector<128x32xf32>
    %cst_92 = arith.constant 1.000000e+00 : f32
    %211 = vector.broadcast %cst_92 : f32 to vector<128x32xf32>
    %212 = arith.addf %211, %210 : vector<128x32xf32>
    %213 = arith.mulf %207, %212 : vector<128x32xf32>
    %214 = arith.truncf %213 : vector<128x32xf32> to vector<128x32xbf16>
    %c1_93 = arith.constant 1 : index
    %c0_94 = arith.constant 0 : index
    %c0_95 = arith.constant 0 : index
    %215 = vector.load %arg12[%c1_93, %c0_94, %c0_95] : memref<2x32x16xbf16, #tpu.memory_space<vmem>>, vector<1x32x16xbf16>
    %216 = vector.shape_cast %215 : vector<1x32x16xbf16> to vector<32x16xbf16>
    %cst_96 = arith.constant dense<0.000000e+00> : vector<128x16xf32>
    %217 = tpu.matmul %214, %216, %cst_96 {dimension_numbers = #tpu.dot_dimension_numbers<[1], [0], [0], [1], [0, 0, 1, 1], [], []>} : vector<128x32xbf16>, vector<32x16xbf16>, vector<128x16xf32> -> vector<128x16xf32>
    %c1_97 = arith.constant 1 : index
    %c0_98 = arith.constant 0 : index
    %c0_99 = arith.constant 0 : index
    %218 = vector.load %arg13[%c1_97, %c0_98, %c0_99] : memref<2x1x16xf32, #tpu.memory_space<vmem>>, vector<1x1x16xf32>
    %219 = vector.shape_cast %218 : vector<1x1x16xf32> to vector<1x16xf32>
    %220 = vector.broadcast %219 : vector<1x16xf32> to vector<128x16xf32>
    %221 = arith.addf %217, %220 : vector<128x16xf32>
    %222 = arith.addf %197, %221 : vector<128x16xf32>
    %c0_100 = arith.constant 0 : index
    %c0_101 = arith.constant 0 : index
    %223 = vector.load %arg14[%c0_100, %c0_101] : memref<1x16xf32, #tpu.memory_space<vmem>>, vector<1x16xf32>
    %c0_102 = arith.constant 0 : index
    %c0_103 = arith.constant 0 : index
    %224 = vector.load %arg15[%c0_102, %c0_103] : memref<1x16xf32, #tpu.memory_space<vmem>>, vector<1x16xf32>
    %225 = vector.broadcast %4 : vector<1x16xf32> to vector<128x16xf32>
    %226 = arith.mulf %222, %225 : vector<128x16xf32>
    %cst_104 = arith.constant dense<0.000000e+00> : vector<128xf32>
    %227 = vector.multi_reduction <add>, %226, %cst_104 [1] : vector<128x16xf32> to vector<128xf32>
    %228 = vector.shape_cast %227 : vector<128xf32> to vector<128x1xf32>
    %cst_105 = arith.constant 0.0714285746 : f32
    %229 = vector.broadcast %cst_105 : f32 to vector<128x1xf32>
    %230 = arith.mulf %228, %229 : vector<128x1xf32>
    %231 = vector.broadcast %230 : vector<128x1xf32> to vector<128x16xf32>
    %232 = arith.subf %222, %231 : vector<128x16xf32>
    %233 = vector.broadcast %4 : vector<1x16xf32> to vector<128x16xf32>
    %234 = arith.mulf %232, %233 : vector<128x16xf32>
    %235 = arith.mulf %234, %234 : vector<128x16xf32>
    %cst_106 = arith.constant dense<0.000000e+00> : vector<128xf32>
    %236 = vector.multi_reduction <add>, %235, %cst_106 [1] : vector<128x16xf32> to vector<128xf32>
    %237 = vector.shape_cast %236 : vector<128xf32> to vector<128x1xf32>
    %cst_107 = arith.constant 0.0714285746 : f32
    %238 = vector.broadcast %cst_107 : f32 to vector<128x1xf32>
    %239 = arith.mulf %237, %238 : vector<128x1xf32>
    %cst_108 = arith.constant 9.99999974E-6 : f32
    %240 = vector.broadcast %cst_108 : f32 to vector<128x1xf32>
    %241 = arith.addf %239, %240 : vector<128x1xf32>
    %242 = math.rsqrt %241 : vector<128x1xf32>
    %243 = vector.broadcast %242 : vector<128x1xf32> to vector<128x16xf32>
    %244 = arith.mulf %234, %243 : vector<128x16xf32>
    %245 = vector.broadcast %223 : vector<1x16xf32> to vector<128x16xf32>
    %246 = arith.mulf %244, %245 : vector<128x16xf32>
    %247 = vector.broadcast %224 : vector<1x16xf32> to vector<128x16xf32>
    %248 = arith.addf %246, %247 : vector<128x16xf32>
    %249 = vector.shape_cast %248 : vector<128x16xf32> to vector<8x16x16xf32>
    %250 = tpu.transpose %249, [0, 2, 1] : vector<8x16x16xf32> -> vector<8x16x16xf32>
    %cst_109 = arith.constant dense<0.000000e+00> : vector<8x16xf32>
    %251 = vector.multi_reduction <add>, %250, %cst_109 [2] : vector<8x16x16xf32> to vector<8x16xf32>
    %cst_110 = arith.constant 6.250000e-02 : f32
    %252 = vector.broadcast %cst_110 : f32 to vector<8x16xf32>
    %253 = arith.mulf %251, %252 : vector<8x16xf32>
    %254 = arith.truncf %253 : vector<8x16xf32> to vector<8x16xbf16>
    %c0_111 = arith.constant 0 : index
    %c0_112 = arith.constant 0 : index
    %255 = vector.load %arg16[%c0_111, %c0_112] : memref<16x128xbf16, #tpu.memory_space<vmem>>, vector<16x128xbf16>
    %cst_113 = arith.constant dense<0.000000e+00> : vector<8x128xf32>
    %256 = tpu.matmul %254, %255, %cst_113 {dimension_numbers = #tpu.dot_dimension_numbers<[1], [0], [0], [1], [0, 0, 1, 1], [], []>} : vector<8x16xbf16>, vector<16x128xbf16>, vector<8x128xf32> -> vector<8x128xf32>
    %c0_114 = arith.constant 0 : index
    %c0_115 = arith.constant 0 : index
    %257 = vector.load %arg17[%c0_114, %c0_115] : memref<1x128xf32, #tpu.memory_space<vmem>>, vector<1x128xf32>
    %258 = vector.broadcast %257 : vector<1x128xf32> to vector<8x128xf32>
    %259 = arith.addf %256, %258 : vector<8x128xf32>
    %c0_116 = arith.constant 0 : index
    %c0_117 = arith.constant 0 : index
    %260 = vector.load %arg18[%c0_116, %c0_117] : memref<8x128xf32, #tpu.memory_space<vmem>>, vector<8x128xf32>
    tpu.vector_store %arg18[%c0_116, %c0_117], %259 {strides = array<i32>} : memref<8x128xf32, #tpu.memory_space<vmem>>, vector<8x128xf32>,
    return
  }
  func.func @transform_0(%arg0: i32) -> (i32, i32) {
    %c0_i32 = arith.constant 0 : i32
    %c0_i32_0 = arith.constant 0 : i32
    return %arg0, %c0_i32 : i32, i32
  }
  func.func @transform_1(%arg0: i32) -> (i32, i32) {
    %c0_i32 = arith.constant 0 : i32
    %c0_i32_0 = arith.constant 0 : i32
    %c0_i32_1 = arith.constant 0 : i32
    return %c0_i32, %c0_i32_0 : i32, i32
  }
  func.func @transform_2(%arg0: i32) -> (i32, i32) {
    %c0_i32 = arith.constant 0 : i32
    %c0_i32_0 = arith.constant 0 : i32
    %c0_i32_1 = arith.constant 0 : i32
    return %c0_i32, %c0_i32_0 : i32, i32
  }
  func.func @transform_3(%arg0: i32) -> (i32, i32) {
    %c0_i32 = arith.constant 0 : i32
    %c0_i32_0 = arith.constant 0 : i32
    %c0_i32_1 = arith.constant 0 : i32
    return %c0_i32, %c0_i32_0 : i32, i32
  }
  func.func @transform_4(%arg0: i32) -> (i32, i32) {
    %c0_i32 = arith.constant 0 : i32
    %c0_i32_0 = arith.constant 0 : i32
    %c0_i32_1 = arith.constant 0 : i32
    return %c0_i32, %c0_i32_0 : i32, i32
  }
  func.func @transform_5(%arg0: i32) -> (i32, i32, i32) {
    %c0_i32 = arith.constant 0 : i32
    %c0_i32_0 = arith.constant 0 : i32
    %c0_i32_1 = arith.constant 0 : i32
    %c0_i32_2 = arith.constant 0 : i32
    return %c0_i32, %c0_i32_0, %c0_i32_1 : i32, i32, i32
  }
  func.func @transform_6(%arg0: i32) -> (i32, i32, i32) {
    %c0_i32 = arith.constant 0 : i32
    %c0_i32_0 = arith.constant 0 : i32
    %c0_i32_1 = arith.constant 0 : i32
    %c0_i32_2 = arith.constant 0 : i32
    return %c0_i32, %c0_i32_0, %c0_i32_1 : i32, i32, i32
  }
  func.func @transform_7(%arg0: i32) -> (i32, i32, i32) {
    %c0_i32 = arith.constant 0 : i32
    %c0_i32_0 = arith.constant 0 : i32
    %c0_i32_1 = arith.constant 0 : i32
    %c0_i32_2 = arith.constant 0 : i32
    return %c0_i32, %c0_i32_0, %c0_i32_1 : i32, i32, i32
  }
  func.func @transform_8(%arg0: i32) -> (i32, i32, i32) {
    %c0_i32 = arith.constant 0 : i32
    %c0_i32_0 = arith.constant 0 : i32
    %c0_i32_1 = arith.constant 0 : i32
    %c0_i32_2 = arith.constant 0 : i32
    return %c0_i32, %c0_i32_0, %c0_i32_1 : i32, i32, i32
  }
  func.func @transform_9(%arg0: i32) -> (i32, i32, i32) {
    %c0_i32 = arith.constant 0 : i32
    %c0_i32_0 = arith.constant 0 : i32
    %c0_i32_1 = arith.constant 0 : i32
    %c0_i32_2 = arith.constant 0 : i32
    return %c0_i32, %c0_i32_0, %c0_i32_1 : i32, i32, i32
  }
  func.func @transform_10(%arg0: i32) -> (i32, i32, i32) {
    %c0_i32 = arith.constant 0 : i32
    %c0_i32_0 = arith.constant 0 : i32
    %c0_i32_1 = arith.constant 0 : i32
    %c0_i32_2 = arith.constant 0 : i32
    return %c0_i32, %c0_i32_0, %c0_i32_1 : i32, i32, i32
  }
  func.func @transform_11(%arg0: i32) -> (i32, i32, i32) {
    %c0_i32 = arith.constant 0 : i32
    %c0_i32_0 = arith.constant 0 : i32
    %c0_i32_1 = arith.constant 0 : i32
    %c0_i32_2 = arith.constant 0 : i32
    return %c0_i32, %c0_i32_0, %c0_i32_1 : i32, i32, i32
  }
  func.func @transform_12(%arg0: i32) -> (i32, i32, i32) {
    %c0_i32 = arith.constant 0 : i32
    %c0_i32_0 = arith.constant 0 : i32
    %c0_i32_1 = arith.constant 0 : i32
    %c0_i32_2 = arith.constant 0 : i32
    return %c0_i32, %c0_i32_0, %c0_i32_1 : i32, i32, i32
  }
  func.func @transform_13(%arg0: i32) -> (i32, i32) {
    %c0_i32 = arith.constant 0 : i32
    %c0_i32_0 = arith.constant 0 : i32
    %c0_i32_1 = arith.constant 0 : i32
    return %c0_i32, %c0_i32_0 : i32, i32
  }
  func.func @transform_14(%arg0: i32) -> (i32, i32) {
    %c0_i32 = arith.constant 0 : i32
    %c0_i32_0 = arith.constant 0 : i32
    %c0_i32_1 = arith.constant 0 : i32
    return %c0_i32, %c0_i32_0 : i32, i32
  }
  func.func @transform_15(%arg0: i32) -> (i32, i32) {
    %c0_i32 = arith.constant 0 : i32
    %c0_i32_0 = arith.constant 0 : i32
    %c0_i32_1 = arith.constant 0 : i32
    return %c0_i32, %c0_i32_0 : i32, i32
  }
  func.func @transform_16(%arg0: i32) -> (i32, i32) {
    %c0_i32 = arith.constant 0 : i32
    %c0_i32_0 = arith.constant 0 : i32
    %c0_i32_1 = arith.constant 0 : i32
    return %c0_i32, %c0_i32_0 : i32, i32
  }
  func.func @transform_17(%arg0: i32) -> (i32, i32) {
    %c0_i32 = arith.constant 0 : i32
    %c0_i32_0 = arith.constant 0 : i32
    return %arg0, %c0_i32 : i32, i32
  }
}

</mosaic_0001>

<bundles_post_ra>
// kernel: tpu_custom_call.1
= control target key start
LH: loop header
LB: loop body
LE: loop exit
PB: predicated region body
PF: predicated region fallthrough
CT: control target
= control target key end

     0   :  { %s8428_s0 = inlined_call_operand.vmem [shape: bf16[256,64], index: 0, kind: input, shape index: {}]   ;;  %s8429_s1 = inlined_call_operand.vmem [shape: bf16[64,16], index: 1, kind: input, shape index: {}]   ;;  %s8430_s2 = inlined_call_operand.vmem [shape: f32[1,16], index: 2, kind: input, shape index: {}]   ;;  %s8431_s3 = inlined_call_operand.vmem [shape: f32[2,16], index: 3, kind: input, shape index: {}]   ;;  %s8432_s4 = inlined_call_operand.vmem [shape: f32[2,16], index: 4, kind: input, shape index: {}]   ;;  %s8433_s5 = inlined_call_operand.vmem [shape: bf16[2,16,32], index: 5, kind: input, shape index: {}]   ;;  %s8434_s6 = inlined_call_operand.vmem [shape: f32[2,1,32], index: 6, kind: input, shape index: {}]   ;;  %s8435_s7 = inlined_call_operand.vmem [shape: bf16[2,32,16], index: 7, kind: input, shape index: {}]   ;;  %s8436_s8 = inlined_call_operand.vmem [shape: f32[2,1,16], index: 8, kind: input, shape index: {}]   ;;  %s8437_s9 = inlined_call_operand.vmem [shape: bf16[2,16,32], index: 9, kind: input, shape index: {}]   ;;  %s8438_s10 = inlined_call_operand.vmem [shape: f32[2,1,32], index: 10, kind: input, shape index: {}]   ;;  %s8439_s11 = inlined_call_operand.vmem [shape: bf16[2,32,16], index: 11, kind: input, shape index: {}]   ;;  %s8440_s12 = inlined_call_operand.vmem [shape: f32[2,1,16], index: 12, kind: input, shape index: {}]   ;;  %s8441_s13 = inlined_call_operand.vmem [shape: f32[1,16], index: 13, kind: input, shape index: {}]   ;;  %s8442_s14 = inlined_call_operand.vmem [shape: f32[1,16], index: 14, kind: input, shape index: {}]   ;;  %s8443_s15 = inlined_call_operand.vmem [shape: bf16[16,128], index: 15, kind: input, shape index: {}]   ;;  %s8444_s16 = inlined_call_operand.vmem [shape: f32[1,128], index: 16, kind: input, shape index: {}]   ;;  %s8445_s17 = inlined_call_operand.hbm [shape: f32[16,128], index: 17, kind: output, shape index: {}]  }
   0x1   :  { %8452 = sst [smem:[#allocation10_spill]] %s8428_s0 }
   0x2   :  { %8453 = sst [smem:[#allocation11_spill]] %s8429_s1 }
   0x3   :  { %8454 = sst [smem:[#allocation12_spill]] %s8430_s2 }
   0x4   :  { %22 = vsyncpa [#allocation3], 0 }
   0x5   :  { %24 = vsyncpa [#allocation3 + $0x1], 0  ;;  %s6380_s24 = smov 0   ;;  %s6382_s25 = smov 0  }
   0x6   :  { %s6384_s26 = smov 0   ;;  %s6386_s27 = smov 0  }
   0x7 LB: > { %8455 = sst [smem:[#allocation5_spill]] %s6273_s24  ;;  %s6401_s28 = sadd.s32 4294967295, %s6285_s27   ;;  %s6285_s27 = sphi %s6386_s27, %s8467_s27   ;;  %s6281_s26 = sphi %s6384_s26, %s8469_s26   ;;  %s6277_s25 = sphi %s6382_s25, %s8471_s25   ;;  %s6273_s24 = sphi %s6380_s24, %s8470_s24  }
   0x8   : > { %8456 = sst [smem:[#allocation6_spill]] %s6281_s26  ;;  %s5341_s29 = sadd.s32 4294967294, %s6285_s27  }
   0x9   : > { %s6405_s0 = sadd.s32 1, %s6285_s27   ;;  %s399_s30 = sadd.s32 1, %s6281_s26 }
   0xa   : > { %8457 = sst [smem:[#allocation7_spill]] %s6405_s0  ;;  %s396_s18 = ssub.s32 %s6285_s27, %s6405_s0 }
   0xb   : > { %p409_p0 = scmp.ne.s32.totalorder %s6281_s26, %s6277_s25  ;;  %p397_p1 = scmp.eq.s32.totalorder %s396_s18, 0 }
   0xc   : > { %p410_p2 = scmp.eq.s32.totalorder %s6401_s28, 1  ;;  %p415_p3 = scmp.ne.s32.totalorder %s6277_s25, %s6273_s24 }
   0xd   : > { %p416_p4 = scmp.eq.s32.totalorder %s5341_s29, 1  ;;  %p5344_p7 = scmp.ge.s32.totalorder %s6285_s27, 1 }
   0xe   : > { %s6416_s19 = scalar_select %p397_p1, %s6281_s26, %s399_s30  }
   0xf   : > { %p6418_p5 = por %p410_p2, %p409_p0  ;;  %p6422_p6 = por %p416_p4, %p415_p3 }
  0x10   : > { %8458 = sst [smem:[#allocation8_spill]] %s6416_s19  ;;  %p491_p8 = scmp.lt.s32.totalorder %s6285_s27, 3 }
  0x11   : > { %s8460_s20 = scalar_select %p6422_p6, 1, 0 }
  0x12   : > { %p492_p9 = pnand %p5344_p7, %p491_p8 }
  0x13   : > { %8461 = sst [smem:[#allocation9_spill]] %s8460_s20  ;;  %s5346_s29 = sshll.u32 (!%p492_p9), %s6401_s28, 4 }
  0x14   : > { %495 = sbr.rel (%p492_p9) target bundleno = 4563 (0x11d3), region = 88  ;;  %s8462_s23 = sld [smem:[#allocation11_spill]] (!%p492_p9) }
  0x15   : > { %p544_p10 = scmp.lt.s32.totalorder (!%p492_p9), %s5346_s29, 31  ;;  %s8463_s22 = sld [smem:[#allocation10_spill]] (!%p492_p9) }
  0x16   : > { %s8464_s2 = sld [smem:[#allocation12_spill]] (!%p492_p9)  ;;  %s540_s20 = sand.u32 (!%p492_p9), 1, %s6277_s25  }
  0x17   : > { %s5480_s30 = sshll.u32 (!%p492_p9), %s6401_s28, 7  ;;  %s5269_s21 = scalar_lea.sflag (!%p492_p9), [#allocation3], %s540_s20 }
  0x18   : > { %s8387_s19 = scalar_lea.hbm (!%p492_p9), %s8445_s17, %s5480_s30  ;;  %s6289_s28 = smov (!%p492_p9), [#allocation2]  }
  0x19   : > { %s8473_s29 = smov (!%p544_p10, %s5346_s29), 31  ;;  %vm650_vm0 = vcmask 523264   ;;  %v550_v12 = vlaneseq  ;;  %v6287_v20 = vmov 0.0   ;;  %vm790_vm2 = vcmask 130048  }
  0x1a   : > { %v5908_v0 = vld [vmem:[%s8462_s23 + $0x18] sm:$0xff]   ;;  %v5909_v1 = vld [vmem:[%s8462_s23 + $0x10] sm:$0xff]   ;;  %v5910_v2 = vld [vmem:[%s8462_s23 + $0x8] sm:$0xff]   ;;  %s5347_s0 = sshll.u32 %s8473_s29, 2  ;;  %vm1566_vm3 = vcmask 261120   ;;  %vm6288_vm4 = vmmov 0  }
  0x1b   : > { %5573 = vmatprep.subr.bf16.mxu0 %v5908_v0  ;;  %s547_s24 = scalar_lea.vmem %s8463_s22, %s5347_s0  ;;  %v5911_v4 = vld [vmem:[%s8462_s23] sm:$0xff]   ;;  %v6453_v13 = vand.u32 127, %v550_v12  ;;  %vm5138_vm5 = vcmask 130112   ;;  %vm5203_vm6 = vcmask 1041409   ;;  %vm5205_vm7 = vcmask 1042434   ;;  %s5345_s29 = sshll.u32 %s540_s20, 3 }
  0x1c   : > { %5574 = vmatpush3.bf16.msra.mxu0 %v5908_v0  ;;  %v5912_v3 = vld [vmem:[%s547_s24] sm:$0xff]   ;;  %v5913_v5 = vld [vmem:[%s547_s24 + $0x8] sm:$0xff]   ;;  %v5914_v6 = vld [vmem:[%s547_s24 + $0x10] sm:$0xff]   ;;  %vm5207_vm8 = vcmask 1043459   ;;  %vm5209_vm9 = vcmask 1044484   ;;  %vm5211_vm10 = vcmask 1045509  }
  0x1d   : > { %5575 = vmatprep.subr.bf16.mxu0 %v5909_v1  ;;  %5581 = vmatprep.mubr.msk.bf16.mxu0 %vm650_vm0, %v5912_v3  ;;  %v5915_v7 = vld [vmem:[%s547_s24 + $0x18] sm:$0xff]   ;;  %v5916_v8 = vld [vmem:[%s547_s24 + $0x20] sm:$0xff]   ;;  %v5917_v9 = vld [vmem:[%s547_s24 + $0x28] sm:$0xff]   ;;  %vm552_vm1 = vcmp.lt.s32.totalorder %v6453_v13, 14  ;;  %vm5213_vm11 = vcmask 1046534   ;;  %vm5215_vm12 = vcmask 1047559  }
  0x1e   : > { %v5918_v10 = vld [vmem:[%s547_s24 + $0x30] sm:$0xff]   ;;  %v5919_v11 = vld [vmem:[%s547_s24 + $0x38] sm:$0xff]   ;;  %v6458_v15 = vld [vmem:[%s8464_s2] ss:$0 sm:$0xff]  ;;  %v6468_v21 = vsel %vm552_vm1, 1.0, %v6287_v20  ;;  %s542_s18 = scalar_lea.vmem [#allocation2], %s5345_s29 }
  0x1f   : > { %s5282_s26 = sshll.u32 %s542_s18, 4  ;;  %s6229_s29 = sshll.u32 %s6289_s28, 4  ;;  %s8389_s26 = int_to_ptr.vmem [resolvable:$true] %s5282_s26  ;;  %s6230_s29 = int_to_ptr.vmem [resolvable:$false] %s6229_s29 }
  0x20   : > { %5576 = vmatpush3.bf16.msra.mxu0 %v5909_v1  ;;  %s6225_s22 = scalar_lea.vmem %s8389_s26, 128  ;;  %s6231_s0 = scalar_lea.vmem %s6230_s29, 256 }
  0x21   : > { %5577 = vmatprep.subr.bf16.mxu0 %v5910_v2  ;;  %p6226_p11 = scmp.ne.s32.totalorder %s8389_s26, %s6225_s22  ;;  %p6232_p0 = scmp.lt.s32.totalorder %s8389_s26, %s6230_s29 }
  0x22   : > { %p6233_p1 = scmp.lt.s32.totalorder %s6231_s0, %s6225_s22 }
  0x23   : > { %p6227_p12 = pnand %p6226_p11, %p6418_p5 }
  0x24   : > { %5578 = vmatpush3.bf16.msra.mxu0 %v5910_v2  ;;  %p6234_p2 = por %p6233_p1, %p6232_p0 }
  0x25   : > { %5579 = vmatprep.subr.bf16.mxu0 %v5911_v4  ;;  %p6228_p13 = pneg %p6227_p12 }
  0x27   : > { %p6235_p3 = pnand %p6234_p2, %p6228_p13 }
  0x28   : > { %5580 = vmatpush3.bf16.msra.mxu0 %v5911_v4 }
  0x2b   : > { %5582 = vmatmul.mubr.msk.bf16.vlgmr.msra.gmra.mxu0 %vm650_vm0, %v5913_v5 }
  0x2c   : > { %5585 = vmatprep.mubr.msk.bf16.mxu0 %vm650_vm0, %v5914_v6 }
  0x33   : > { %5586 = vmatmul.mubr.msk.bf16.gmra.mxu0 %vm650_vm0, %v5915_v7 }
  0x34   : > { %5589 = vmatprep.mubr.msk.bf16.mxu0 %vm650_vm0, %v5916_v8 }
  0x3b   : > { %5590 = vmatmul.mubr.msk.bf16.gmra.mxu0 %vm650_vm0, %v5917_v9 }
  0x3c   : > { %5593 = vmatprep.mubr.msk.bf16.mxu0 %vm650_vm0, %v5918_v10 }
  0x43   : > { %5594 = vmatmul.mubr.msk.bf16.gmra.mxu0 %vm650_vm0, %v5919_v11 }
  0xeb   : > { %v5583_v14 = vpop.f32.mrf.mxu0 }
  0xec   : > { %v6462_v17 = vadd.f32 %v5583_v14, %v6458_v15 }
  0xed   : > { %v709_v16 = vpop.f32.mrf.mxu0 }
  0xee   : > { %v6465_v18 = vadd.f32 %v6458_v15, %v709_v16  ;;  %v776_v27 = vmul.f32 %v6468_v21, %v6462_v17 }
  0xef   : > { %v5584_v19 = vpop.f32.mrf.mxu0 }
  0xf0   : > { %v774_v22 = vmul.f32 %v6468_v21, %v6465_v18  ;;  %v6473_v23 = vadd.f32 %v5584_v19, %v6458_v15  ;;  %v797_v35 = vsel %vm790_vm2, %v776_v27, 0.0 }
  0xf1   : > { %v712_v24 = vpop.f32.mrf.mxu0 }
  0xf2   : > { %v6476_v25 = vadd.f32 %v6458_v15, %v712_v24  ;;  %v791_v26 = vsel %vm790_vm2, %v774_v22, 0.0  ;;  %v777_v31 = vmul.f32 %v6468_v21, %v6473_v23 }
  0xf3   : > { %v5587_v28 = vpop.f32.mrf.mxu0  ;;  %792 = vadd.xlane.f32.xlu0 %v791_v26 }
  0xf4   : > { %v775_v29 = vmul.f32 %v6468_v21, %v6476_v25  ;;  %v6486_v32 = vadd.f32 %v5587_v28, %v6458_v15  ;;  %v800_v39 = vsel %vm790_vm2, %v777_v31, 0.0 }
  0xf5   : > { %v725_v30 = vpop.f32.mrf.mxu0 }
  0xf6   : > { %v6489_v33 = vadd.f32 %v6458_v15, %v725_v30  ;;  %v794_v34 = vsel %vm790_vm2, %v775_v29, 0.0  ;;  %v780_v43 = vmul.f32 %v6468_v21, %v6486_v32 }
  0xf7   : > { %v5588_v36 = vpop.f32.mrf.mxu0  ;;  %795 = vadd.xlane.f32.xlu1 %v794_v34  ;;  %798 = vadd.xlane.f32.xlu0 %v797_v35 }
  0xf8   : > { %v778_v37 = vmul.f32 %v6468_v21, %v6489_v33  ;;  %v6497_v40 = vadd.f32 %v5588_v36, %v6458_v15  ;;  %v809_v49 = vsel %vm790_vm2, %v780_v43, 0.0 }
  0xf9   : > { %v728_v38 = vpop.f32.mrf.mxu0 }
  0xfa   : > { %v6500_v41 = vadd.f32 %v6458_v15, %v728_v38  ;;  %v803_v42 = vsel %vm790_vm2, %v778_v37, 0.0  ;;  %v781_v51 = vmul.f32 %v6468_v21, %v6497_v40 }
  0xfb   : > { %v5591_v44 = vpop.f32.mrf.mxu0  ;;  %801 = vadd.xlane.f32.xlu1 %v800_v39  ;;  %804 = vadd.xlane.f32.xlu0 %v803_v42 }
  0xfc   : > { %v6506_v45 = vadd.f32 %v5591_v44, %v6458_v15  ;;  %v779_v46 = vmul.f32 %v6468_v21, %v6500_v41  ;;  %v812_v58 = vsel %vm790_vm2, %v781_v51, 0.0 }
  0xfd   : > { %v741_v47 = vpop.f32.mrf.mxu0 }
  0xfe   : > { %v6511_v48 = vadd.f32 %v6458_v15, %v741_v47  ;;  %v806_v50 = vsel %vm790_vm2, %v779_v46, 0.0  ;;  %v784_v54 = vmul.f32 %v6468_v21, %v6506_v45 }
  0xff   : > { %v5592_v52 = vpop.f32.mrf.mxu0  ;;  %810 = vadd.xlane.f32.xlu1 %v809_v49  ;;  %807 = vadd.xlane.f32.xlu0 %v806_v50 }
 0x100   : > { %v782_v53 = vmul.f32 %v6468_v21, %v6511_v48  ;;  %v6522_v56 = vadd.f32 %v5592_v52, %v6458_v15  ;;  %v821_v62 = vsel %vm790_vm2, %v784_v54, 0.0 }
 0x101   : > { %v744_v55 = vpop.f32.mrf.mxu0 }
 0x102   : > { %v6525_v57 = vadd.f32 %v6458_v15, %v744_v55  ;;  %v815_v59 = vsel %vm790_vm2, %v782_v53, 0.0  ;;  %v785_v3 = vmul.f32 %v6468_v21, %v6522_v56 }
 0x103   : > { %v5595_v60 = vpop.f32.mrf.mxu0  ;;  %813 = vadd.xlane.f32.xlu1 %v812_v58  ;;  %816 = vadd.xlane.f32.xlu0 %v815_v59 }
 0x104   : > { %v6530_v61 = vadd.f32 %v5595_v60, %v6458_v15  ;;  %v783_v63 = vmul.f32 %v6468_v21, %v6525_v57  ;;  %v824_v10 = vsel %vm790_vm2, %v785_v3, 0.0 }
 0x105   : > { %v757_v0 = vpop.f32.mrf.mxu0 }
 0x106   : > { %v6536_v1 = vadd.f32 %v6458_v15, %v757_v0  ;;  %v818_v2 = vsel %vm790_vm2, %v783_v63, 0.0  ;;  %v788_v6 = vmul.f32 %v6468_v21, %v6530_v61 }
 0x107   : > { %v5596_v4 = vpop.f32.mrf.mxu0  ;;  %822 = vadd.xlane.f32.xlu1 %v821_v62  ;;  %819 = vadd.xlane.f32.xlu0 %v818_v2 }
 0x108   : > { %v786_v5 = vmul.f32 %v6468_v21, %v6536_v1  ;;  %v6546_v8 = vadd.f32 %v5596_v4, %v6458_v15  ;;  %v833_v14 = vsel %vm790_vm2, %v788_v6, 0.0 }
 0x109   : > { %v760_v7 = vpop.f32.mrf.mxu0 }
 0x10a   : > { %v6549_v9 = vadd.f32 %v6458_v15, %v760_v7  ;;  %v827_v11 = vsel %vm790_vm2, %v786_v5, 0.0  ;;  %v789_v22 = vmul.f32 %v6468_v21, %v6546_v8 }
 0x10b   : > { %825 = vadd.xlane.f32.xlu1 %v824_v10  ;;  %828 = vadd.xlane.f32.xlu0 %v827_v11 }
 0x10c   : > { %v787_v16 = vmul.f32 %v6468_v21, %v6549_v9  ;;  %v836_v15 = vsel %vm790_vm2, %v789_v22, 0.0 }
 0x10e   : > { %v830_v19 = vsel %vm790_vm2, %v787_v16, 0.0 }
 0x10f   : > { %834 = vadd.xlane.f32.xlu1 %v833_v14  ;;  %831 = vadd.xlane.f32.xlu0 %v830_v19 }
 0x113   : > { %837 = vadd.xlane.f32.xlu1 %v836_v15 }
 0x17c   : > { %v793_v24 = vpop.xlane.xlu0 %792 }
 0x17d   : > { %v839_v26 = vmul.f32 0.071428575, %v793_v24 }
 0x17f   : > { %v855_v27 = vsub.f32 %v6465_v18, %v839_v26 }
 0x180   : > { %v796_v28 = vpop.xlane.xlu1 %795  ;;  %v799_v29 = vpop.xlane.xlu0 %798 }
 0x181   : > { %v840_v30 = vmul.f32 0.071428575, %v796_v28  ;;  %v841_v31 = vmul.f32 0.071428575, %v799_v29  ;;  %v6562_v34 = vmul.f32 %v6468_v21, %v855_v27 }
 0x183   : > { %v856_v35 = vsub.f32 %v6476_v25, %v840_v30  ;;  %v857_v36 = vsub.f32 %v6462_v17, %v841_v31  ;;  %v887_v37 = vmul.f32 %v6562_v34, %v6562_v34 }
 0x184   : > { %v802_v38 = vpop.xlane.xlu1 %801  ;;  %v805_v39 = vpop.xlane.xlu0 %804 }
 0x185   : > { %v842_v42 = vmul.f32 0.071428575, %v802_v38  ;;  %v843_v43 = vmul.f32 0.071428575, %v805_v39  ;;  %v903_v18 = vsel %vm790_vm2, %v887_v37, 0.0  ;;  %v6570_v44 = vmul.f32 %v6468_v21, %v856_v35 }
 0x186   : > { %904 = vadd.xlane.f32.xlu0 %v903_v18  ;;  %v6573_v46 = vmul.f32 %v6468_v21, %v857_v36 }
 0x187   : > { %v858_v25 = vsub.f32 %v6473_v23, %v842_v42  ;;  %v859_v17 = vsub.f32 %v6489_v33, %v843_v43  ;;  %v888_v47 = vmul.f32 %v6570_v44, %v6570_v44 }
 0x188   : > { %v811_v49 = vpop.xlane.xlu1 %810  ;;  %v808_v50 = vpop.xlane.xlu0 %807  ;;  %v889_v51 = vmul.f32 %v6573_v46, %v6573_v46 }
 0x189   : > { %v845_v52 = vmul.f32 0.071428575, %v811_v49  ;;  %v844_v53 = vmul.f32 0.071428575, %v808_v50  ;;  %v906_v54 = vsel %vm790_vm2, %v888_v47, 0.0  ;;  %v6583_v55 = vmul.f32 %v6468_v21, %v858_v25 }
 0x18a   : > { %907 = vadd.xlane.f32.xlu0 %v906_v54  ;;  %v909_v23 = vsel %vm790_vm2, %v889_v51, 0.0  ;;  %v6587_v33 = vmul.f32 %v6468_v21, %v859_v17 }
 0x18b   : > { %v861_v58 = vsub.f32 %v6486_v32, %v845_v52  ;;  %v860_v59 = vsub.f32 %v6500_v41, %v844_v53  ;;  %910 = vadd.xlane.f32.xlu1 %v909_v23  ;;  %v890_v60 = vmul.f32 %v6583_v55, %v6583_v55 }
 0x18c   : > { %v814_v62 = vpop.xlane.xlu1 %813  ;;  %v817_v63 = vpop.xlane.xlu0 %816  ;;  %v891_v0 = vmul.f32 %v6587_v33, %v6587_v33 }
 0x18d   : > { %v846_v2 = vmul.f32 0.071428575, %v814_v62  ;;  %v847_v3 = vmul.f32 0.071428575, %v817_v63  ;;  %v912_v4 = vsel %vm790_vm2, %v890_v60, 0.0  ;;  %v6597_v5 = vmul.f32 %v6468_v21, %v861_v58 }
 0x18e   : > { %v915_v32 = vsel %vm790_vm2, %v891_v0, 0.0  ;;  %v6601_v41 = vmul.f32 %v6468_v21, %v860_v59 }
 0x18f   : > { %v862_v6 = vsub.f32 %v6497_v40, %v846_v2  ;;  %v863_v7 = vsub.f32 %v6511_v48, %v847_v3  ;;  %913 = vadd.xlane.f32.xlu1 %v912_v4  ;;  %916 = vadd.xlane.f32.xlu0 %v915_v32  ;;  %v893_v10 = vmul.f32 %v6597_v5, %v6597_v5 }
 0x190   : > { %v823_v11 = vpop.xlane.xlu1 %822  ;;  %v820_v14 = vpop.xlane.xlu0 %819  ;;  %v892_v16 = vmul.f32 %v6601_v41, %v6601_v41 }
 0x191   : > { %v849_v19 = vmul.f32 0.071428575, %v823_v11  ;;  %v848_v22 = vmul.f32 0.071428575, %v820_v14  ;;  %v921_v15 = vsel %vm790_vm2, %v893_v10, 0.0  ;;  %v6611_v24 = vmul.f32 %v6468_v21, %v862_v6 }
 0x192   : > { %v918_v40 = vsel %vm790_vm2, %v892_v16, 0.0  ;;  %v6615_v48 = vmul.f32 %v6468_v21, %v863_v7 }
 0x193   : > { %v865_v26 = vsub.f32 %v6506_v45, %v849_v19  ;;  %v864_v27 = vsub.f32 %v6525_v57, %v848_v22  ;;  %922 = vadd.xlane.f32.xlu1 %v921_v15  ;;  %919 = vadd.xlane.f32.xlu0 %v918_v40  ;;  %v894_v28 = vmul.f32 %v6611_v24, %v6611_v24 }
 0x194   : > { %v826_v29 = vpop.xlane.xlu1 %825  ;;  %v829_v30 = vpop.xlane.xlu0 %828  ;;  %v895_v31 = vmul.f32 %v6615_v48, %v6615_v48 }
 0x195   : > { %v850_v35 = vmul.f32 0.071428575, %v826_v29  ;;  %v851_v36 = vmul.f32 0.071428575, %v829_v30  ;;  %v924_v37 = vsel %vm790_vm2, %v894_v28, 0.0  ;;  %v6625_v38 = vmul.f32 %v6468_v21, %v865_v26 }
 0x196   : > { %v927_v45 = vsel %vm790_vm2, %v895_v31, 0.0  ;;  %v6629_v57 = vmul.f32 %v6468_v21, %v864_v27 }
 0x197   : > { %v866_v39 = vsub.f32 %v6522_v56, %v850_v35  ;;  %v867_v42 = vsub.f32 %v6536_v1, %v851_v36  ;;  %925 = vadd.xlane.f32.xlu1 %v924_v37  ;;  %928 = vadd.xlane.f32.xlu0 %v927_v45  ;;  %v897_v43 = vmul.f32 %v6625_v38, %v6625_v38 }
 0x198   : > { %v835_v18 = vpop.xlane.xlu1 %834  ;;  %v832_v25 = vpop.xlane.xlu0 %831  ;;  %v896_v17 = vmul.f32 %v6629_v57, %v6629_v57 }
 0x199   : > { %v853_v47 = vmul.f32 0.071428575, %v835_v18  ;;  %v852_v49 = vmul.f32 0.071428575, %v832_v25  ;;  %v933_v50 = vsel %vm790_vm2, %v897_v43, 0.0  ;;  %v6639_v51 = vmul.f32 %v6468_v21, %v866_v39 }
 0x19a   : > { %v930_v56 = vsel %vm790_vm2, %v896_v17, 0.0  ;;  %v6643_v1 = vmul.f32 %v6468_v21, %v867_v42 }
 0x19b   : > { %v869_v52 = vsub.f32 %v6530_v61, %v853_v47  ;;  %v868_v53 = vsub.f32 %v6549_v9, %v852_v49  ;;  %934 = vadd.xlane.f32.xlu1 %v933_v50  ;;  %931 = vadd.xlane.f32.xlu0 %v930_v56  ;;  %v898_v54 = vmul.f32 %v6639_v51, %v6639_v51 }
 0x19c   : > { %v838_v23 = vpop.xlane.xlu1 %837  ;;  %v899_v58 = vmul.f32 %v6643_v1, %v6643_v1 }
 0x19d   : > { %v854_v59 = vmul.f32 0.071428575, %v838_v23  ;;  %v936_v60 = vsel %vm790_vm2, %v898_v54, 0.0  ;;  %v6653_v62 = vmul.f32 %v6468_v21, %v869_v52  ;;  %v6656_v63 = vmul.f32 %v6468_v21, %v868_v53  ;;  %v6676_v52 = vld [vmem:[%s8431_s3] ss:$0 sm:$0xff] }
 0x19e   : > { %v939_v61 = vsel %vm790_vm2, %v899_v58, 0.0 }
 0x19f   : > { %v870_v9 = vsub.f32 %v6546_v8, %v854_v59  ;;  %937 = vadd.xlane.f32.xlu1 %v936_v60  ;;  %940 = vadd.xlane.f32.xlu0 %v939_v61  ;;  %v901_v0 = vmul.f32 %v6653_v62, %v6653_v62  ;;  %v900_v2 = vmul.f32 %v6656_v63, %v6656_v63 }
 0x1a1   : > { %v945_v3 = vsel %vm790_vm2, %v901_v0, 0.0  ;;  %v942_v4 = vsel %vm790_vm2, %v900_v2, 0.0  ;;  %v6667_v32 = vmul.f32 %v6468_v21, %v870_v9 }
 0x1a3   : > { %946 = vadd.xlane.f32.xlu1 %v945_v3  ;;  %943 = vadd.xlane.f32.xlu0 %v942_v4  ;;  %v902_v8 = vmul.f32 %v6667_v32, %v6667_v32 }
 0x1a5   : > { %v948_v6 = vsel %vm790_vm2, %v902_v8, 0.0 }
 0x1a7   : > { %949 = vadd.xlane.f32.xlu1 %v948_v6 }
 0x20f   : > { %v905_v7 = vpop.xlane.xlu0 %904 }
 0x210   : > { %v951_v10 = vmul.f32 0.071428575, %v905_v7 }
 0x212   : > { %v967_v11 = vadd.f32 1e-05, %v951_v10 }
 0x213   : > { %v908_v14 = vpop.xlane.xlu0 %907 }
 0x214   : > { %5933 = vrsqrt.f32 %v967_v11  ;;  %v911_v16 = vpop.xlane.xlu1 %910  ;;  %v952_v19 = vmul.f32 0.071428575, %v908_v14 }
 0x215   : > { %v953_v22 = vmul.f32 0.071428575, %v911_v16 }
 0x216   : > { %v968_v15 = vadd.f32 1e-05, %v952_v19 }
 0x217   : > { %v969_v40 = vadd.f32 1e-05, %v953_v22 }
 0x218   : > { %5935 = vrsqrt.f32 %v968_v15  ;;  %v914_v26 = vpop.xlane.xlu1 %913  ;;  %v917_v27 = vpop.xlane.xlu0 %916 }
 0x219   : > { %5937 = vrsqrt.f32 %v969_v40  ;;  %v954_v28 = vmul.f32 0.071428575, %v914_v26  ;;  %v955_v29 = vmul.f32 0.071428575, %v917_v27 }
 0x21b   : > { %v970_v30 = vadd.f32 1e-05, %v954_v28  ;;  %v971_v31 = vadd.f32 1e-05, %v955_v29 }
 0x21c   : > { %v923_v35 = vpop.xlane.xlu1 %922  ;;  %v920_v36 = vpop.xlane.xlu0 %919 }
 0x21d   : > { %5939 = vrsqrt.f32 %v970_v30  ;;  %v957_v37 = vmul.f32 0.071428575, %v923_v35  ;;  %v956_v45 = vmul.f32 0.071428575, %v920_v36 }
 0x21e   : > { %5941 = vrsqrt.f32 %v971_v31 }
 0x21f   : > { %v973_v39 = vadd.f32 1e-05, %v957_v37  ;;  %v972_v42 = vadd.f32 1e-05, %v956_v45 }
 0x220   : > { %v926_v43 = vpop.xlane.xlu1 %925  ;;  %v929_v18 = vpop.xlane.xlu0 %928 }
 0x221   : > { %v5934_v25 = vpop.eup %5933  ;;  %5943 = vrsqrt.f32 %v973_v39  ;;  %v958_v17 = vmul.f32 0.071428575, %v926_v43  ;;  %v959_v47 = vmul.f32 0.071428575, %v929_v18 }
 0x222   : > { %5945 = vrsqrt.f32 %v972_v42  ;;  %v999_v49 = vmul.f32 %v5934_v25, %v6562_v34  ;;  %v6682_v34 = vld [vmem:[%s8432_s4] ss:$0 sm:$0xff] }
 0x223   : > { %v974_v50 = vadd.f32 1e-05, %v958_v17  ;;  %v975_v56 = vadd.f32 1e-05, %v959_v47  ;;  %v5920_v25 = vld [vmem:[%s8433_s5] sm:$0xff]  }
 0x224   : > { %v935_v53 = vpop.xlane.xlu1 %934  ;;  %v932_v54 = vpop.xlane.xlu0 %931  ;;  %v1019_v61 = vmul.f32 %v6676_v52, %v999_v49  ;;  %5597 = vmatprep.subr.bf16.mxu1 %v5920_v25 }
 0x225   : > { %v5936_v23 = vpop.eup %5935  ;;  %5947 = vrsqrt.f32 %v974_v50  ;;  %v961_v58 = vmul.f32 0.071428575, %v935_v53  ;;  %v960_v59 = vmul.f32 0.071428575, %v932_v54  ;;  %5598 = vmatpush3.bf16.msra.mxu1 %v5920_v25 }
 0x226   : > { %v5938_v60 = vpop.eup %5937  ;;  %5949 = vrsqrt.f32 %v975_v56  ;;  %v1000_v8 = vmul.f32 %v5936_v23, %v6570_v44  ;;  %v6688_v14 = vadd.f32 %v6682_v34, %v1019_v61 }
 0x227   : > { %v977_v9 = vadd.f32 1e-05, %v961_v58  ;;  %v976_v0 = vadd.f32 1e-05, %v960_v59  ;;  %v1001_v2 = vmul.f32 %v5938_v60, %v6573_v46 }
 0x228   : > { %v938_v3 = vpop.xlane.xlu1 %937  ;;  %v941_v4 = vpop.xlane.xlu0 %940  ;;  %v1020_v26 = vmul.f32 %v6676_v52, %v1000_v8 }
 0x229   : > { %5951 = vrsqrt.f32 %v977_v9  ;;  %v962_v6 = vmul.f32 0.071428575, %v938_v3  ;;  %v963_v7 = vmul.f32 0.071428575, %v941_v4  ;;  %v1021_v10 = vmul.f32 %v6676_v52, %v1001_v2 }
 0x22a   : > { %v5940_v11 = vpop.eup %5939  ;;  %5953 = vrsqrt.f32 %v976_v0 }
 0x22b   : > { %v5942_v16 = vpop.eup %5941  ;;  %v978_v19 = vadd.f32 1e-05, %v962_v6  ;;  %v979_v22 = vadd.f32 1e-05, %v963_v7  ;;  %v6691_v15 = vadd.f32 %v6682_v34, %v1021_v10  ;;  %v1002_v46 = vmul.f32 %v5940_v11, %v6583_v55 }
 0x22c   : > { %v947_v40 = vpop.xlane.xlu1 %946  ;;  %v944_v44 = vpop.xlane.xlu0 %943  ;;  %v1003_v27 = vmul.f32 %v5942_v16, %v6587_v33  ;;  %v6702_v33 = vadd.f32 %v6682_v34, %v1020_v26 }
 0x22d   : > { %5955 = vrsqrt.f32 %v978_v19  ;;  %v965_v28 = vmul.f32 0.071428575, %v947_v40  ;;  %v964_v29 = vmul.f32 0.071428575, %v944_v44  ;;  %v5796_v30 = vpack.i.bf16 %v6691_v15, %v6688_v14 }
 0x22e   : > { %v5944_v31 = vpop.eup %5943  ;;  %5957 = vrsqrt.f32 %v979_v22  ;;  %v1022_v35 = vmul.f32 %v6676_v52, %v1002_v46  ;;  %v1023_v36 = vmul.f32 %v6676_v52, %v1003_v27 }
 0x22f   : > { %v5946_v37 = vpop.eup %5945  ;;  %v981_v55 = vadd.f32 1e-05, %v965_v28  ;;  %v980_v45 = vadd.f32 1e-05, %v964_v29  ;;  %5797 = vxpose.xlu0.b32.start [1/2] (short) (narrow) %v5796_v30, 16  ;;  %v1005_v39 = vmul.f32 %v5944_v31, %v6597_v5 }
 0x230   : > { %v950_v42 = vpop.xlane.xlu1 %949  ;;  %v6705_v43 = vadd.f32 %v6682_v34, %v1022_v35  ;;  %v1004_v18 = vmul.f32 %v5946_v37, %v6601_v41  ;;  %v6715_v50 = vadd.f32 %v6682_v34, %v1023_v36 }
 0x231   : > { %5959 = vrsqrt.f32 %v981_v55  ;;  %v966_v17 = vmul.f32 0.071428575, %v950_v42  ;;  %v1025_v47 = vmul.f32 %v6676_v52, %v1005_v39 }
 0x232   : > { %v5948_v49 = vpop.eup %5947  ;;  %5961 = vrsqrt.f32 %v980_v45  ;;  %v5798_v5 = vpack.i.bf16 %v6705_v43, %v6702_v33  ;;  %v1024_v23 = vmul.f32 %v6676_v52, %v1004_v18 }
 0x233   : > { %v5950_v56 = vpop.eup %5949  ;;  %v982_v53 = vadd.f32 1e-05, %v966_v17  ;;  %v6718_v41 = vadd.f32 %v6682_v34, %v1025_v47  ;;  %v1006_v54 = vmul.f32 %v5948_v49, %v6611_v24 }
 0x234   : > { %5799 = vxpose.xlu0.b32.end [2/2] (short) (narrow) %v5798_v5, 16  ;;  %v1007_v58 = vmul.f32 %v5950_v56, %v6615_v48  ;;  %v6727_v0 = vadd.f32 %v6682_v34, %v1024_v23 }
 0x235   : > { %5963 = vrsqrt.f32 %v982_v53  ;;  %v5810_v59 = vpack.i.bf16 %v6718_v41, %v6715_v50  ;;  %v1026_v60 = vmul.f32 %v6676_v52, %v1006_v54 }
 0x236   : > { %v5952_v61 = vpop.eup %5951  ;;  %v1027_v3 = vmul.f32 %v6676_v52, %v1007_v58 }
 0x237   : > { %v5954_v9 = vpop.eup %5953  ;;  %5811 = vxpose.xlu1.b32.start [1/2] (short) (narrow) %v5810_v59, 16  ;;  %v6730_v24 = vadd.f32 %v6682_v34, %v1026_v60  ;;  %v1009_v2 = vmul.f32 %v5952_v61, %v6625_v38 }
 0x238   : > { %v1008_v48 = vmul.f32 %v5954_v9, %v6629_v57  ;;  %v6739_v10 = vadd.f32 %v6682_v34, %v1027_v3 }
 0x239   : > { %v5812_v4 = vpack.i.bf16 %v6730_v24, %v6727_v0  ;;  %v1029_v8 = vmul.f32 %v6676_v52, %v1009_v2 }
 0x23a   : > { %v5956_v6 = vpop.eup %5955  ;;  %v1028_v16 = vmul.f32 %v6676_v52, %v1008_v48 }
 0x23b   : > { %v5958_v7 = vpop.eup %5957  ;;  %5813 = vxpose.xlu1.b32.end [2/2] (short) (narrow) %v5812_v4, 16  ;;  %v6742_v11 = vadd.f32 %v6682_v34, %v1029_v8  ;;  %v1010_v38 = vmul.f32 %v5956_v6, %v6639_v51 }
 0x23c   : > { %v1011_v57 = vmul.f32 %v5958_v7, %v6643_v1  ;;  %v6751_v44 = vadd.f32 %v6682_v34, %v1028_v16 }
 0x23d   : > { %v5824_v19 = vpack.i.bf16 %v6742_v11, %v6739_v10  ;;  %v1030_v22 = vmul.f32 %v6676_v52, %v1010_v38 }
 0x23e   : > { %v5960_v46 = vpop.eup %5959  ;;  %v1031_v27 = vmul.f32 %v6676_v52, %v1011_v57 }
 0x23f   : > { %v5962_v40 = vpop.eup %5961  ;;  %5825 = vxpose.xlu0.b32.start [1/2] (short) (narrow) %v5824_v19, 16  ;;  %v6754_v26 = vadd.f32 %v6682_v34, %v1030_v22  ;;  %v1013_v51 = vmul.f32 %v5960_v46, %v6653_v62 }
 0x240   : > { %v1012_v1 = vmul.f32 %v5962_v40, %v6656_v63  ;;  %v6763_v31 = vadd.f32 %v6682_v34, %v1031_v27  ;;  %v6798_v27 = vld [vmem:[%s8434_s6] ss:$0 sm:$0xff] }
 0x241   : > { %v5826_v28 = vpack.i.bf16 %v6754_v26, %v6751_v44  ;;  %v1033_v29 = vmul.f32 %v6676_v52, %v1013_v51  ;;  %v5922_v51 = vld [vmem:[%s8435_s7] sm:$0xff]  }
 0x242   : > { %v5964_v30 = vpop.eup %5963  ;;  %v1032_v62 = vmul.f32 %v6676_v52, %v1012_v1 }
 0x243   : > { %5827 = vxpose.xlu0.b32.end [2/2] (short) (narrow) %v5826_v28, 16  ;;  %v6766_v35 = vadd.f32 %v6682_v34, %v1033_v29  ;;  %v1014_v36 = vmul.f32 %v5964_v30, %v6667_v32  ;;  %v5921_v32 = vld [vmem:[%s8435_s7 + $0x8] sm:$0xff]  }
 0x244   : > { %v6774_v55 = vadd.f32 %v6682_v34, %v1032_v62  ;;  %5615 = vmatprep.subr.bf16.mxu1 %v5921_v32 }
 0x245   : > { %v5838_v63 = vpack.i.bf16 %v6766_v35, %v6763_v31  ;;  %v1034_v37 = vmul.f32 %v6676_v52, %v1014_v36 }
 0x247   : > { %5839 = vxpose.xlu1.b32.start [1/2] (short) (narrow) %v5838_v63, 16  ;;  %v6777_v45 = vadd.f32 %v6682_v34, %v1034_v37 }
 0x249   : > { %v5840_v39 = vpack.i.bf16 %v6777_v45, %v6774_v55 }
 0x24b   : > { %5841 = vxpose.xlu1.b32.end [2/2] (short) (narrow) %v5840_v39, 16 }
 0x2ac   : > { %v5800_v42 = vpop.trf.xlu0 }
 0x2ad   : > { %v5804_v18 = vunpack.i.h.bf16 %v5800_v42  ;;  %v5801_v52 = vunpack.i.l.bf16 %v5800_v42 }
 0x2b0   : > { %v5805_v25 = vpop.trf.xlu0 }
 0x2b1   : > { %v5809_v17 = vunpack.i.h.bf16 %v5805_v25  ;;  %v5806_v47 = vunpack.i.l.bf16 %v5805_v25 }
 0x2b3   : > { %v5814_v49 = vpop.trf.xlu1  ;;  %v1311_v5 = vpack.c.bf16 %v5806_v47, %v5801_v52  ;;  %v1312_v56 = vpack.c.bf16 %v5809_v17, %v5804_v18 }
 0x2b4   : > { %v5818_v34 = vunpack.i.h.bf16 %v5814_v49  ;;  %v5815_v53 = vunpack.i.l.bf16 %v5814_v49 }
 0x2b5   : > { %5599 = vmatprep.mubr.msk.bf16.mxu1 %vm790_vm2, %v1311_v5 }
 0x2b6   : > { %5600 = vmatmul.mubr.msk.bf16.vlgmr.msra.gmra.mxu1 %vm790_vm2, %v1312_v56 }
 0x2b7   : > { %v5819_v54 = vpop.trf.xlu1  ;;  %5616 = vmatpush3.bf16.msra.mxu1 %v5921_v32 }
 0x2b8   : > { %v5823_v23 = vunpack.i.h.bf16 %v5819_v54  ;;  %v5820_v58 = vunpack.i.l.bf16 %v5819_v54  ;;  %5617 = vmatprep.subr.bf16.mxu1 %v5922_v51 }
 0x2ba   : > { %v1313_v59 = vpack.c.bf16 %v5820_v58, %v5815_v53  ;;  %v1314_v60 = vpack.c.bf16 %v5823_v23, %v5818_v34 }
 0x2bb   : > { %v5828_v61 = vpop.trf.xlu0  ;;  %5618 = vmatpush3.bf16.msra.mxu1 %v5922_v51 }
 0x2bc   : > { %5603 = vmatprep.mubr.msk.bf16.mxu1 %vm790_vm2, %v1313_v59  ;;  %v5832_v9 = vunpack.i.h.bf16 %v5828_v61  ;;  %v5829_v2 = vunpack.i.l.bf16 %v5828_v61 }
 0x2be   : > { %5604 = vmatmul.mubr.msk.bf16.gmra.mxu1 %vm790_vm2, %v1314_v60 }
 0x2bf   : > { %v5833_v3 = vpop.trf.xlu0 }
 0x2c0   : > { %v5837_v48 = vunpack.i.h.bf16 %v5833_v3  ;;  %v5834_v4 = vunpack.i.l.bf16 %v5833_v3 }
 0x2c2   : > { %v1315_v8 = vpack.c.bf16 %v5834_v4, %v5829_v2  ;;  %v1316_v6 = vpack.c.bf16 %v5837_v48, %v5832_v9 }
 0x2c3   : > { %v5842_v7 = vpop.trf.xlu1 }
 0x2c4   : > { %5607 = vmatprep.mubr.msk.bf16.mxu1 %vm790_vm2, %v1315_v8  ;;  %v5846_v38 = vunpack.i.h.bf16 %v5842_v7  ;;  %v5843_v16 = vunpack.i.l.bf16 %v5842_v7 }
 0x2c6   : > { %5608 = vmatmul.mubr.msk.bf16.gmra.mxu1 %vm790_vm2, %v1316_v6 }
 0x2c7   : > { %v5847_v57 = vpop.trf.xlu1 }
 0x2c8   : > { %v5851_v19 = vunpack.i.h.bf16 %v5847_v57  ;;  %v5848_v22 = vunpack.i.l.bf16 %v5847_v57 }
 0x2ca   : > { %v1317_v46 = vpack.c.bf16 %v5848_v22, %v5843_v16  ;;  %v1318_v40 = vpack.c.bf16 %v5851_v19, %v5846_v38 }
 0x2cc   : > { %5611 = vmatprep.mubr.msk.bf16.mxu1 %vm790_vm2, %v1317_v46 }
 0x2ce   : > { %5612 = vmatmul.mubr.msk.bf16.gmra.mxu1 %vm790_vm2, %v1318_v40 }
 0x376   : > { %v5601_v1 = vpop.f32.mrf.mxu1 }
 0x377   : > { %v1401_v28 = vadd.f32 %v5601_v1, %v6798_v27 }
 0x378   : > { %v1392_v29 = vpop.f32.mrf.mxu1 }
 0x379   : > { %v1393_v30 = vadd.f32 %v6798_v27, %v1392_v29  ;;  %v1473_v36 = vmul.f32 0.70710677, %v1401_v28 }
 0x37a   : > { %v5602_v62 = vpop.f32.mrf.mxu1 }
 0x37b   : > { %v1471_v63 = vmul.f32 0.70710677, %v1393_v30  ;;  %v1404_v37 = vadd.f32 %v5602_v62, %v6798_v27  ;;  %v1455_v7 = vmul.f32 0.5, %v1393_v30 }
 0x37c   : > { %v1395_v39 = vpop.f32.mrf.mxu1 }
 0x37d   : > { %5965 = verf.f32 %v1471_v63  ;;  %v1474_v32 = vmul.f32 0.70710677, %v1404_v37  ;;  %v1396_v42 = vadd.f32 %v6798_v27, %v1395_v39  ;;  %v1458_v51 = vmul.f32 0.5, %v1404_v37 }
 0x37e   : > { %5967 = verf.f32 %v1473_v36  ;;  %v5605_v18 = vpop.f32.mrf.mxu1  ;;  %v1457_v63 = vmul.f32 0.5, %v1401_v28 }
 0x37f   : > { %5969 = verf.f32 %v1474_v32  ;;  %v1472_v25 = vmul.f32 0.70710677, %v1396_v42  ;;  %v6805_v52 = vadd.f32 %v5605_v18, %v6798_v27  ;;  %v1456_v36 = vmul.f32 0.5, %v1396_v42 }
 0x380   : > { %v1408_v17 = vpop.f32.mrf.mxu1 }
 0x381   : > { %5971 = verf.f32 %v1472_v25  ;;  %v6808_v47 = vadd.f32 %v6798_v27, %v1408_v17  ;;  %v1477_v49 = vmul.f32 0.70710677, %v6805_v52 }
 0x382   : > { %v5606_v5 = vpop.f32.mrf.mxu1 }
 0x383   : > { %v1475_v56 = vmul.f32 0.70710677, %v6808_v47  ;;  %v1420_v34 = vadd.f32 %v5606_v5, %v6798_v27 }
 0x384   : > { %v1411_v53 = vpop.f32.mrf.mxu1 }
 0x385   : > { %5973 = verf.f32 %v1475_v56  ;;  %v1478_v54 = vmul.f32 0.70710677, %v1420_v34  ;;  %v6814_v23 = vadd.f32 %v6798_v27, %v1411_v53 }
 0x386   : > { %5975 = verf.f32 %v1477_v49  ;;  %v5609_v58 = vpop.f32.mrf.mxu1 }
 0x387   : > { %5977 = verf.f32 %v1478_v54  ;;  %v1476_v59 = vmul.f32 0.70710677, %v6814_v23  ;;  %v6818_v60 = vadd.f32 %v5609_v58, %v6798_v27 }
 0x388   : > { %v1424_v61 = vpop.f32.mrf.mxu1 }
 0x389   : > { %5979 = verf.f32 %v1476_v59  ;;  %v1481_v9 = vmul.f32 0.70710677, %v6818_v60  ;;  %v6822_v3 = vadd.f32 %v6798_v27, %v1424_v61 }
 0x38a   : > { %v5966_v2 = vpop.eup %5965  ;;  %v5610_v48 = vpop.f32.mrf.mxu1 }
 0x38b   : > { %v5968_v4 = vpop.eup %5967  ;;  %v6825_v8 = vadd.f32 %v5610_v48, %v6798_v27  ;;  %v1479_v38 = vmul.f32 0.70710677, %v6822_v3  ;;  %v1503_v57 = vadd.f32 1.0, %v5966_v2  ;;  %5981 = verf.f32 %v1481_v9 }
 0x38c   : > { %v5970_v6 = vpop.eup %5969  ;;  %v1427_v16 = vpop.f32.mrf.mxu1  ;;  %v1505_v40 = vadd.f32 1.0, %v5968_v4 }
 0x38d   : > { %v1506_v19 = vadd.f32 1.0, %v5970_v6  ;;  %v1482_v22 = vmul.f32 0.70710677, %v6825_v8  ;;  %5983 = verf.f32 %v1479_v38  ;;  %v1428_v1 = vadd.f32 %v6798_v27, %v1427_v16 }
 0x38e   : > { %v5972_v46 = vpop.eup %5971  ;;  %v5613_v29 = vpop.f32.mrf.mxu1  ;;  %v1519_v25 = vmul.f32 %v1503_v57, %v1455_v7  ;;  %v1521_v5 = vmul.f32 %v1505_v40, %v1457_v63  ;;  %v1462_v38 = vmul.f32 0.5, %v1420_v34  ;;  %v1459_v57 = vmul.f32 0.5, %v6808_v47 }
 0x38f   : > { %v1504_v62 = vadd.f32 1.0, %v5972_v46  ;;  %5985 = verf.f32 %v1482_v22  ;;  %v6831_v30 = vadd.f32 %v5613_v29, %v6798_v27  ;;  %v1522_v39 = vmul.f32 %v1506_v19, %v1458_v51 }
 0x390   : > { %v1480_v32 = vmul.f32 0.70710677, %v1428_v1  ;;  %v1440_v18 = vpop.f32.mrf.mxu1  ;;  %v1460_v19 = vmul.f32 0.5, %v6814_v23  ;;  %v1461_v46 = vmul.f32 0.5, %v6805_v52  ;;  %v1466_v52 = vmul.f32 0.5, %v6825_v8 }
 0x391   : > { %v1520_v17 = vmul.f32 %v1504_v62, %v1456_v36  ;;  %v1485_v37 = vmul.f32 0.70710677, %v6831_v30  ;;  %v6835_v56 = vadd.f32 %v6798_v27, %v1440_v18  ;;  %v1536_v59 = vpack.c.bf16 %v1522_v39, %v1521_v5 }
 0x392   : > { %v5974_v49 = vpop.eup %5973  ;;  %5987 = verf.f32 %v1480_v32  ;;  %v5614_v42 = vpop.f32.mrf.mxu1 }
 0x393   : > { %v5976_v53 = vpop.eup %5975  ;;  %v1535_v54 = vpack.c.bf16 %v1520_v17, %v1519_v25  ;;  %v1452_v58 = vadd.f32 %v5614_v42, %v6798_v27  ;;  %v1483_v61 = vmul.f32 0.70710677, %v6835_v56  ;;  %v1507_v2 = vadd.f32 1.0, %v5974_v49 }
 0x394   : > { %v5978_v28 = vpop.eup %5977  ;;  %v1443_v9 = vpop.f32.mrf.mxu1  ;;  %5989 = verf.f32 %v1485_v37  ;;  %v1509_v7 = vadd.f32 1.0, %v5976_v53  ;;  %v1463_v17 = vmul.f32 0.5, %v6822_v3  ;;  %v1464_v49 = vmul.f32 0.5, %v1428_v1 }
 0x395   : > { %v1510_v48 = vadd.f32 1.0, %v5978_v28  ;;  %v1486_v4 = vmul.f32 0.70710677, %v1452_v58  ;;  %5619 = vmatprep.mubr.msk.bf16.mxu1 %vm1566_vm3, %v1535_v54  ;;  %5991 = verf.f32 %v1483_v61  ;;  %v1444_v16 = vadd.f32 %v6798_v27, %v1443_v9 }
 0x396   : > { %v5980_v6 = vpop.eup %5979  ;;  %5620 = vmatmul.mubr.msk.bf16.vlgmr.msra.gmra.mxu1 %vm1566_vm3, %v1536_v59  ;;  %v1523_v29 = vmul.f32 %v1507_v2, %v1459_v57  ;;  %v1525_v63 = vmul.f32 %v1509_v7, %v1461_v46  ;;  %v1465_v37 = vmul.f32 0.5, %v6818_v60  ;;  %v1470_v3 = vmul.f32 0.5, %v1452_v58  ;;  %v5382_v58 = vld [vmem:[%s8436_s8] ss:$0 sm:$0xff] }
 0x397   : > { %v1508_v22 = vadd.f32 1.0, %v5980_v6  ;;  %5993 = verf.f32 %v1486_v4  ;;  %v1526_v40 = vmul.f32 %v1510_v48, %v1462_v38  ;;  %v1484_v51 = vmul.f32 0.70710677, %v1444_v16 }
 0x398   : > { %v5982_v62 = vpop.eup %5981  ;;  %v1467_v60 = vmul.f32 0.5, %v6835_v56  ;;  %v1468_v1 = vmul.f32 0.5, %v1444_v16  ;;  %v1469_v57 = vmul.f32 0.5, %v6831_v30 }
 0x399   : > { %v1524_v36 = vmul.f32 %v1508_v22, %v1460_v19  ;;  %5995 = verf.f32 %v1484_v51  ;;  %v1538_v32 = vpack.c.bf16 %v1526_v40, %v1525_v63  ;;  %v1513_v25 = vadd.f32 1.0, %v5982_v62 }
 0x39a   : > { %v5984_v34 = vpop.eup %5983 }
 0x39b   : > { %v1537_v39 = vpack.c.bf16 %v1524_v36, %v1523_v29  ;;  %v1511_v47 = vadd.f32 1.0, %v5984_v34  ;;  %v1529_v61 = vmul.f32 %v1513_v25, %v1465_v37 }
 0x39c   : > { %v5986_v27 = vpop.eup %5985 }
 0x39d   : > { %v1514_v18 = vadd.f32 1.0, %v5986_v27  ;;  %5623 = vmatprep.mubr.msk.bf16.mxu1 %vm1566_vm3, %v1537_v39  ;;  %v1527_v54 = vmul.f32 %v1511_v47, %v1463_v17 }
 0x39e   : > { %5624 = vmatmul.mubr.msk.bf16.gmra.mxu1 %vm1566_vm3, %v1538_v32 }
 0x39f   : > { %v5988_v23 = vpop.eup %5987  ;;  %v1530_v42 = vmul.f32 %v1514_v18, %v1466_v52 }
 0x3a0   : > { %v1512_v5 = vadd.f32 1.0, %v5988_v23 }
 0x3a1   : > { %v5990_v53 = vpop.eup %5989  ;;  %v1540_v48 = vpack.c.bf16 %v1530_v42, %v1529_v61 }
 0x3a2   : > { %v1528_v28 = vmul.f32 %v1512_v5, %v1464_v49  ;;  %v5992_v59 = vpop.eup %5991  ;;  %v1517_v7 = vadd.f32 1.0, %v5990_v53 }
 0x3a3   : > { %v1515_v6 = vadd.f32 1.0, %v5992_v59 }
 0x3a4   : > { %v5994_v9 = vpop.eup %5993  ;;  %v1539_v2 = vpack.c.bf16 %v1528_v28, %v1527_v54  ;;  %v1533_v40 = vmul.f32 %v1517_v7, %v1469_v57 }
 0x3a5   : > { %v1518_v4 = vadd.f32 1.0, %v5994_v9  ;;  %v1531_v22 = vmul.f32 %v1515_v6, %v1467_v60 }
 0x3a6   : > { %5627 = vmatprep.mubr.msk.bf16.mxu1 %vm1566_vm3, %v1539_v2  ;;  %v5996_v8 = vpop.eup %5995 }
 0x3a7   : > { %5628 = vmatmul.mubr.msk.bf16.gmra.mxu1 %vm1566_vm3, %v1540_v48  ;;  %v1516_v38 = vadd.f32 1.0, %v5996_v8  ;;  %v1534_v19 = vmul.f32 %v1518_v4, %v1470_v3 }
 0x3a9   : > { %v1532_v46 = vmul.f32 %v1516_v38, %v1468_v1  ;;  %v1542_v29 = vpack.c.bf16 %v1534_v19, %v1533_v40 }
 0x3ab   : > { %v1541_v51 = vpack.c.bf16 %v1532_v46, %v1531_v22 }
 0x3ad   : > { %5631 = vmatprep.mubr.msk.bf16.mxu1 %vm1566_vm3, %v1541_v51 }
 0x3af   : > { %5632 = vmatmul.mubr.msk.bf16.gmra.mxu1 %vm1566_vm3, %v1542_v29 }
 0x456   : > { %v5621_v36 = vpop.f32.mrf.mxu1 }
 0x457   : > { %v1634_v56 = vadd.f32 %v5621_v36, %v5382_v58 }
 0x458   : > { %v1625_v16 = vpop.f32.mrf.mxu1 }
 0x459   : > { %v1626_v62 = vadd.f32 %v5382_v58, %v1625_v16  ;;  %1720 = vxpose.xlu1.b32.start [1/2] (short) (narrow) %v1634_v56, 16 }
 0x45a   : > { %v5622_v30 = vpop.f32.mrf.mxu1 }
 0x45b   : > { %v1637_v63 = vadd.f32 %v5622_v30, %v5382_v58  ;;  %1688 = vxpose.xlu0.b32.start [1/2] (short) (narrow) %v1626_v62, 16 }
 0x45c   : > { %v1628_v34 = vpop.f32.mrf.mxu1 }
 0x45d   : > { %v1629_v39 = vadd.f32 %v5382_v58, %v1628_v34  ;;  %1721 = vxpose.xlu1.b32.end [2/2] (short) (narrow) %v1637_v63, 16 }
 0x45e   : > { %v5625_v27 = vpop.f32.mrf.mxu1 }
 0x45f   : > { %v1650_v32 = vadd.f32 %v5625_v27, %v5382_v58  ;;  %1689 = vxpose.xlu0.b32.end [2/2] (short) (narrow) %v1629_v39, 16 }
 0x460   : > { %v1641_v18 = vpop.f32.mrf.mxu1 }
 0x461   : > { %v1642_v47 = vadd.f32 %v5382_v58, %v1641_v18  ;;  %1784 = vxpose.xlu1.b32.start [1/2] (short) (narrow) %v1650_v32, 16 }
 0x462   : > { %v5626_v23 = vpop.f32.mrf.mxu1 }
 0x463   : > { %v1653_v25 = vadd.f32 %v5626_v23, %v5382_v58  ;;  %1752 = vxpose.xlu0.b32.start [1/2] (short) (narrow) %v1642_v47, 16 }
 0x464   : > { %v1644_v52 = vpop.f32.mrf.mxu1 }
 0x465   : > { %v1645_v17 = vadd.f32 %v5382_v58, %v1644_v52  ;;  %1785 = vxpose.xlu1.b32.end [2/2] (short) (narrow) %v1653_v25, 16 }
 0x467   : > { %v5629_v49 = vpop.f32.mrf.mxu1  ;;  %1753 = vxpose.xlu0.b32.end [2/2] (short) (narrow) %v1645_v17, 16 }
 0x468   : > { %v1666_v5 = vadd.f32 %v5629_v49, %v5382_v58 }
 0x469   : > { %v1657_v37 = vpop.f32.mrf.mxu1 }
 0x46a   : > { %v1658_v42 = vadd.f32 %v5382_v58, %v1657_v37  ;;  %1848 = vxpose.xlu1.b32.start [1/2] (short) (narrow) %v1666_v5, 16 }
 0x46b   : > { %v5630_v53 = vpop.f32.mrf.mxu1 }
 0x46c   : > { %v1669_v54 = vadd.f32 %v5630_v53, %v5382_v58  ;;  %1816 = vxpose.xlu0.b32.start [1/2] (short) (narrow) %v1658_v42, 16 }
 0x46d   : > { %v1660_v28 = vpop.f32.mrf.mxu1 }
 0x46e   : > { %v1661_v59 = vadd.f32 %v5382_v58, %v1660_v28  ;;  %1849 = vxpose.xlu1.b32.end [2/2] (short) (narrow) %v1669_v54, 16 }
 0x46f   : > { %v5633_v61 = vpop.f32.mrf.mxu1 }
 0x470   : > { %v1682_v9 = vadd.f32 %v5633_v61, %v5382_v58  ;;  %1817 = vxpose.xlu0.b32.end [2/2] (short) (narrow) %v1661_v59, 16 }
 0x471   : > { %v1673_v2 = vpop.f32.mrf.mxu1 }
 0x472   : > { %v1674_v48 = vadd.f32 %v5382_v58, %v1673_v2  ;;  %1912 = vxpose.xlu1.b32.start [1/2] (short) (narrow) %v1682_v9, 16 }
 0x473   : > { %v5634_v4 = vpop.f32.mrf.mxu1 }
 0x474   : > { %v1685_v6 = vadd.f32 %v5634_v4, %v5382_v58  ;;  %1880 = vxpose.xlu0.b32.start [1/2] (short) (narrow) %v1674_v48, 16 }
 0x475   : > { %v1676_v8 = vpop.f32.mrf.mxu1 }
 0x476   : > { %v1677_v7 = vadd.f32 %v5382_v58, %v1676_v8  ;;  %1913 = vxpose.xlu1.b32.end [2/2] (short) (narrow) %v1685_v6, 16 }
 0x478   : > { %1881 = vxpose.xlu0.b32.end [2/2] (short) (narrow) %v1677_v7, 16 }
 0x4d5   : > { %v1736_v3 = vpop.trf.xlu1 }
 0x4d6   : > { %v6860_v1 = vadd.f32 %v1736_v3, %v6691_v15 }
 0x4d7   : > { %v1704_v60 = vpop.trf.xlu0 }
 0x4d8   : > { %v6863_v38 = vadd.f32 %v1704_v60, %v6688_v14  ;;  %v1962_v15 = vmul.f32 %v6468_v21, %v6860_v1 }
 0x4d9   : > { %v1737_v57 = vpop.trf.xlu1 }
 0x4da   : > { %v1960_v19 = vmul.f32 %v6468_v21, %v6863_v38  ;;  %v6868_v22 = vadd.f32 %v1737_v57, %v6705_v43  ;;  %v1982_v56 = vsel %vm790_vm2, %v1962_v15, 0.0 }
 0x4db   : > { %v1705_v46 = vpop.trf.xlu0 }
 0x4dc   : > { %v6871_v40 = vadd.f32 %v1705_v46, %v6702_v33  ;;  %v1976_v51 = vsel %vm790_vm2, %v1960_v19, 0.0  ;;  %v1963_v36 = vmul.f32 %v6468_v21, %v6868_v22 }
 0x4dd   : > { %v1800_v29 = vpop.trf.xlu1  ;;  %1977 = vadd.xlane.f32.xlu0 %v1976_v51 }
 0x4de   : > { %v1961_v14 = vmul.f32 %v6468_v21, %v6871_v40  ;;  %v6881_v43 = vadd.f32 %v1800_v29, %v6718_v41  ;;  %v1985_v34 = vsel %vm790_vm2, %v1963_v36, 0.0 }
 0x4df   : > { %v1768_v58 = vpop.trf.xlu0 }
 0x4e0   : > { %v6884_v33 = vadd.f32 %v1768_v58, %v6715_v50  ;;  %v1979_v16 = vsel %vm790_vm2, %v1961_v14, 0.0  ;;  %v1966_v27 = vmul.f32 %v6468_v21, %v6881_v43 }
 0x4e1   : > { %v1801_v62 = vpop.trf.xlu1  ;;  %1983 = vadd.xlane.f32.xlu0 %v1982_v56  ;;  %1980 = vadd.xlane.f32.xlu1 %v1979_v16 }
 0x4e2   : > { %v1964_v30 = vmul.f32 %v6468_v21, %v6884_v33  ;;  %v6892_v39 = vadd.f32 %v1801_v62, %v6730_v24  ;;  %v1994_v23 = vsel %vm790_vm2, %v1966_v27, 0.0 }
 0x4e3   : > { %v1769_v63 = vpop.trf.xlu0 }
 0x4e4   : > { %v6895_v41 = vadd.f32 %v1769_v63, %v6727_v0  ;;  %v1988_v50 = vsel %vm790_vm2, %v1964_v30, 0.0  ;;  %v1967_v0 = vmul.f32 %v6468_v21, %v6892_v39 }
 0x4e5   : > { %1986 = vadd.xlane.f32.xlu1 %v1985_v34  ;;  %1989 = vadd.xlane.f32.xlu0 %v1988_v50 }
 0x4e6   : > { %v1864_v32 = vpop.trf.xlu1  ;;  %v1965_v18 = vmul.f32 %v6468_v21, %v6895_v41  ;;  %v1997_v42 = vsel %vm790_vm2, %v1967_v0, 0.0 }
 0x4e7   : > { %v6907_v25 = vadd.f32 %v1864_v32, %v6742_v11 }
 0x4e8   : > { %v1832_v47 = vpop.trf.xlu0  ;;  %v1991_v24 = vsel %vm790_vm2, %v1965_v18, 0.0 }
 0x4e9   : > { %v6910_v52 = vadd.f32 %v1832_v47, %v6739_v10  ;;  %1995 = vadd.xlane.f32.xlu0 %v1994_v23  ;;  %1992 = vadd.xlane.f32.xlu1 %v1991_v24  ;;  %v1970_v10 = vmul.f32 %v6468_v21, %v6907_v25 }
 0x4ea   : > { %v1865_v17 = vpop.trf.xlu1 }
 0x4eb   : > { %v1968_v49 = vmul.f32 %v6468_v21, %v6910_v52  ;;  %v6915_v5 = vadd.f32 %v1865_v17, %v6754_v26  ;;  %v2006_v9 = vsel %vm790_vm2, %v1970_v10, 0.0 }
 0x4ec   : > { %v1833_v37 = vpop.trf.xlu0 }
 0x4ed   : > { %v6919_v53 = vadd.f32 %v1833_v37, %v6751_v44  ;;  %1998 = vadd.xlane.f32.xlu1 %v1997_v42  ;;  %v2000_v11 = vsel %vm790_vm2, %v1968_v49, 0.0  ;;  %v1971_v26 = vmul.f32 %v6468_v21, %v6915_v5 }
 0x4ee   : > { %v1928_v54 = vpop.trf.xlu1  ;;  %2001 = vadd.xlane.f32.xlu0 %v2000_v11 }
 0x4ef   : > { %v1969_v28 = vmul.f32 %v6468_v21, %v6919_v53  ;;  %v6929_v61 = vadd.f32 %v1928_v54, %v6766_v35  ;;  %v2009_v8 = vsel %vm790_vm2, %v1971_v26, 0.0 }
 0x4f0   : > { %v1896_v59 = vpop.trf.xlu0 }
 0x4f1   : > { %v6932_v44 = vadd.f32 %v1896_v59, %v6763_v31  ;;  %v2003_v2 = vsel %vm790_vm2, %v1969_v28, 0.0  ;;  %v1974_v3 = vmul.f32 %v6468_v21, %v6929_v61 }
 0x4f2   : > { %v1929_v48 = vpop.trf.xlu1  ;;  %2007 = vadd.xlane.f32.xlu0 %v2006_v9  ;;  %2004 = vadd.xlane.f32.xlu1 %v2003_v2 }
 0x4f3   : > { %v1972_v4 = vmul.f32 %v6468_v21, %v6932_v44  ;;  %v6940_v7 = vadd.f32 %v1929_v48, %v6777_v45  ;;  %v2018_v57 = vsel %vm790_vm2, %v1974_v3, 0.0 }
 0x4f4   : > { %v1897_v6 = vpop.trf.xlu0 }
 0x4f5   : > { %v6943_v35 = vadd.f32 %v1897_v6, %v6774_v55  ;;  %v2012_v31 = vsel %vm790_vm2, %v1972_v4, 0.0  ;;  %v1975_v45 = vmul.f32 %v6468_v21, %v6940_v7 }
 0x4f6   : > { %2010 = vadd.xlane.f32.xlu1 %v2009_v8  ;;  %2013 = vadd.xlane.f32.xlu0 %v2012_v31 }
 0x4f7   : > { %v1973_v60 = vmul.f32 %v6468_v21, %v6943_v35  ;;  %v2021_v55 = vsel %vm790_vm2, %v1975_v45, 0.0 }
 0x4f9   : > { %v2015_v19 = vsel %vm790_vm2, %v1973_v60, 0.0 }
 0x4fa   : > { %2019 = vadd.xlane.f32.xlu0 %v2018_v57  ;;  %2016 = vadd.xlane.f32.xlu1 %v2015_v19 }
 0x4fe   : > { %2022 = vadd.xlane.f32.xlu1 %v2021_v55 }
 0x566   : > { %v1978_v46 = vpop.xlane.xlu0 %1977 }
 0x567   : > { %v2024_v51 = vmul.f32 0.071428575, %v1978_v46 }
 0x569   : > { %v2040_v15 = vsub.f32 %v6863_v38, %v2024_v51 }
 0x56a   : > { %v1981_v29 = vpop.xlane.xlu1 %1980  ;;  %v1984_v14 = vpop.xlane.xlu0 %1983 }
 0x56b   : > { %v2025_v58 = vmul.f32 0.071428575, %v1981_v29  ;;  %v2026_v36 = vmul.f32 0.071428575, %v1984_v14  ;;  %v6957_v56 = vmul.f32 %v6468_v21, %v2040_v15 }
 0x56d   : > { %v2041_v16 = vsub.f32 %v6871_v40, %v2025_v58  ;;  %v2042_v62 = vsub.f32 %v6860_v1, %v2026_v36  ;;  %v2072_v30 = vmul.f32 %v6957_v56, %v6957_v56  ;;  %v5923_v58 = vld [vmem:[%s8437_s9] sm:$0xff]  }
 0x56e   : > { %v1987_v63 = vpop.xlane.xlu1 %1986  ;;  %v1990_v34 = vpop.xlane.xlu0 %1989  ;;  %5635 = vmatprep.subr.bf16.mxu0 %v5923_v58 }
 0x56f   : > { %v2027_v50 = vmul.f32 0.071428575, %v1987_v63  ;;  %v2028_v27 = vmul.f32 0.071428575, %v1990_v34  ;;  %v2088_v38 = vsel %vm790_vm2, %v2072_v30, 0.0  ;;  %v6965_v32 = vmul.f32 %v6468_v21, %v2041_v16  ;;  %5636 = vmatpush3.bf16.msra.mxu0 %v5923_v58 }
 0x570   : > { %2089 = vadd.xlane.f32.xlu0 %v2088_v38  ;;  %v6968_v18 = vmul.f32 %v6468_v21, %v2042_v62 }
 0x571   : > { %v2043_v40 = vsub.f32 %v6868_v22, %v2027_v50  ;;  %v2044_v1 = vsub.f32 %v6884_v33, %v2028_v27  ;;  %v2073_v47 = vmul.f32 %v6965_v32, %v6965_v32 }
 0x572   : > { %v1993_v23 = vpop.xlane.xlu1 %1992  ;;  %v1996_v24 = vpop.xlane.xlu0 %1995  ;;  %v2074_v0 = vmul.f32 %v6968_v18, %v6968_v18 }
 0x573   : > { %v2029_v17 = vmul.f32 0.071428575, %v1993_v23  ;;  %v2030_v49 = vmul.f32 0.071428575, %v1996_v24  ;;  %v2091_v37 = vsel %vm790_vm2, %v2073_v47, 0.0  ;;  %v6978_v42 = vmul.f32 %v6468_v21, %v2043_v40 }
 0x574   : > { %2092 = vadd.xlane.f32.xlu1 %v2091_v37  ;;  %v2094_v22 = vsel %vm790_vm2, %v2074_v0, 0.0  ;;  %v6982_v33 = vmul.f32 %v6468_v21, %v2044_v1 }
 0x575   : > { %v2045_v11 = vsub.f32 %v6895_v41, %v2029_v17  ;;  %v2046_v10 = vsub.f32 %v6881_v43, %v2030_v49  ;;  %2095 = vadd.xlane.f32.xlu0 %v2094_v22  ;;  %v2075_v54 = vmul.f32 %v6978_v42, %v6978_v42 }
 0x576   : > { %v1999_v28 = vpop.xlane.xlu1 %1998  ;;  %v2076_v59 = vmul.f32 %v6982_v33, %v6982_v33 }
 0x577   : > { %v2031_v26 = vmul.f32 0.071428575, %v1999_v28  ;;  %v2002_v9 = vpop.xlane.xlu0 %2001  ;;  %v2097_v2 = vsel %vm790_vm2, %v2075_v54, 0.0  ;;  %v6992_v48 = vmul.f32 %v6468_v21, %v2045_v11  ;;  %v6995_v4 = vmul.f32 %v6468_v21, %v2046_v10 }
 0x578   : > { %v2032_v41 = vmul.f32 0.071428575, %v2002_v9  ;;  %2098 = vadd.xlane.f32.xlu1 %v2097_v2  ;;  %v2100_v43 = vsel %vm790_vm2, %v2076_v59, 0.0 }
 0x579   : > { %v2047_v6 = vsub.f32 %v6892_v39, %v2031_v26  ;;  %2101 = vadd.xlane.f32.xlu0 %v2100_v43  ;;  %v2077_v8 = vmul.f32 %v6992_v48, %v6992_v48  ;;  %v2078_v31 = vmul.f32 %v6995_v4, %v6995_v4 }
 0x57a   : > { %v2048_v3 = vsub.f32 %v6910_v52, %v2032_v41 }
 0x57b   : > { %v2005_v60 = vpop.xlane.xlu1 %2004  ;;  %v2008_v57 = vpop.xlane.xlu0 %2007  ;;  %v2103_v19 = vsel %vm790_vm2, %v2077_v8, 0.0  ;;  %v2106_v45 = vsel %vm790_vm2, %v2078_v31, 0.0  ;;  %v7007_v55 = vmul.f32 %v6468_v21, %v2047_v6  ;;  %v5924_v31 = vld [vmem:[%s8439_s11 + $0x8] sm:$0xff]  }
 0x57c   : > { %v2033_v46 = vmul.f32 0.071428575, %v2005_v60  ;;  %v2034_v39 = vmul.f32 0.071428575, %v2008_v57  ;;  %2104 = vadd.xlane.f32.xlu1 %v2103_v19  ;;  %v7010_v51 = vmul.f32 %v6468_v21, %v2048_v3  ;;  %5653 = vmatprep.subr.bf16.mxu1 %v5924_v31 }
 0x57d   : > { %2107 = vadd.xlane.f32.xlu0 %v2106_v45  ;;  %v2079_v15 = vmul.f32 %v7007_v55, %v7007_v55  ;;  %5654 = vmatpush3.bf16.msra.mxu1 %v5924_v31 }
 0x57e   : > { %v2049_v52 = vsub.f32 %v6919_v53, %v2033_v46  ;;  %v2050_v29 = vsub.f32 %v6907_v25, %v2034_v39  ;;  %v2080_v14 = vmul.f32 %v7010_v51, %v7010_v51 }
 0x57f   : > { %v2011_v36 = vpop.xlane.xlu1 %2010  ;;  %v2014_v16 = vpop.xlane.xlu0 %2013  ;;  %v2109_v62 = vsel %vm790_vm2, %v2079_v15, 0.0 }
 0x580   : > { %v2035_v30 = vmul.f32 0.071428575, %v2011_v36  ;;  %v2036_v63 = vmul.f32 0.071428575, %v2014_v16  ;;  %2110 = vadd.xlane.f32.xlu1 %v2109_v62  ;;  %v2112_v34 = vsel %vm790_vm2, %v2080_v14, 0.0  ;;  %v7024_v53 = vmul.f32 %v6468_v21, %v2049_v52 }
 0x581   : > { %2113 = vadd.xlane.f32.xlu0 %v2112_v34  ;;  %v7027_v25 = vmul.f32 %v6468_v21, %v2050_v29 }
 0x582   : > { %v2051_v50 = vsub.f32 %v6915_v5, %v2035_v30  ;;  %v2052_v27 = vsub.f32 %v6932_v44, %v2036_v63  ;;  %v2081_v38 = vmul.f32 %v7024_v53, %v7024_v53 }
 0x583   : > { %v2017_v40 = vpop.xlane.xlu1 %2016  ;;  %v2020_v1 = vpop.xlane.xlu0 %2019  ;;  %v2082_v47 = vmul.f32 %v7027_v25, %v7027_v25 }
 0x584   : > { %v2037_v23 = vmul.f32 0.071428575, %v2017_v40  ;;  %v2038_v24 = vmul.f32 0.071428575, %v2020_v1  ;;  %v2115_v0 = vsel %vm790_vm2, %v2081_v38, 0.0  ;;  %v7037_v17 = vmul.f32 %v6468_v21, %v2051_v50 }
 0x585   : > { %2116 = vadd.xlane.f32.xlu1 %v2115_v0  ;;  %v2118_v5 = vsel %vm790_vm2, %v2082_v47, 0.0  ;;  %v7041_v44 = vmul.f32 %v6468_v21, %v2052_v27 }
 0x586   : > { %v2053_v49 = vsub.f32 %v6943_v35, %v2037_v23  ;;  %v2054_v37 = vsub.f32 %v6929_v61, %v2038_v24  ;;  %2119 = vadd.xlane.f32.xlu0 %v2118_v5  ;;  %v2083_v22 = vmul.f32 %v7037_v17, %v7037_v17 }
 0x587   : > { %v2023_v11 = vpop.xlane.xlu1 %2022  ;;  %v2084_v10 = vmul.f32 %v7041_v44, %v7041_v44 }
 0x588   : > { %v2039_v54 = vmul.f32 0.071428575, %v2023_v11  ;;  %v2121_v28 = vsel %vm790_vm2, %v2083_v22, 0.0  ;;  %v7051_v59 = vmul.f32 %v6468_v21, %v2053_v49  ;;  %v7054_v26 = vmul.f32 %v6468_v21, %v2054_v37 }
 0x589   : > { %2122 = vadd.xlane.f32.xlu1 %v2121_v28  ;;  %v2124_v61 = vsel %vm790_vm2, %v2084_v10, 0.0 }
 0x58a   : > { %v2055_v35 = vsub.f32 %v6940_v7, %v2039_v54  ;;  %2125 = vadd.xlane.f32.xlu0 %v2124_v61  ;;  %v2085_v9 = vmul.f32 %v7051_v59, %v7051_v59  ;;  %v2086_v2 = vmul.f32 %v7054_v26, %v7054_v26  ;;  %v7077_v54 = vld [vmem:[%s8431_s3] ss:$0 sm:$0xff] }
 0x58c   : > { %v2127_v41 = vsel %vm790_vm2, %v2085_v9, 0.0  ;;  %v2130_v43 = vsel %vm790_vm2, %v2086_v2, 0.0  ;;  %v7065_v6 = vmul.f32 %v6468_v21, %v2055_v35 }
 0x58d   : > { %2128 = vadd.xlane.f32.xlu1 %v2127_v41 }
 0x58e   : > { %2131 = vadd.xlane.f32.xlu0 %v2130_v43  ;;  %v2087_v8 = vmul.f32 %v7065_v6, %v7065_v6 }
 0x590   : > { %v2133_v7 = vsel %vm790_vm2, %v2087_v8, 0.0 }
 0x591   : > { %2134 = vadd.xlane.f32.xlu1 %v2133_v7 }
 0x5f9   : > { %v2090_v3 = vpop.xlane.xlu0 %2089 }
 0x5fa   : > { %v2136_v60 = vmul.f32 0.071428575, %v2090_v3 }
 0x5fc   : > { %v2152_v57 = vadd.f32 1e-05, %v2136_v60 }
 0x5fd   : > { %v2093_v19 = vpop.xlane.xlu1 %2092 }
 0x5fe   : > { %5997 = vrsqrt.f32 %v2152_v57  ;;  %v2137_v45 = vmul.f32 0.071428575, %v2093_v19  ;;  %v2096_v46 = vpop.xlane.xlu0 %2095  ;;  %v7087_v57 = vld [vmem:[%s8432_s4] ss:$0 sm:$0xff] }
 0x5ff   : > { %v2138_v39 = vmul.f32 0.071428575, %v2096_v46 }
 0x600   : > { %v2153_v15 = vadd.f32 1e-05, %v2137_v45 }
 0x601   : > { %v2154_v52 = vadd.f32 1e-05, %v2138_v39  ;;  %v2099_v29 = vpop.xlane.xlu1 %2098 }
 0x602   : > { %5999 = vrsqrt.f32 %v2153_v15  ;;  %v2139_v14 = vmul.f32 0.071428575, %v2099_v29  ;;  %v2102_v58 = vpop.xlane.xlu0 %2101 }
 0x603   : > { %6001 = vrsqrt.f32 %v2154_v52  ;;  %v2140_v36 = vmul.f32 0.071428575, %v2102_v58 }
 0x604   : > { %v2155_v16 = vadd.f32 1e-05, %v2139_v14 }
 0x605   : > { %v2156_v62 = vadd.f32 1e-05, %v2140_v36  ;;  %v2105_v30 = vpop.xlane.xlu1 %2104 }
 0x606   : > { %6003 = vrsqrt.f32 %v2155_v16  ;;  %v2141_v63 = vmul.f32 0.071428575, %v2105_v30  ;;  %v2108_v34 = vpop.xlane.xlu0 %2107 }
 0x607   : > { %6005 = vrsqrt.f32 %v2156_v62  ;;  %v2142_v50 = vmul.f32 0.071428575, %v2108_v34 }
 0x608   : > { %v2157_v27 = vadd.f32 1e-05, %v2141_v63 }
 0x609   : > { %v2158_v38 = vadd.f32 1e-05, %v2142_v50  ;;  %v2111_v40 = vpop.xlane.xlu1 %2110 }
 0x60a   : > { %6007 = vrsqrt.f32 %v2157_v27  ;;  %v2143_v1 = vmul.f32 0.071428575, %v2111_v40  ;;  %v2114_v47 = vpop.xlane.xlu0 %2113 }
 0x60b   : > { %v5998_v23 = vpop.eup %5997  ;;  %6009 = vrsqrt.f32 %v2158_v38  ;;  %v2144_v24 = vmul.f32 0.071428575, %v2114_v47 }
 0x60c   : > { %v2159_v0 = vadd.f32 1e-05, %v2143_v1  ;;  %v2184_v5 = vmul.f32 %v5998_v23, %v6957_v56 }
 0x60d   : > { %v2160_v49 = vadd.f32 1e-05, %v2144_v24 }
 0x60e   : > { %6011 = vrsqrt.f32 %v2159_v0  ;;  %v2117_v37 = vpop.xlane.xlu1 %2116  ;;  %v2200_v28 = vmul.f32 %v7077_v54, %v2184_v5 }
 0x60f   : > { %v6000_v22 = vpop.eup %5999  ;;  %6013 = vrsqrt.f32 %v2160_v49  ;;  %v2145_v11 = vmul.f32 0.071428575, %v2117_v37  ;;  %v2120_v10 = vpop.xlane.xlu0 %2119 }
 0x610   : > { %v6002_v61 = vpop.eup %6001  ;;  %v2146_v35 = vmul.f32 0.071428575, %v2120_v10  ;;  %v2185_v9 = vmul.f32 %v6000_v22, %v6965_v32  ;;  %v7090_v32 = vadd.f32 %v7087_v57, %v2200_v28 }
 0x611   : > { %v2186_v56 = vmul.f32 %v6002_v61, %v6968_v18  ;;  %v2161_v2 = vadd.f32 1e-05, %v2145_v11 }
 0x612   : > { %v2162_v41 = vadd.f32 1e-05, %v2146_v35  ;;  %v2123_v43 = vpop.xlane.xlu1 %2122  ;;  %v2201_v8 = vmul.f32 %v7077_v54, %v2185_v9 }
 0x613   : > { %v6004_v7 = vpop.eup %6003  ;;  %v2202_v31 = vmul.f32 %v7077_v54, %v2186_v56  ;;  %6015 = vrsqrt.f32 %v2161_v2  ;;  %v2147_v3 = vmul.f32 0.071428575, %v2123_v43  ;;  %v2126_v60 = vpop.xlane.xlu0 %2125 }
 0x614   : > { %v6006_v18 = vpop.eup %6005  ;;  %v2187_v19 = vmul.f32 %v6004_v7, %v6978_v42  ;;  %6017 = vrsqrt.f32 %v2162_v41  ;;  %v2148_v45 = vmul.f32 0.071428575, %v2126_v60  ;;  %v7094_v46 = vadd.f32 %v7087_v57, %v2201_v8 }
 0x615   : > { %v2163_v39 = vadd.f32 1e-05, %v2147_v3  ;;  %v2188_v15 = vmul.f32 %v6006_v18, %v6982_v33  ;;  %v7101_v42 = vadd.f32 %v7087_v57, %v2202_v31 }
 0x616   : > { %v2203_v52 = vmul.f32 %v7077_v54, %v2187_v19  ;;  %v2164_v29 = vadd.f32 1e-05, %v2148_v45  ;;  %v2129_v14 = vpop.xlane.xlu1 %2128  ;;  %v2232_v58 = vpack.c.bf16 %v7094_v46, %v7090_v32 }
 0x617   : > { %v6008_v36 = vpop.eup %6007  ;;  %6019 = vrsqrt.f32 %v2163_v39  ;;  %v2149_v16 = vmul.f32 0.071428575, %v2129_v14  ;;  %v2132_v62 = vpop.xlane.xlu0 %2131  ;;  %v2204_v30 = vmul.f32 %v7077_v54, %v2188_v15 }
 0x618   : > { %v6010_v63 = vpop.eup %6009  ;;  %6021 = vrsqrt.f32 %v2164_v29  ;;  %v2150_v34 = vmul.f32 0.071428575, %v2132_v62  ;;  %5637 = vmatprep.mubr.msk.bf16.mxu0 %vm790_vm2, %v2232_v58  ;;  %v7106_v33 = vadd.f32 %v7087_v57, %v2203_v52  ;;  %v2189_v50 = vmul.f32 %v6008_v36, %v6992_v48 }
 0x619   : > { %v2165_v27 = vadd.f32 1e-05, %v2149_v16  ;;  %v2190_v38 = vmul.f32 %v6010_v63, %v6995_v4  ;;  %v7114_v5 = vadd.f32 %v7087_v57, %v2204_v30 }
 0x61a   : > { %v2166_v40 = vadd.f32 1e-05, %v2150_v34  ;;  %v2135_v1 = vpop.xlane.xlu1 %2134  ;;  %v2233_v47 = vpack.c.bf16 %v7106_v33, %v7101_v42  ;;  %v2205_v23 = vmul.f32 %v7077_v54, %v2189_v50 }
 0x61b   : > { %v6012_v24 = vpop.eup %6011  ;;  %6023 = vrsqrt.f32 %v2165_v27  ;;  %v2151_v0 = vmul.f32 0.071428575, %v2135_v1  ;;  %v2206_v37 = vmul.f32 %v7077_v54, %v2190_v38 }
 0x61c   : > { %v6014_v49 = vpop.eup %6013  ;;  %6025 = vrsqrt.f32 %v2166_v40  ;;  %5638 = vmatmul.mubr.msk.bf16.vlgmr.msra.gmra.mxu0 %vm790_vm2, %v2233_v47  ;;  %v7118_v48 = vadd.f32 %v7087_v57, %v2205_v23  ;;  %v2191_v4 = vmul.f32 %v6012_v24, %v7007_v55 }
 0x61d   : > { %v2167_v22 = vadd.f32 1e-05, %v2151_v0  ;;  %v2192_v11 = vmul.f32 %v6014_v49, %v7010_v51  ;;  %v7128_v35 = vadd.f32 %v7087_v57, %v2206_v37 }
 0x61e   : > { %v2234_v10 = vpack.c.bf16 %v7118_v48, %v7114_v5  ;;  %v2207_v28 = vmul.f32 %v7077_v54, %v2191_v4 }
 0x61f   : > { %6027 = vrsqrt.f32 %v2167_v22  ;;  %v2208_v51 = vmul.f32 %v7077_v54, %v2192_v11 }
 0x620   : > { %v6016_v61 = vpop.eup %6015  ;;  %5641 = vmatprep.mubr.msk.bf16.mxu0 %vm790_vm2, %v2234_v10  ;;  %v7131_v9 = vadd.f32 %v7087_v57, %v2207_v28 }
 0x621   : > { %v6018_v55 = vpop.eup %6017  ;;  %v2193_v56 = vmul.f32 %v6016_v61, %v7024_v53  ;;  %v7141_v31 = vadd.f32 %v7087_v57, %v2208_v51 }
 0x622   : > { %v2235_v2 = vpack.c.bf16 %v7131_v9, %v7128_v35  ;;  %v2194_v41 = vmul.f32 %v6018_v55, %v7027_v25 }
 0x623   : > { %v2209_v43 = vmul.f32 %v7077_v54, %v2193_v56 }
 0x624   : > { %v6020_v8 = vpop.eup %6019  ;;  %5642 = vmatmul.mubr.msk.bf16.gmra.mxu0 %vm790_vm2, %v2235_v2  ;;  %v2210_v60 = vmul.f32 %v7077_v54, %v2194_v41 }
 0x625   : > { %v6022_v7 = vpop.eup %6021  ;;  %v7144_v3 = vadd.f32 %v7087_v57, %v2209_v43  ;;  %v2195_v53 = vmul.f32 %v6020_v8, %v7037_v17 }
 0x626   : > { %v2196_v18 = vmul.f32 %v6022_v7, %v7041_v44  ;;  %v7154_v15 = vadd.f32 %v7087_v57, %v2210_v60 }
 0x627   : > { %v2236_v25 = vpack.c.bf16 %v7144_v3, %v7141_v31  ;;  %v2211_v19 = vmul.f32 %v7077_v54, %v2195_v53 }
 0x628   : > { %v6024_v45 = vpop.eup %6023  ;;  %v2212_v29 = vmul.f32 %v7077_v54, %v2196_v18 }
 0x629   : > { %v6026_v39 = vpop.eup %6025  ;;  %5645 = vmatprep.mubr.msk.bf16.mxu0 %vm790_vm2, %v2236_v25  ;;  %v7157_v52 = vadd.f32 %v7087_v57, %v2211_v19  ;;  %v2197_v17 = vmul.f32 %v6024_v45, %v7051_v59 }
 0x62a   : > { %v2198_v44 = vmul.f32 %v6026_v39, %v7054_v26  ;;  %v7167_v16 = vadd.f32 %v7087_v57, %v2212_v29 }
 0x62b   : > { %v2237_v14 = vpack.c.bf16 %v7157_v52, %v7154_v15  ;;  %v2213_v58 = vmul.f32 %v7077_v54, %v2197_v17 }
 0x62c   : > { %v6028_v36 = vpop.eup %6027  ;;  %v2214_v30 = vmul.f32 %v7077_v54, %v2198_v44 }
 0x62d   : > { %5646 = vmatmul.mubr.msk.bf16.gmra.mxu0 %vm790_vm2, %v2237_v14  ;;  %v7170_v62 = vadd.f32 %v7087_v57, %v2213_v58  ;;  %v2199_v59 = vmul.f32 %v6028_v36, %v7065_v6  ;;  %v5925_v6 = vld [vmem:[%s8439_s11] sm:$0xff]  }
 0x62e   : > { %v7179_v34 = vadd.f32 %v7087_v57, %v2214_v30  ;;  %5655 = vmatprep.subr.bf16.mxu1 %v5925_v6 }
 0x62f   : > { %v2238_v26 = vpack.c.bf16 %v7170_v62, %v7167_v16  ;;  %v2215_v63 = vmul.f32 %v7077_v54, %v2199_v59  ;;  %5656 = vmatpush3.bf16.msra.mxu1 %v5925_v6  ;;  %v7193_v54 = vld [vmem:[%s8438_s10] ss:$0 sm:$0xff] }
 0x631   : > { %5649 = vmatprep.mubr.msk.bf16.mxu0 %vm790_vm2, %v2238_v26  ;;  %v7182_v50 = vadd.f32 %v7087_v57, %v2215_v63 }
 0x633   : > { %v2239_v27 = vpack.c.bf16 %v7182_v50, %v7179_v34 }
 0x635   : > { %5650 = vmatmul.mubr.msk.bf16.gmra.mxu0 %vm790_vm2, %v2239_v27 }
 0x6dc   : > { %v5639_v38 = vpop.f32.mrf.mxu0 }
 0x6dd   : > { %v2322_v57 = vadd.f32 %v5639_v38, %v7193_v54 }
 0x6de   : > { %v2313_v40 = vpop.f32.mrf.mxu0 }
 0x6df   : > { %v2314_v1 = vadd.f32 %v7193_v54, %v2313_v40  ;;  %v2394_v47 = vmul.f32 0.70710677, %v2322_v57  ;;  %v2378_v58 = vmul.f32 0.5, %v2322_v57 }
 0x6e0   : > { %v5640_v23 = vpop.f32.mrf.mxu0 }
 0x6e1   : > { %v2392_v24 = vmul.f32 0.70710677, %v2314_v1  ;;  %v2325_v0 = vadd.f32 %v5640_v23, %v7193_v54  ;;  %v2376_v40 = vmul.f32 0.5, %v2314_v1 }
 0x6e2   : > { %v2316_v49 = vpop.f32.mrf.mxu0 }
 0x6e3   : > { %6029 = verf.f32 %v2392_v24  ;;  %v2395_v4 = vmul.f32 0.70710677, %v2325_v0  ;;  %v2317_v37 = vadd.f32 %v7193_v54, %v2316_v49  ;;  %v2379_v59 = vmul.f32 0.5, %v2325_v0 }
 0x6e4   : > { %6031 = verf.f32 %v2394_v47  ;;  %v5643_v22 = vpop.f32.mrf.mxu0 }
 0x6e5   : > { %6033 = verf.f32 %v2395_v4  ;;  %v2393_v11 = vmul.f32 0.70710677, %v2317_v37  ;;  %v7200_v10 = vadd.f32 %v5643_v22, %v7193_v54  ;;  %v2377_v47 = vmul.f32 0.5, %v2317_v37 }
 0x6e6   : > { %v2329_v28 = vpop.f32.mrf.mxu0 }
 0x6e7   : > { %6035 = verf.f32 %v2393_v11  ;;  %v7203_v61 = vadd.f32 %v7193_v54, %v2329_v28  ;;  %v2398_v55 = vmul.f32 0.70710677, %v7200_v10 }
 0x6e8   : > { %v5644_v56 = vpop.f32.mrf.mxu0 }
 0x6e9   : > { %v2396_v51 = vmul.f32 0.70710677, %v7203_v61  ;;  %v2341_v2 = vadd.f32 %v5644_v56, %v7193_v54 }
 0x6ea   : > { %v2332_v41 = vpop.f32.mrf.mxu0 }
 0x6eb   : > { %6037 = verf.f32 %v2396_v51  ;;  %v2399_v43 = vmul.f32 0.70710677, %v2341_v2  ;;  %v2333_v8 = vadd.f32 %v7193_v54, %v2332_v41 }
 0x6ec   : > { %6039 = verf.f32 %v2398_v55 }
 0x6ed   : > { %6041 = verf.f32 %v2399_v43  ;;  %v2397_v7 = vmul.f32 0.70710677, %v2333_v8  ;;  %v5647_v53 = vpop.f32.mrf.mxu0 }
 0x6ee   : > { %v7210_v60 = vadd.f32 %v5647_v53, %v7193_v54 }
 0x6ef   : > { %6043 = verf.f32 %v2397_v7  ;;  %v2345_v18 = vpop.f32.mrf.mxu0 }
 0x6f0   : > { %v6030_v25 = vpop.eup %6029  ;;  %v7213_v19 = vadd.f32 %v7193_v54, %v2345_v18  ;;  %v2402_v39 = vmul.f32 0.70710677, %v7210_v60 }
 0x6f1   : > { %v6032_v45 = vpop.eup %6031  ;;  %v5648_v17 = vpop.f32.mrf.mxu0  ;;  %v2424_v36 = vadd.f32 1.0, %v6030_v25 }
 0x6f2   : > { %v6034_v29 = vpop.eup %6033  ;;  %v2400_v44 = vmul.f32 0.70710677, %v7213_v19  ;;  %v7218_v14 = vadd.f32 %v5648_v17, %v7193_v54  ;;  %v2426_v27 = vadd.f32 1.0, %v6032_v45  ;;  %v2383_v45 = vmul.f32 0.5, %v2341_v2 }
 0x6f3   : > { %v2427_v30 = vadd.f32 1.0, %v6034_v29  ;;  %v2348_v26 = vpop.f32.mrf.mxu0  ;;  %v2440_v0 = vmul.f32 %v2424_v36, %v2376_v40 }
 0x6f4   : > { %v6036_v63 = vpop.eup %6035  ;;  %6045 = verf.f32 %v2400_v44  ;;  %v2403_v6 = vmul.f32 0.70710677, %v7218_v14  ;;  %v2349_v38 = vadd.f32 %v7193_v54, %v2348_v26  ;;  %v2442_v55 = vmul.f32 %v2426_v27, %v2378_v58 }
 0x6f5   : > { %v2425_v23 = vadd.f32 1.0, %v6036_v63  ;;  %6047 = verf.f32 %v2402_v39  ;;  %v5651_v24 = vpop.f32.mrf.mxu0  ;;  %v2443_v49 = vmul.f32 %v2427_v30, %v2379_v59  ;;  %v2380_v59 = vmul.f32 0.5, %v7203_v61 }
 0x6f6   : > { %6049 = verf.f32 %v2403_v6  ;;  %v2401_v4 = vmul.f32 0.70710677, %v2349_v38  ;;  %v7223_v57 = vadd.f32 %v5651_v24, %v7193_v54  ;;  %v2381_v30 = vmul.f32 0.5, %v2333_v8 }
 0x6f7   : > { %v2441_v22 = vmul.f32 %v2425_v23, %v2377_v47  ;;  %v2361_v11 = vpop.f32.mrf.mxu0  ;;  %v2457_v7 = vpack.c.bf16 %v2443_v49, %v2442_v55  ;;  %v2382_v63 = vmul.f32 0.5, %v7200_v10 }
 0x6f8   : > { %v6038_v28 = vpop.eup %6037  ;;  %6051 = verf.f32 %v2401_v4  ;;  %v7226_v56 = vadd.f32 %v7193_v54, %v2361_v11  ;;  %v2406_v51 = vmul.f32 0.70710677, %v7223_v57  ;;  %v2384_v11 = vmul.f32 0.5, %v7213_v19 }
 0x6f9   : > { %v6040_v1 = vpop.eup %6039  ;;  %v2456_v37 = vpack.c.bf16 %v2441_v22, %v2440_v0  ;;  %v5652_v41 = vpop.f32.mrf.mxu0  ;;  %v2428_v25 = vadd.f32 1.0, %v6038_v28  ;;  %v2387_v22 = vmul.f32 0.5, %v7218_v14  ;;  %v2385_v28 = vmul.f32 0.5, %v2349_v38 }
 0x6fa   : > { %v6042_v43 = vpop.eup %6041  ;;  %v2404_v53 = vmul.f32 0.70710677, %v7226_v56  ;;  %v2373_v18 = vadd.f32 %v5652_v41, %v7193_v54  ;;  %v2430_v44 = vadd.f32 1.0, %v6040_v1  ;;  %v2386_v1 = vmul.f32 0.5, %v7210_v60 }
 0x6fb   : > { %v2431_v39 = vadd.f32 1.0, %v6042_v43  ;;  %v2364_v17 = vpop.f32.mrf.mxu0  ;;  %5657 = vmatprep.mubr.msk.bf16.mxu1 %vm1566_vm3, %v2456_v37  ;;  %v2444_v6 = vmul.f32 %v2428_v25, %v2380_v59  ;;  %v2388_v60 = vmul.f32 0.5, %v7226_v56  ;;  %v2390_v59 = vmul.f32 0.5, %v7223_v57 }
 0x6fc   : > { %v6044_v29 = vpop.eup %6043  ;;  %6053 = verf.f32 %v2404_v53  ;;  %v2407_v58 = vmul.f32 0.70710677, %v2373_v18  ;;  %v2365_v36 = vadd.f32 %v7193_v54, %v2364_v17  ;;  %5658 = vmatmul.mubr.msk.bf16.vlgmr.msra.gmra.mxu1 %vm1566_vm3, %v2457_v7  ;;  %v2446_v47 = vmul.f32 %v2430_v44, %v2382_v63 }
 0x6fd   : > { %v2429_v26 = vadd.f32 1.0, %v6044_v29  ;;  %6055 = verf.f32 %v2406_v51  ;;  %v2447_v2 = vmul.f32 %v2431_v39, %v2383_v45  ;;  %v2391_v19 = vmul.f32 0.5, %v2373_v18  ;;  %v7250_v18 = vld [vmem:[%s8440_s12] ss:$0 sm:$0xff] }
 0x6fe   : > { %6057 = verf.f32 %v2407_v58  ;;  %v2405_v27 = vmul.f32 0.70710677, %v2365_v36  ;;  %v2389_v38 = vmul.f32 0.5, %v2365_v36 }
 0x6ff   : > { %v2445_v40 = vmul.f32 %v2429_v26, %v2381_v30  ;;  %v2459_v54 = vpack.c.bf16 %v2447_v2, %v2446_v47 }
 0x700   : > { %6059 = verf.f32 %v2405_v27 }
 0x701   : > { %v6046_v23 = vpop.eup %6045  ;;  %v2458_v24 = vpack.c.bf16 %v2445_v40, %v2444_v6 }
 0x702   : > { %v6048_v49 = vpop.eup %6047  ;;  %v2432_v61 = vadd.f32 1.0, %v6046_v23 }
 0x703   : > { %v6050_v4 = vpop.eup %6049  ;;  %5661 = vmatprep.mubr.msk.bf16.mxu1 %vm1566_vm3, %v2458_v24  ;;  %v2434_v10 = vadd.f32 1.0, %v6048_v49 }
 0x704   : > { %v2435_v8 = vadd.f32 1.0, %v6050_v4  ;;  %5662 = vmatmul.mubr.msk.bf16.gmra.mxu1 %vm1566_vm3, %v2459_v54  ;;  %v2448_v51 = vmul.f32 %v2432_v61, %v2384_v11 }
 0x705   : > { %v6052_v0 = vpop.eup %6051  ;;  %v2450_v7 = vmul.f32 %v2434_v10, %v2386_v1 }
 0x706   : > { %v2433_v55 = vadd.f32 1.0, %v6052_v0  ;;  %v2451_v37 = vmul.f32 %v2435_v8, %v2387_v22 }
 0x708   : > { %v2449_v41 = vmul.f32 %v2433_v55, %v2385_v28  ;;  %v2461_v39 = vpack.c.bf16 %v2451_v37, %v2450_v7 }
 0x709   : > { %v6054_v43 = vpop.eup %6053 }
 0x70a   : > { %v6056_v53 = vpop.eup %6055  ;;  %v2460_v25 = vpack.c.bf16 %v2449_v41, %v2448_v51  ;;  %v2436_v17 = vadd.f32 1.0, %v6054_v43 }
 0x70b   : > { %v6058_v45 = vpop.eup %6057  ;;  %v2438_v44 = vadd.f32 1.0, %v6056_v53 }
 0x70c   : > { %v2439_v29 = vadd.f32 1.0, %v6058_v45  ;;  %5665 = vmatprep.mubr.msk.bf16.mxu1 %vm1566_vm3, %v2460_v25  ;;  %v2452_v26 = vmul.f32 %v2436_v17, %v2388_v60 }
 0x70d   : > { %v6060_v14 = vpop.eup %6059  ;;  %5666 = vmatmul.mubr.msk.bf16.gmra.mxu1 %vm1566_vm3, %v2461_v39  ;;  %v2454_v2 = vmul.f32 %v2438_v44, %v2390_v59 }
 0x70e   : > { %v2437_v58 = vadd.f32 1.0, %v6060_v14  ;;  %v2455_v30 = vmul.f32 %v2439_v29, %v2391_v19 }
 0x710   : > { %v2453_v63 = vmul.f32 %v2437_v58, %v2389_v38  ;;  %v2463_v6 = vpack.c.bf16 %v2455_v30, %v2454_v2 }
 0x712   : > { %v2462_v27 = vpack.c.bf16 %v2453_v63, %v2452_v26 }
 0x714   : > { %5669 = vmatprep.mubr.msk.bf16.mxu1 %vm1566_vm3, %v2462_v27 }
 0x715   : > { %5670 = vmatmul.mubr.msk.bf16.gmra.mxu1 %vm1566_vm3, %v2463_v6 }
 0x7bc   : > { %v5659_v56 = vpop.f32.mrf.mxu1 }
 0x7bd   : > { %v2554_v36 = vadd.f32 %v5659_v56, %v7250_v18 }
 0x7be   : > { %v2545_v40 = vpop.f32.mrf.mxu1 }
 0x7bf   : > { %v7254_v57 = vadd.f32 %v2554_v36, %v7101_v42  ;;  %v2546_v47 = vadd.f32 %v7250_v18, %v2545_v40 }
 0x7c0   : > { %v5660_v23 = vpop.f32.mrf.mxu1 }
 0x7c1   : > { %v7258_v24 = vadd.f32 %v2546_v47, %v7090_v32  ;;  %v2557_v49 = vadd.f32 %v5660_v23, %v7250_v18  ;;  %v2628_v54 = vmul.f32 %v6468_v21, %v7254_v57 }
 0x7c2   : > { %v2548_v4 = vpop.f32.mrf.mxu1 }
 0x7c3   : > { %v7264_v61 = vadd.f32 %v2557_v49, %v7106_v33  ;;  %v2549_v8 = vadd.f32 %v7250_v18, %v2548_v4  ;;  %v2648_v42 = vsel %vm790_vm2, %v2628_v54, 0.0  ;;  %v2626_v0 = vmul.f32 %v6468_v21, %v7258_v24 }
 0x7c4   : > { %2649 = vadd.xlane.f32.xlu1 %v2648_v42  ;;  %v5663_v10 = vpop.f32.mrf.mxu1 }
 0x7c5   : > { %v7271_v32 = vadd.f32 %v2549_v8, %v7094_v46  ;;  %v2570_v22 = vadd.f32 %v5663_v10, %v7250_v18  ;;  %v2642_v11 = vsel %vm790_vm2, %v2626_v0, 0.0  ;;  %v2629_v33 = vmul.f32 %v6468_v21, %v7264_v61 }
 0x7c6   : > { %2643 = vadd.xlane.f32.xlu0 %v2642_v11  ;;  %v2561_v28 = vpop.f32.mrf.mxu1 }
 0x7c7   : > { %v7278_v55 = vadd.f32 %v2570_v22, %v7128_v35  ;;  %v2562_v1 = vadd.f32 %v7250_v18, %v2561_v28  ;;  %v2651_v37 = vsel %vm790_vm2, %v2629_v33, 0.0  ;;  %v2627_v46 = vmul.f32 %v6468_v21, %v7271_v32 }
 0x7c8   : > { %2652 = vadd.xlane.f32.xlu1 %v2651_v37  ;;  %v5664_v51 = vpop.f32.mrf.mxu1 }
 0x7c9   : > { %v7285_v41 = vadd.f32 %v2562_v1, %v7114_v5  ;;  %v2573_v43 = vadd.f32 %v5664_v51, %v7250_v18  ;;  %v2645_v7 = vsel %vm790_vm2, %v2627_v46, 0.0  ;;  %v2632_v35 = vmul.f32 %v6468_v21, %v7278_v55 }
 0x7ca   : > { %2646 = vadd.xlane.f32.xlu0 %v2645_v7  ;;  %v2564_v53 = vpop.f32.mrf.mxu1 }
 0x7cb   : > { %v7292_v25 = vadd.f32 %v2573_v43, %v7131_v9  ;;  %v2565_v45 = vadd.f32 %v7250_v18, %v2564_v53  ;;  %v2660_v39 = vsel %vm790_vm2, %v2632_v35, 0.0  ;;  %v2630_v5 = vmul.f32 %v6468_v21, %v7285_v41 }
 0x7cc   : > { %2661 = vadd.xlane.f32.xlu1 %v2660_v39 }
 0x7cd   : > { %v7299_v17 = vadd.f32 %v2565_v45, %v7118_v48  ;;  %v5667_v29 = vpop.f32.mrf.mxu1  ;;  %v2654_v14 = vsel %vm790_vm2, %v2630_v5, 0.0  ;;  %v2633_v44 = vmul.f32 %v6468_v21, %v7292_v25 }
 0x7ce   : > { %v2586_v9 = vadd.f32 %v5667_v29, %v7250_v18  ;;  %2655 = vadd.xlane.f32.xlu0 %v2654_v14 }
 0x7cf   : > { %v2577_v19 = vpop.f32.mrf.mxu1  ;;  %v2663_v60 = vsel %vm790_vm2, %v2633_v44, 0.0  ;;  %v2631_v38 = vmul.f32 %v6468_v21, %v7299_v17 }
 0x7d0   : > { %v7309_v58 = vadd.f32 %v2586_v9, %v7154_v15  ;;  %v2578_v48 = vadd.f32 %v7250_v18, %v2577_v19  ;;  %2664 = vadd.xlane.f32.xlu1 %v2663_v60 }
 0x7d1   : > { %v5668_v59 = vpop.f32.mrf.mxu1  ;;  %v2657_v30 = vsel %vm790_vm2, %v2631_v38, 0.0 }
 0x7d2   : > { %v7314_v26 = vadd.f32 %v2578_v48, %v7141_v31  ;;  %v2589_v63 = vadd.f32 %v5668_v59, %v7250_v18  ;;  %2658 = vadd.xlane.f32.xlu0 %v2657_v30  ;;  %v2636_v2 = vmul.f32 %v6468_v21, %v7309_v58 }
 0x7d3   : > { %v2580_v27 = vpop.f32.mrf.mxu1 }
 0x7d4   : > { %v7320_v6 = vadd.f32 %v2589_v63, %v7157_v52  ;;  %v2581_v15 = vadd.f32 %v7250_v18, %v2580_v27  ;;  %v2672_v56 = vsel %vm790_vm2, %v2636_v2, 0.0  ;;  %v2634_v36 = vmul.f32 %v6468_v21, %v7314_v26 }
 0x7d5   : > { %2673 = vadd.xlane.f32.xlu1 %v2672_v56  ;;  %v5671_v31 = vpop.f32.mrf.mxu1 }
 0x7d6   : > { %v7327_v40 = vadd.f32 %v2581_v15, %v7144_v3  ;;  %v2602_v47 = vadd.f32 %v5671_v31, %v7250_v18  ;;  %v2666_v23 = vsel %vm790_vm2, %v2634_v36, 0.0  ;;  %v2637_v52 = vmul.f32 %v6468_v21, %v7320_v6 }
 0x7d7   : > { %2667 = vadd.xlane.f32.xlu0 %v2666_v23  ;;  %v2593_v49 = vpop.f32.mrf.mxu1 }
 0x7d8   : > { %v7334_v54 = vadd.f32 %v2602_v47, %v7179_v34  ;;  %v2594_v4 = vadd.f32 %v7250_v18, %v2593_v49  ;;  %v2675_v8 = vsel %vm790_vm2, %v2637_v52, 0.0  ;;  %v2635_v3 = vmul.f32 %v6468_v21, %v7327_v40 }
 0x7d9   : > { %2676 = vadd.xlane.f32.xlu1 %v2675_v8  ;;  %v5672_v42 = vpop.f32.mrf.mxu1 }
 0x7da   : > { %v7341_v0 = vadd.f32 %v2594_v4, %v7167_v16  ;;  %v2605_v10 = vadd.f32 %v5672_v42, %v7250_v18  ;;  %v2669_v22 = vsel %vm790_vm2, %v2635_v3, 0.0  ;;  %v2640_v34 = vmul.f32 %v6468_v21, %v7334_v54 }
 0x7db   : > { %2670 = vadd.xlane.f32.xlu0 %v2669_v22  ;;  %v2596_v11 = vpop.f32.mrf.mxu1 }
 0x7dc   : > { %v7348_v33 = vadd.f32 %v2605_v10, %v7182_v50  ;;  %v2597_v28 = vadd.f32 %v7250_v18, %v2596_v11  ;;  %v2684_v1 = vsel %vm790_vm2, %v2640_v34, 0.0  ;;  %v2638_v16 = vmul.f32 %v6468_v21, %v7341_v0 }
 0x7dd   : > { %2685 = vadd.xlane.f32.xlu1 %v2684_v1 }
 0x7de   : > { %v7355_v37 = vadd.f32 %v2597_v28, %v7170_v62  ;;  %v2678_v46 = vsel %vm790_vm2, %v2638_v16, 0.0  ;;  %v2641_v51 = vmul.f32 %v6468_v21, %v7348_v33 }
 0x7df   : > { %2679 = vadd.xlane.f32.xlu0 %v2678_v46 }
 0x7e0   : > { %v2687_v50 = vsel %vm790_vm2, %v2641_v51, 0.0  ;;  %v2639_v18 = vmul.f32 %v6468_v21, %v7355_v37 }
 0x7e1   : > { %2688 = vadd.xlane.f32.xlu1 %v2687_v50 }
 0x7e2   : > { %v2681_v43 = vsel %vm790_vm2, %v2639_v18, 0.0 }
 0x7e3   : > { %2682 = vadd.xlane.f32.xlu0 %v2681_v43 }
 0x84d   : > { %v2650_v7 = vpop.xlane.xlu1 %2649 }
 0x84e   : > { %v2692_v35 = vmul.f32 0.071428575, %v2650_v7 }
 0x84f   : > { %v2644_v53 = vpop.xlane.xlu0 %2643 }
 0x850   : > { %v2708_v62 = vsub.f32 %v7254_v57, %v2692_v35  ;;  %v2690_v45 = vmul.f32 0.071428575, %v2644_v53 }
 0x851   : > { %v2653_v39 = vpop.xlane.xlu1 %2652 }
 0x852   : > { %v2706_v5 = vsub.f32 %v7258_v24, %v2690_v45  ;;  %v2693_v29 = vmul.f32 0.071428575, %v2653_v39  ;;  %v7367_v14 = vmul.f32 %v6468_v21, %v2708_v62 }
 0x853   : > { %v2647_v44 = vpop.xlane.xlu0 %2646 }
 0x854   : > { %v2709_v9 = vsub.f32 %v7264_v61, %v2693_v29  ;;  %v2691_v19 = vmul.f32 0.071428575, %v2647_v44  ;;  %v2740_v60 = vmul.f32 %v7367_v14, %v7367_v14  ;;  %v7373_v38 = vmul.f32 %v6468_v21, %v2706_v5 }
 0x855   : > { %v2662_v48 = vpop.xlane.xlu1 %2661 }
 0x856   : > { %v2707_v57 = vsub.f32 %v7271_v32, %v2691_v19  ;;  %v2696_v59 = vmul.f32 0.071428575, %v2662_v48  ;;  %v2760_v24 = vsel %vm790_vm2, %v2740_v60, 0.0  ;;  %v2738_v30 = vmul.f32 %v7373_v38, %v7373_v38 }
 0x857   : > { %2761 = vadd.xlane.f32.xlu1 %v2760_v24  ;;  %v2656_v63 = vpop.xlane.xlu0 %2655  ;;  %v7380_v61 = vmul.f32 %v6468_v21, %v2709_v9 }
 0x858   : > { %v2712_v2 = vsub.f32 %v7278_v55, %v2696_v59  ;;  %v2694_v27 = vmul.f32 0.071428575, %v2656_v63  ;;  %v2754_v15 = vsel %vm790_vm2, %v2738_v30, 0.0  ;;  %v7385_v56 = vmul.f32 %v6468_v21, %v2707_v57 }
 0x859   : > { %v2665_v32 = vpop.xlane.xlu1 %2664  ;;  %2755 = vadd.xlane.f32.xlu0 %v2754_v15  ;;  %v2741_v36 = vmul.f32 %v7380_v61, %v7380_v61 }
 0x85a   : > { %v2710_v31 = vsub.f32 %v7285_v41, %v2694_v27  ;;  %v2697_v47 = vmul.f32 0.071428575, %v2665_v32  ;;  %v2739_v23 = vmul.f32 %v7385_v56, %v7385_v56  ;;  %v7393_v52 = vmul.f32 %v6468_v21, %v2712_v2 }
 0x85b   : > { %v2763_v55 = vsel %vm790_vm2, %v2741_v36, 0.0  ;;  %v2659_v49 = vpop.xlane.xlu0 %2658 }
 0x85c   : > { %v2713_v4 = vsub.f32 %v7292_v25, %v2697_v47  ;;  %2764 = vadd.xlane.f32.xlu1 %v2763_v55  ;;  %v2695_v8 = vmul.f32 0.071428575, %v2659_v49  ;;  %v2757_v3 = vsel %vm790_vm2, %v2739_v23, 0.0  ;;  %v2744_v42 = vmul.f32 %v7393_v52, %v7393_v52 }
 0x85d   : > { %2758 = vadd.xlane.f32.xlu0 %v2757_v3  ;;  %v7401_v41 = vmul.f32 %v6468_v21, %v2710_v31 }
 0x85e   : > { %v2711_v10 = vsub.f32 %v7299_v17, %v2695_v8  ;;  %v2674_v22 = vpop.xlane.xlu1 %2673  ;;  %v2772_v34 = vsel %vm790_vm2, %v2744_v42, 0.0  ;;  %v7406_v11 = vmul.f32 %v6468_v21, %v2713_v4 }
 0x85f   : > { %v2700_v25 = vmul.f32 0.071428575, %v2674_v22  ;;  %v2742_v28 = vmul.f32 %v7401_v41, %v7401_v41 }
 0x860   : > { %2773 = vadd.xlane.f32.xlu1 %v2772_v34  ;;  %v2668_v1 = vpop.xlane.xlu0 %2667  ;;  %v2745_v16 = vmul.f32 %v7406_v11, %v7406_v11  ;;  %v7413_v46 = vmul.f32 %v6468_v21, %v2711_v10 }
 0x861   : > { %v2716_v17 = vsub.f32 %v7309_v58, %v2700_v25  ;;  %v2698_v51 = vmul.f32 0.071428575, %v2668_v1  ;;  %v2766_v50 = vsel %vm790_vm2, %v2742_v28, 0.0  ;;  %v5926_v28 = vld [vmem:[%s8433_s5 + $0x8] sm:$0xff]  }
 0x862   : > { %v2677_v18 = vpop.xlane.xlu1 %2676  ;;  %2767 = vadd.xlane.f32.xlu0 %v2766_v50  ;;  %v2775_v43 = vsel %vm790_vm2, %v2745_v16, 0.0  ;;  %v2743_v7 = vmul.f32 %v7413_v46, %v7413_v46  ;;  %5673 = vmatprep.subr.bf16.mxu0 %v5926_v28 }
 0x863   : > { %v2714_v35 = vsub.f32 %v7314_v26, %v2698_v51  ;;  %v2701_v53 = vmul.f32 0.071428575, %v2677_v18  ;;  %v7422_v62 = vmul.f32 %v6468_v21, %v2716_v17  ;;  %5674 = vmatpush3.bf16.msra.mxu0 %v5926_v28 }
 0x864   : > { %2776 = vadd.xlane.f32.xlu1 %v2775_v43  ;;  %v2671_v45 = vpop.xlane.xlu0 %2670  ;;  %v2769_v58 = vsel %vm790_vm2, %v2743_v7, 0.0 }
 0x865   : > { %v2717_v39 = vsub.f32 %v7320_v6, %v2701_v53  ;;  %v2699_v5 = vmul.f32 0.071428575, %v2671_v45  ;;  %v2748_v29 = vmul.f32 %v7422_v62, %v7422_v62  ;;  %v7429_v44 = vmul.f32 %v6468_v21, %v2714_v35 }
 0x866   : > { %v2686_v9 = vpop.xlane.xlu1 %2685  ;;  %2770 = vadd.xlane.f32.xlu0 %v2769_v58 }
 0x867   : > { %v2715_v26 = vsub.f32 %v7327_v40, %v2699_v5  ;;  %v2704_v19 = vmul.f32 0.071428575, %v2686_v9  ;;  %v2784_v60 = vsel %vm790_vm2, %v2748_v29, 0.0  ;;  %v2746_v48 = vmul.f32 %v7429_v44, %v7429_v44 }
 0x868   : > { %2785 = vadd.xlane.f32.xlu1 %v2784_v60  ;;  %v2680_v57 = vpop.xlane.xlu0 %2679  ;;  %v7436_v6 = vmul.f32 %v6468_v21, %v2717_v39 }
 0x869   : > { %v2720_v59 = vsub.f32 %v7334_v54, %v2704_v19  ;;  %v2702_v24 = vmul.f32 0.071428575, %v2680_v57  ;;  %v2778_v30 = vsel %vm790_vm2, %v2746_v48, 0.0  ;;  %v7441_v63 = vmul.f32 %v6468_v21, %v2715_v26 }
 0x86a   : > { %v2689_v40 = vpop.xlane.xlu1 %2688  ;;  %2779 = vadd.xlane.f32.xlu0 %v2778_v30  ;;  %v2749_v2 = vmul.f32 %v7436_v6, %v7436_v6 }
 0x86b   : > { %v2718_v27 = vsub.f32 %v7341_v0, %v2702_v24  ;;  %v2705_v15 = vmul.f32 0.071428575, %v2689_v40  ;;  %v2747_v32 = vmul.f32 %v7441_v63, %v7441_v63  ;;  %v7449_v36 = vmul.f32 %v6468_v21, %v2720_v59 }
 0x86c   : > { %v2787_v54 = vsel %vm790_vm2, %v2749_v2, 0.0  ;;  %v2683_v31 = vpop.xlane.xlu0 %2682 }
 0x86d   : > { %v2721_v47 = vsub.f32 %v7348_v33, %v2705_v15  ;;  %2788 = vadd.xlane.f32.xlu1 %v2787_v54  ;;  %v2703_v23 = vmul.f32 0.071428575, %v2683_v31  ;;  %v2781_v55 = vsel %vm790_vm2, %v2747_v32, 0.0  ;;  %v2752_v49 = vmul.f32 %v7449_v36, %v7449_v36  ;;  %v7482_v15 = vld [vmem:[%s8431_s3 + $0x1] ss:$0 sm:$0xff] }
 0x86e   : > { %2782 = vadd.xlane.f32.xlu0 %v2781_v55  ;;  %v7457_v0 = vmul.f32 %v6468_v21, %v2718_v27 }
 0x86f   : > { %v2719_v4 = vsub.f32 %v7355_v37, %v2703_v23  ;;  %v2796_v8 = vsel %vm790_vm2, %v2752_v49, 0.0  ;;  %v7462_v3 = vmul.f32 %v6468_v21, %v2721_v47 }
 0x870   : > { %v2750_v33 = vmul.f32 %v7457_v0, %v7457_v0 }
 0x871   : > { %2797 = vadd.xlane.f32.xlu1 %v2796_v8  ;;  %v2753_v42 = vmul.f32 %v7462_v3, %v7462_v3  ;;  %v7469_v10 = vmul.f32 %v6468_v21, %v2719_v4 }
 0x872   : > { %v2790_v22 = vsel %vm790_vm2, %v2750_v33, 0.0  ;;  %v7490_v33 = vld [vmem:[%s8432_s4 + $0x1] ss:$0 sm:$0xff] }
 0x873   : > { %2791 = vadd.xlane.f32.xlu0 %v2790_v22  ;;  %v2799_v37 = vsel %vm790_vm2, %v2753_v42, 0.0  ;;  %v2751_v34 = vmul.f32 %v7469_v10, %v7469_v10 }
 0x875   : > { %2800 = vadd.xlane.f32.xlu1 %v2799_v37  ;;  %v2793_v25 = vsel %vm790_vm2, %v2751_v34, 0.0 }
 0x877   : > { %2794 = vadd.xlane.f32.xlu0 %v2793_v25 }
 0x8e0   : > { %v2762_v1 = vpop.xlane.xlu1 %2761 }
 0x8e1   : > { %v2804_v16 = vmul.f32 0.071428575, %v2762_v1 }
 0x8e2   : > { %v2756_v17 = vpop.xlane.xlu0 %2755 }
 0x8e3   : > { %v2820_v51 = vadd.f32 1e-05, %v2804_v16  ;;  %v2802_v50 = vmul.f32 0.071428575, %v2756_v17 }
 0x8e5   : > { %6061 = vrsqrt.f32 %v2820_v51  ;;  %v2818_v18 = vadd.f32 1e-05, %v2802_v50  ;;  %v2765_v43 = vpop.xlane.xlu1 %2764 }
 0x8e6   : > { %v2805_v7 = vmul.f32 0.071428575, %v2765_v43  ;;  %v2759_v35 = vpop.xlane.xlu0 %2758 }
 0x8e7   : > { %6063 = vrsqrt.f32 %v2818_v18  ;;  %v2803_v53 = vmul.f32 0.071428575, %v2759_v35 }
 0x8e8   : > { %v2821_v45 = vadd.f32 1e-05, %v2805_v7 }
 0x8e9   : > { %v2819_v58 = vadd.f32 1e-05, %v2803_v53  ;;  %v2774_v39 = vpop.xlane.xlu1 %2773 }
 0x8ea   : > { %6065 = vrsqrt.f32 %v2821_v45  ;;  %v2808_v5 = vmul.f32 0.071428575, %v2774_v39 }
 0x8eb   : > { %6067 = vrsqrt.f32 %v2819_v58  ;;  %v2768_v29 = vpop.xlane.xlu0 %2767 }
 0x8ec   : > { %v2824_v9 = vadd.f32 1e-05, %v2808_v5  ;;  %v2806_v26 = vmul.f32 0.071428575, %v2768_v29 }
 0x8ed   : > { %v2777_v19 = vpop.xlane.xlu1 %2776 }
 0x8ee   : > { %6069 = vrsqrt.f32 %v2824_v9  ;;  %v2822_v60 = vadd.f32 1e-05, %v2806_v26  ;;  %v2809_v48 = vmul.f32 0.071428575, %v2777_v19 }
 0x8ef   : > { %v2771_v57 = vpop.xlane.xlu0 %2770 }
 0x8f0   : > { %6071 = vrsqrt.f32 %v2822_v60  ;;  %v2825_v59 = vadd.f32 1e-05, %v2809_v48  ;;  %v2807_v24 = vmul.f32 0.071428575, %v2771_v57 }
 0x8f1   : > { %v2786_v30 = vpop.xlane.xlu1 %2785 }
 0x8f2   : > { %v6062_v40 = vpop.eup %6061  ;;  %6073 = vrsqrt.f32 %v2825_v59  ;;  %v2823_v2 = vadd.f32 1e-05, %v2807_v24  ;;  %v2812_v27 = vmul.f32 0.071428575, %v2786_v30 }
 0x8f3   : > { %v2780_v32 = vpop.xlane.xlu0 %2779  ;;  %v2852_v54 = vmul.f32 %v6062_v40, %v7367_v14 }
 0x8f4   : > { %v6064_v31 = vpop.eup %6063  ;;  %6075 = vrsqrt.f32 %v2823_v2  ;;  %v2828_v47 = vadd.f32 1e-05, %v2812_v27  ;;  %v2810_v23 = vmul.f32 0.071428575, %v2780_v32 }
 0x8f5   : > { %v2850_v55 = vmul.f32 %v6064_v31, %v7373_v38  ;;  %v2872_v49 = vmul.f32 %v7482_v15, %v2852_v54 }
 0x8f6   : > { %6077 = vrsqrt.f32 %v2828_v47  ;;  %v2826_v4 = vadd.f32 1e-05, %v2810_v23  ;;  %v2789_v8 = vpop.xlane.xlu1 %2788 }
 0x8f7   : > { %v6066_v42 = vpop.eup %6065  ;;  %v2813_v22 = vmul.f32 0.071428575, %v2789_v8  ;;  %v2783_v37 = vpop.xlane.xlu0 %2782  ;;  %v2870_v14 = vmul.f32 %v7482_v15, %v2850_v55  ;;  %v7498_v16 = vadd.f32 %v7490_v33, %v2872_v49 }
 0x8f8   : > { %v6068_v34 = vpop.eup %6067  ;;  %6079 = vrsqrt.f32 %v2826_v4  ;;  %v2811_v25 = vmul.f32 0.071428575, %v2783_v37  ;;  %v2853_v38 = vmul.f32 %v6066_v42, %v7380_v61 }
 0x8f9   : > { %v2829_v28 = vadd.f32 1e-05, %v2813_v22  ;;  %v7495_v1 = vadd.f32 %v7490_v33, %v2870_v14  ;;  %v2851_v17 = vmul.f32 %v6068_v34, %v7385_v56 }
 0x8fa   : > { %v2827_v51 = vadd.f32 1e-05, %v2811_v25  ;;  %v2798_v50 = vpop.xlane.xlu1 %2797  ;;  %v2873_v18 = vmul.f32 %v7482_v15, %v2853_v38 }
 0x8fb   : > { %v6070_v43 = vpop.eup %6069  ;;  %6081 = vrsqrt.f32 %v2829_v28  ;;  %v2816_v7 = vmul.f32 0.071428575, %v2798_v50  ;;  %v5852_v35 = vpack.i.bf16 %v7498_v16, %v7495_v1  ;;  %v2871_v61 = vmul.f32 %v7482_v15, %v2851_v17 }
 0x8fc   : > { %6083 = vrsqrt.f32 %v2827_v51  ;;  %v2792_v53 = vpop.xlane.xlu0 %2791  ;;  %v2856_v45 = vmul.f32 %v6070_v43, %v7393_v52  ;;  %v7510_v29 = vadd.f32 %v7490_v33, %v2873_v18 }
 0x8fd   : > { %v6072_v58 = vpop.eup %6071  ;;  %v2832_v39 = vadd.f32 1e-05, %v2816_v7  ;;  %v2814_v5 = vmul.f32 0.071428575, %v2792_v53  ;;  %5853 = vxpose.xlu0.b32.start [1/2] (short) (narrow) %v5852_v35, 16  ;;  %v7507_v56 = vadd.f32 %v7490_v33, %v2871_v61 }
 0x8fe   : > { %v2801_v9 = vpop.xlane.xlu1 %2800  ;;  %v2854_v26 = vmul.f32 %v6072_v58, %v7401_v41  ;;  %v2876_v19 = vmul.f32 %v7482_v15, %v2856_v45 }
 0x8ff   : > { %v6074_v60 = vpop.eup %6073  ;;  %6085 = vrsqrt.f32 %v2832_v39  ;;  %v2830_v48 = vadd.f32 1e-05, %v2814_v5  ;;  %v2817_v57 = vmul.f32 0.071428575, %v2801_v9  ;;  %v5854_v52 = vpack.i.bf16 %v7510_v29, %v7507_v56 }
 0x900   : > { %v2795_v59 = vpop.xlane.xlu0 %2794  ;;  %v2874_v24 = vmul.f32 %v7482_v15, %v2854_v26  ;;  %v2857_v30 = vmul.f32 %v6074_v60, %v7406_v11  ;;  %v7522_v32 = vadd.f32 %v7490_v33, %v2876_v19 }
 0x901   : > { %v6076_v40 = vpop.eup %6075  ;;  %6087 = vrsqrt.f32 %v2830_v48  ;;  %v2833_v2 = vadd.f32 1e-05, %v2817_v57  ;;  %v2815_v27 = vmul.f32 0.071428575, %v2795_v59  ;;  %5855 = vxpose.xlu0.b32.end [2/2] (short) (narrow) %v5854_v52, 16 }
 0x902   : > { %v7519_v41 = vadd.f32 %v7490_v33, %v2874_v24  ;;  %v2855_v54 = vmul.f32 %v6076_v40, %v7413_v46  ;;  %v2877_v31 = vmul.f32 %v7482_v15, %v2857_v30 }
 0x903   : > { %v6078_v47 = vpop.eup %6077  ;;  %6089 = vrsqrt.f32 %v2833_v2  ;;  %v2831_v23 = vadd.f32 1e-05, %v2815_v27 }
 0x904   : > { %v5866_v11 = vpack.i.bf16 %v7522_v32, %v7519_v41  ;;  %v2875_v55 = vmul.f32 %v7482_v15, %v2855_v54  ;;  %v2860_v49 = vmul.f32 %v6078_v47, %v7422_v62  ;;  %v7534_v46 = vadd.f32 %v7490_v33, %v2877_v31 }
 0x905   : > { %v6080_v4 = vpop.eup %6079  ;;  %6091 = vrsqrt.f32 %v2831_v23 }
 0x906   : > { %5867 = vxpose.xlu1.b32.start [1/2] (short) (narrow) %v5866_v11, 16  ;;  %v7531_v8 = vadd.f32 %v7490_v33, %v2875_v55  ;;  %v2858_v42 = vmul.f32 %v6080_v4, %v7429_v44  ;;  %v2880_v22 = vmul.f32 %v7482_v15, %v2860_v49 }
 0x908   : > { %v6082_v37 = vpop.eup %6081  ;;  %v5868_v14 = vpack.i.bf16 %v7534_v46, %v7531_v8  ;;  %v2878_v34 = vmul.f32 %v7482_v15, %v2858_v42  ;;  %v7546_v28 = vadd.f32 %v7490_v33, %v2880_v22 }
 0x909   : > { %v6084_v62 = vpop.eup %6083  ;;  %v2861_v25 = vmul.f32 %v6082_v37, %v7436_v6 }
 0x90a   : > { %5869 = vxpose.xlu1.b32.end [2/2] (short) (narrow) %v5868_v14, 16  ;;  %v7543_v38 = vadd.f32 %v7490_v33, %v2878_v34  ;;  %v2859_v44 = vmul.f32 %v6084_v62, %v7441_v63 }
 0x90b   : > { %v2881_v17 = vmul.f32 %v7482_v15, %v2861_v25 }
 0x90c   : > { %v6086_v51 = vpop.eup %6085  ;;  %v5880_v50 = vpack.i.bf16 %v7546_v28, %v7543_v38  ;;  %v2879_v18 = vmul.f32 %v7482_v15, %v2859_v44 }
 0x90d   : > { %v2864_v43 = vmul.f32 %v6086_v51, %v7449_v36  ;;  %v7558_v35 = vadd.f32 %v7490_v33, %v2881_v17 }
 0x90e   : > { %v6088_v6 = vpop.eup %6087  ;;  %5881 = vxpose.xlu0.b32.start [1/2] (short) (narrow) %v5880_v50, 16  ;;  %v7555_v7 = vadd.f32 %v7490_v33, %v2879_v18 }
 0x90f   : > { %v2862_v63 = vmul.f32 %v6088_v6, %v7457_v0  ;;  %v2884_v61 = vmul.f32 %v7482_v15, %v2864_v43 }
 0x910   : > { %v6090_v53 = vpop.eup %6089  ;;  %v5882_v45 = vpack.i.bf16 %v7558_v35, %v7555_v7 }
 0x911   : > { %v2882_v58 = vmul.f32 %v7482_v15, %v2862_v63  ;;  %v2865_v36 = vmul.f32 %v6090_v53, %v7462_v3  ;;  %v7570_v9 = vadd.f32 %v7490_v33, %v2884_v61  ;;  %v5928_v61 = vld [vmem:[%s8435_s7 + $0x10] sm:$0xff]   ;;  %v7602_v53 = vld [vmem:[%s8434_s6 + $0x1] ss:$0 sm:$0xff] }
 0x912   : > { %v6092_v39 = vpop.eup %6091  ;;  %5883 = vxpose.xlu0.b32.end [2/2] (short) (narrow) %v5882_v45, 16 }
 0x913   : > { %v7567_v5 = vadd.f32 %v7490_v33, %v2882_v58  ;;  %v2863_v0 = vmul.f32 %v6092_v39, %v7469_v10  ;;  %v2885_v26 = vmul.f32 %v7482_v15, %v2865_v36  ;;  %v5927_v10 = vld [vmem:[%s8435_s7 + $0x18] sm:$0xff]  }
 0x914   : > { %5691 = vmatprep.subr.bf16.mxu1 %v5927_v10 }
 0x915   : > { %v5894_v19 = vpack.i.bf16 %v7570_v9, %v7567_v5  ;;  %v2883_v60 = vmul.f32 %v7482_v15, %v2863_v0  ;;  %v7581_v48 = vadd.f32 %v7490_v33, %v2885_v26  ;;  %5692 = vmatpush3.bf16.msra.mxu1 %v5927_v10 }
 0x916   : > { %5693 = vmatprep.subr.bf16.mxu1 %v5928_v61 }
 0x917   : > { %5895 = vxpose.xlu1.b32.start [1/2] (short) (narrow) %v5894_v19, 16  ;;  %v7578_v3 = vadd.f32 %v7490_v33, %v2883_v60 }
 0x919   : > { %v5896_v57 = vpack.i.bf16 %v7581_v48, %v7578_v3  ;;  %5694 = vmatpush3.bf16.msra.mxu1 %v5928_v61 }
 0x91b   : > { %5897 = vxpose.xlu1.b32.end [2/2] (short) (narrow) %v5896_v57, 16 }
 0x979   : > { %v5856_v52 = vpop.trf.xlu0 }
 0x97a   : > { %v5860_v59 = vunpack.i.h.bf16 %v5856_v52  ;;  %v5857_v15 = vunpack.i.l.bf16 %v5856_v52 }
 0x97d   : > { %v5861_v24 = vpop.trf.xlu0 }
 0x97e   : > { %v5865_v30 = vunpack.i.h.bf16 %v5861_v24  ;;  %v5862_v40 = vunpack.i.l.bf16 %v5861_v24 }
 0x980   : > { %v3163_v2 = vpack.c.bf16 %v5865_v30, %v5860_v59  ;;  %v3162_v27 = vpack.c.bf16 %v5862_v40, %v5857_v15 }
 0x982   : > { %v5870_v33 = vpop.trf.xlu1  ;;  %5675 = vmatprep.mubr.msk.bf16.mxu0 %vm790_vm2, %v3162_v27 }
 0x983   : > { %5676 = vmatmul.mubr.msk.bf16.vlgmr.msra.gmra.mxu0 %vm790_vm2, %v3163_v2  ;;  %v5874_v54 = vunpack.i.h.bf16 %v5870_v33  ;;  %v5871_v31 = vunpack.i.l.bf16 %v5870_v33 }
 0x986   : > { %v5875_v47 = vpop.trf.xlu1 }
 0x987   : > { %v5879_v23 = vunpack.i.h.bf16 %v5875_v47  ;;  %v5876_v11 = vunpack.i.l.bf16 %v5875_v47 }
 0x989   : > { %v3164_v55 = vpack.c.bf16 %v5876_v11, %v5871_v31  ;;  %v3165_v49 = vpack.c.bf16 %v5879_v23, %v5874_v54 }
 0x98a   : > { %v5884_v4 = vpop.trf.xlu0 }
 0x98b   : > { %5679 = vmatprep.mubr.msk.bf16.mxu0 %vm790_vm2, %v3164_v55  ;;  %v5888_v42 = vunpack.i.h.bf16 %v5884_v4  ;;  %v5885_v22 = vunpack.i.l.bf16 %v5884_v4 }
 0x98c   : > { %5680 = vmatmul.mubr.msk.bf16.gmra.mxu0 %vm790_vm2, %v3165_v49 }
 0x98e   : > { %v5889_v37 = vpop.trf.xlu0 }
 0x98f   : > { %v5893_v14 = vunpack.i.h.bf16 %v5889_v37  ;;  %v5890_v34 = vunpack.i.l.bf16 %v5889_v37 }
 0x991   : > { %v3166_v62 = vpack.c.bf16 %v5890_v34, %v5885_v22  ;;  %v3167_v25 = vpack.c.bf16 %v5893_v14, %v5888_v42 }
 0x993   : > { %v5898_v44 = vpop.trf.xlu1  ;;  %5683 = vmatprep.mubr.msk.bf16.mxu0 %vm790_vm2, %v3166_v62 }
 0x994   : > { %5684 = vmatmul.mubr.msk.bf16.gmra.mxu0 %vm790_vm2, %v3167_v25  ;;  %v5902_v17 = vunpack.i.h.bf16 %v5898_v44  ;;  %v5899_v51 = vunpack.i.l.bf16 %v5898_v44 }
 0x997   : > { %v5903_v50 = vpop.trf.xlu1 }
 0x998   : > { %v5907_v18 = vunpack.i.h.bf16 %v5903_v50  ;;  %v5904_v43 = vunpack.i.l.bf16 %v5903_v50 }
 0x99a   : > { %v3168_v6 = vpack.c.bf16 %v5904_v43, %v5899_v51  ;;  %v3169_v63 = vpack.c.bf16 %v5907_v18, %v5902_v17 }
 0x99c   : > { %5687 = vmatprep.mubr.msk.bf16.mxu0 %vm790_vm2, %v3168_v6 }
 0x99d   : > { %5688 = vmatmul.mubr.msk.bf16.gmra.mxu0 %vm790_vm2, %v3169_v63 }
 0xa43   : > { %v5677_v45 = vpop.f32.mrf.mxu0 }
 0xa44   : > { %v3254_v58 = vadd.f32 %v5677_v45, %v7602_v53 }
 0xa45   : > { %v3245_v36 = vpop.f32.mrf.mxu0 }
 0xa46   : > { %v3246_v39 = vadd.f32 %v7602_v53, %v3245_v36  ;;  %v3326_v0 = vmul.f32 0.70710677, %v3254_v58 }
 0xa47   : > { %v5678_v26 = vpop.f32.mrf.mxu0 }
 0xa48   : > { %v3324_v19 = vmul.f32 0.70710677, %v3246_v39  ;;  %v3257_v60 = vadd.f32 %v5678_v26, %v7602_v53  ;;  %v3308_v45 = vmul.f32 0.5, %v3246_v39  ;;  %v3310_v26 = vmul.f32 0.5, %v3254_v58 }
 0xa49   : > { %v3248_v57 = vpop.f32.mrf.mxu0 }
 0xa4a   : > { %6093 = verf.f32 %v3324_v19  ;;  %v3327_v10 = vmul.f32 0.70710677, %v3257_v60  ;;  %v3249_v52 = vadd.f32 %v7602_v53, %v3248_v57  ;;  %v3311_v51 = vmul.f32 0.5, %v3257_v60 }
 0xa4b   : > { %6095 = verf.f32 %v3326_v0 }
 0xa4c   : > { %6097 = verf.f32 %v3327_v10  ;;  %v3325_v59 = vmul.f32 0.70710677, %v3249_v52  ;;  %v5681_v15 = vpop.f32.mrf.mxu0  ;;  %v3309_v36 = vmul.f32 0.5, %v3249_v52 }
 0xa4d   : > { %v7609_v24 = vadd.f32 %v5681_v15, %v7602_v53 }
 0xa4e   : > { %6099 = verf.f32 %v3325_v59  ;;  %v3261_v30 = vpop.f32.mrf.mxu0 }
 0xa4f   : > { %v7612_v40 = vadd.f32 %v7602_v53, %v3261_v30  ;;  %v3330_v2 = vmul.f32 0.70710677, %v7609_v24 }
 0xa50   : > { %v5682_v27 = vpop.f32.mrf.mxu0 }
 0xa51   : > { %v3328_v33 = vmul.f32 0.70710677, %v7612_v40  ;;  %v3273_v54 = vadd.f32 %v5682_v27, %v7602_v53 }
 0xa52   : > { %v3264_v31 = vpop.f32.mrf.mxu0 }
 0xa53   : > { %6101 = verf.f32 %v3328_v33  ;;  %v3331_v47 = vmul.f32 0.70710677, %v3273_v54  ;;  %v3265_v23 = vadd.f32 %v7602_v53, %v3264_v31 }
 0xa54   : > { %6103 = verf.f32 %v3330_v2  ;;  %v5685_v11 = vpop.f32.mrf.mxu0 }
 0xa55   : > { %6105 = verf.f32 %v3331_v47  ;;  %v3329_v55 = vmul.f32 0.70710677, %v3265_v23  ;;  %v7619_v49 = vadd.f32 %v5685_v11, %v7602_v53 }
 0xa56   : > { %v3277_v4 = vpop.f32.mrf.mxu0 }
 0xa57   : > { %v6094_v42 = vpop.eup %6093  ;;  %6107 = verf.f32 %v3329_v55  ;;  %v7622_v22 = vadd.f32 %v7602_v53, %v3277_v4  ;;  %v3334_v14 = vmul.f32 0.70710677, %v7619_v49 }
 0xa58   : > { %v6096_v37 = vpop.eup %6095  ;;  %v5686_v34 = vpop.f32.mrf.mxu0  ;;  %v3356_v17 = vadd.f32 1.0, %v6094_v42 }
 0xa59   : > { %v6098_v62 = vpop.eup %6097  ;;  %v3332_v25 = vmul.f32 0.70710677, %v7622_v22  ;;  %v7627_v44 = vadd.f32 %v5686_v34, %v7602_v53  ;;  %v3358_v6 = vadd.f32 1.0, %v6096_v37  ;;  %v3315_v37 = vmul.f32 0.5, %v3273_v54 }
 0xa5a   : > { %v3359_v50 = vadd.f32 1.0, %v6098_v62  ;;  %v3280_v18 = vpop.f32.mrf.mxu0  ;;  %v3372_v59 = vmul.f32 %v3356_v17, %v3308_v45 }
 0xa5b   : > { %v6100_v43 = vpop.eup %6099  ;;  %6109 = verf.f32 %v3332_v25  ;;  %v3335_v63 = vmul.f32 0.70710677, %v7627_v44  ;;  %v3281_v61 = vadd.f32 %v7602_v53, %v3280_v18  ;;  %v3374_v30 = vmul.f32 %v3358_v6, %v3310_v26 }
 0xa5c   : > { %v3357_v0 = vadd.f32 1.0, %v6100_v43  ;;  %6111 = verf.f32 %v3334_v14  ;;  %v3375_v19 = vmul.f32 %v3359_v50, %v3311_v51  ;;  %v3312_v50 = vmul.f32 0.5, %v7612_v40 }
 0xa5d   : > { %6113 = verf.f32 %v3335_v63  ;;  %v3333_v57 = vmul.f32 0.70710677, %v3281_v61  ;;  %v5689_v10 = vpop.f32.mrf.mxu0  ;;  %v3313_v18 = vmul.f32 0.5, %v3265_v23  ;;  %v3314_v6 = vmul.f32 0.5, %v7609_v24 }
 0xa5e   : > { %v3373_v60 = vmul.f32 %v3357_v0, %v3309_v36  ;;  %v7632_v15 = vadd.f32 %v5689_v10, %v7602_v53  ;;  %v3389_v31 = vpack.c.bf16 %v3375_v19, %v3374_v30  ;;  %v3319_v24 = vmul.f32 0.5, %v7627_v44 }
 0xa5f   : > { %6115 = verf.f32 %v3333_v57  ;;  %v3293_v2 = vpop.f32.mrf.mxu0  ;;  %v3316_v30 = vmul.f32 0.5, %v7622_v22 }
 0xa60   : > { %v6102_v27 = vpop.eup %6101  ;;  %v3388_v33 = vpack.c.bf16 %v3373_v60, %v3372_v59  ;;  %v3294_v39 = vadd.f32 %v7602_v53, %v3293_v2  ;;  %v3338_v58 = vmul.f32 0.70710677, %v7632_v15  ;;  %v3317_v2 = vmul.f32 0.5, %v3281_v61 }
 0xa61   : > { %v6104_v52 = vpop.eup %6103  ;;  %v5690_v47 = vpop.f32.mrf.mxu0  ;;  %v3360_v42 = vadd.f32 1.0, %v6102_v27 }
 0xa62   : > { %v6106_v11 = vpop.eup %6105  ;;  %v3336_v55 = vmul.f32 0.70710677, %v3294_v39  ;;  %v3305_v4 = vadd.f32 %v5690_v47, %v7602_v53  ;;  %5695 = vmatprep.mubr.msk.bf16.mxu1 %vm1566_vm3, %v3388_v33  ;;  %v3362_v25 = vadd.f32 1.0, %v6104_v52  ;;  %v3318_v33 = vmul.f32 0.5, %v7619_v49 }
 0xa63   : > { %v3363_v14 = vadd.f32 1.0, %v6106_v11  ;;  %v3296_v34 = vpop.f32.mrf.mxu0  ;;  %5696 = vmatmul.mubr.msk.bf16.vlgmr.msra.gmra.mxu1 %vm1566_vm3, %v3389_v31  ;;  %v3376_v45 = vmul.f32 %v3360_v42, %v3312_v50  ;;  %v3322_v50 = vmul.f32 0.5, %v7632_v15 }
 0xa64   : > { %v6108_v62 = vpop.eup %6107  ;;  %6117 = verf.f32 %v3336_v55  ;;  %v3339_v17 = vmul.f32 0.70710677, %v3305_v4  ;;  %v3297_v51 = vadd.f32 %v7602_v53, %v3296_v34  ;;  %v3378_v26 = vmul.f32 %v3362_v25, %v3314_v6 }
 0xa65   : > { %v3361_v43 = vadd.f32 1.0, %v6108_v62  ;;  %6119 = verf.f32 %v3338_v58  ;;  %v3379_v63 = vmul.f32 %v3363_v14, %v3315_v37  ;;  %v3323_v62 = vmul.f32 0.5, %v3305_v4 }
 0xa66   : > { %6121 = verf.f32 %v3339_v17  ;;  %v3337_v54 = vmul.f32 0.70710677, %v3297_v51  ;;  %v3320_v25 = vmul.f32 0.5, %v3294_v39  ;;  %v3321_v49 = vmul.f32 0.5, %v3297_v51 }
 0xa67   : > { %v3377_v36 = vmul.f32 %v3361_v43, %v3313_v18  ;;  %v3391_v59 = vpack.c.bf16 %v3379_v63, %v3378_v26 }
 0xa68   : > { %v6110_v0 = vpop.eup %6109  ;;  %6123 = verf.f32 %v3337_v54 }
 0xa69   : > { %v6112_v19 = vpop.eup %6111  ;;  %v3390_v57 = vpack.c.bf16 %v3377_v36, %v3376_v45  ;;  %v3364_v53 = vadd.f32 1.0, %v6110_v0  ;;  %v5434_v36 = vld [vmem:[%s8436_s8 + $0x1] ss:$0 sm:$0xff] }
 0xa6a   : > { %v6114_v10 = vpop.eup %6113  ;;  %v3366_v23 = vadd.f32 1.0, %v6112_v19 }
 0xa6b   : > { %v3367_v60 = vadd.f32 1.0, %v6114_v10  ;;  %5699 = vmatprep.mubr.msk.bf16.mxu1 %vm1566_vm3, %v3390_v57  ;;  %v3380_v31 = vmul.f32 %v3364_v53, %v3316_v30 }
 0xa6c   : > { %v6116_v40 = vpop.eup %6115  ;;  %5700 = vmatmul.mubr.msk.bf16.gmra.mxu1 %vm1566_vm3, %v3391_v59  ;;  %v3382_v47 = vmul.f32 %v3366_v23, %v3318_v33 }
 0xa6d   : > { %v3365_v27 = vadd.f32 1.0, %v6116_v40  ;;  %v3383_v52 = vmul.f32 %v3367_v60, %v3319_v24 }
 0xa6f   : > { %v3381_v58 = vmul.f32 %v3365_v27, %v3317_v2  ;;  %v3393_v37 = vpack.c.bf16 %v3383_v52, %v3382_v47 }
 0xa71   : > { %v6118_v11 = vpop.eup %6117  ;;  %v3392_v55 = vpack.c.bf16 %v3381_v58, %v3380_v31 }
 0xa72   : > { %v6120_v42 = vpop.eup %6119  ;;  %v3368_v44 = vadd.f32 1.0, %v6118_v11 }
 0xa73   : > { %v6122_v14 = vpop.eup %6121  ;;  %5703 = vmatprep.mubr.msk.bf16.mxu1 %vm1566_vm3, %v3392_v55  ;;  %v3370_v61 = vadd.f32 1.0, %v6120_v42 }
 0xa74   : > { %v3371_v34 = vadd.f32 1.0, %v6122_v14  ;;  %5704 = vmatmul.mubr.msk.bf16.gmra.mxu1 %vm1566_vm3, %v3393_v37  ;;  %v3384_v43 = vmul.f32 %v3368_v44, %v3320_v25 }
 0xa75   : > { %v6124_v22 = vpop.eup %6123  ;;  %v3386_v63 = vmul.f32 %v3370_v61, %v3322_v50 }
 0xa76   : > { %v3369_v17 = vadd.f32 1.0, %v6124_v22  ;;  %v3387_v18 = vmul.f32 %v3371_v34, %v3323_v62 }
 0xa78   : > { %v3385_v6 = vmul.f32 %v3369_v17, %v3321_v49  ;;  %v3395_v45 = vpack.c.bf16 %v3387_v18, %v3386_v63 }
 0xa7a   : > { %v3394_v54 = vpack.c.bf16 %v3385_v6, %v3384_v43 }
 0xa7c   : > { %5707 = vmatprep.mubr.msk.bf16.mxu1 %vm1566_vm3, %v3394_v54 }
 0xa7d   : > { %5708 = vmatmul.mubr.msk.bf16.gmra.mxu1 %vm1566_vm3, %v3395_v45 }
 0xb23   : > { %v5697_v4 = vpop.f32.mrf.mxu1 }
 0xb24   : > { %v3488_v39 = vadd.f32 %v5697_v4, %v5434_v36 }
 0xb25   : > { %v3479_v51 = vpop.f32.mrf.mxu1 }
 0xb26   : > { %v3480_v0 = vadd.f32 %v5434_v36, %v3479_v51  ;;  %3574 = vxpose.xlu1.b32.start [1/2] (short) (narrow) %v3488_v39, 16 }
 0xb27   : > { %v5698_v15 = vpop.f32.mrf.mxu1 }
 0xb28   : > { %v3491_v26 = vadd.f32 %v5698_v15, %v5434_v36  ;;  %3542 = vxpose.xlu0.b32.start [1/2] (short) (narrow) %v3480_v0, 16 }
 0xb29   : > { %v3482_v19 = vpop.f32.mrf.mxu1 }
 0xb2a   : > { %v3483_v57 = vadd.f32 %v5434_v36, %v3482_v19  ;;  %3575 = vxpose.xlu1.b32.end [2/2] (short) (narrow) %v3491_v26, 16 }
 0xb2c   : > { %v5701_v10 = vpop.f32.mrf.mxu1  ;;  %3543 = vxpose.xlu0.b32.end [2/2] (short) (narrow) %v3483_v57, 16 }
 0xb2d   : > { %v3504_v59 = vadd.f32 %v5701_v10, %v5434_v36 }
 0xb2e   : > { %v3495_v53 = vpop.f32.mrf.mxu1 }
 0xb2f   : > { %v3496_v60 = vadd.f32 %v5434_v36, %v3495_v53  ;;  %3638 = vxpose.xlu1.b32.start [1/2] (short) (narrow) %v3504_v59, 16 }
 0xb30   : > { %v5702_v40 = vpop.f32.mrf.mxu1 }
 0xb31   : > { %v3507_v23 = vadd.f32 %v5702_v40, %v5434_v36  ;;  %3606 = vxpose.xlu0.b32.start [1/2] (short) (narrow) %v3496_v60, 16 }
 0xb32   : > { %v3498_v24 = vpop.f32.mrf.mxu1 }
 0xb33   : > { %v3499_v30 = vadd.f32 %v5434_v36, %v3498_v24  ;;  %3639 = vxpose.xlu1.b32.end [2/2] (short) (narrow) %v3507_v23, 16 }
 0xb34   : > { %v5705_v2 = vpop.f32.mrf.mxu1 }
 0xb35   : > { %v3520_v27 = vadd.f32 %v5705_v2, %v5434_v36  ;;  %3607 = vxpose.xlu0.b32.end [2/2] (short) (narrow) %v3499_v30, 16 }
 0xb36   : > { %v3511_v33 = vpop.f32.mrf.mxu1 }
 0xb37   : > { %v3512_v52 = vadd.f32 %v5434_v36, %v3511_v33  ;;  %3702 = vxpose.xlu1.b32.start [1/2] (short) (narrow) %v3520_v27, 16 }
 0xb38   : > { %v5706_v31 = vpop.f32.mrf.mxu1 }
 0xb39   : > { %v3523_v58 = vadd.f32 %v5706_v31, %v5434_v36  ;;  %3670 = vxpose.xlu0.b32.start [1/2] (short) (narrow) %v3512_v52, 16 }
 0xb3a   : > { %v3514_v47 = vpop.f32.mrf.mxu1 }
 0xb3b   : > { %v3515_v11 = vadd.f32 %v5434_v36, %v3514_v47  ;;  %3703 = vxpose.xlu1.b32.end [2/2] (short) (narrow) %v3523_v58, 16 }
 0xb3d   : > { %v5709_v55 = vpop.f32.mrf.mxu1  ;;  %3671 = vxpose.xlu0.b32.end [2/2] (short) (narrow) %v3515_v11, 16 }
 0xb3e   : > { %v3536_v42 = vadd.f32 %v5709_v55, %v5434_v36 }
 0xb3f   : > { %v3527_v37 = vpop.f32.mrf.mxu1 }
 0xb40   : > { %v3528_v14 = vadd.f32 %v5434_v36, %v3527_v37  ;;  %3766 = vxpose.xlu1.b32.start [1/2] (short) (narrow) %v3536_v42, 16 }
 0xb41   : > { %v5710_v44 = vpop.f32.mrf.mxu1 }
 0xb42   : > { %v3539_v34 = vadd.f32 %v5710_v44, %v5434_v36  ;;  %3734 = vxpose.xlu0.b32.start [1/2] (short) (narrow) %v3528_v14, 16 }
 0xb43   : > { %v3530_v22 = vpop.f32.mrf.mxu1 }
 0xb44   : > { %v3531_v61 = vadd.f32 %v5434_v36, %v3530_v22  ;;  %3767 = vxpose.xlu1.b32.end [2/2] (short) (narrow) %v3539_v34, 16 }
 0xb46   : > { %3735 = vxpose.xlu0.b32.end [2/2] (short) (narrow) %v3531_v61, 16 }
 0xba2   : > { %v3590_v62 = vpop.trf.xlu1 }
 0xba3   : > { %v7656_v49 = vadd.f32 %v3590_v62, %v7498_v16 }
 0xba4   : > { %v3558_v25 = vpop.trf.xlu0 }
 0xba5   : > { %v7659_v17 = vadd.f32 %v3558_v25, %v7495_v1  ;;  %v3816_v16 = vmul.f32 %v6468_v21, %v7656_v49 }
 0xba6   : > { %v3591_v50 = vpop.trf.xlu1 }
 0xba7   : > { %v3814_v18 = vmul.f32 %v6468_v21, %v7659_v17  ;;  %v7664_v6 = vadd.f32 %v3591_v50, %v7510_v29  ;;  %v3836_v4 = vsel %vm790_vm2, %v3816_v16, 0.0 }
 0xba8   : > { %v3559_v43 = vpop.trf.xlu0 }
 0xba9   : > { %v7667_v63 = vadd.f32 %v3559_v43, %v7507_v56  ;;  %v3830_v54 = vsel %vm790_vm2, %v3814_v18, 0.0  ;;  %v3817_v29 = vmul.f32 %v6468_v21, %v7664_v6 }
 0xbaa   : > { %3831 = vadd.xlane.f32.xlu0 %v3830_v54 }
 0xbab   : > { %v3654_v45 = vpop.trf.xlu1  ;;  %v3815_v1 = vmul.f32 %v6468_v21, %v7667_v63  ;;  %v3839_v57 = vsel %vm790_vm2, %v3817_v29, 0.0 }
 0xbac   : > { %v7679_v56 = vadd.f32 %v3654_v45, %v7522_v32 }
 0xbad   : > { %v3622_v36 = vpop.trf.xlu0  ;;  %v3833_v39 = vsel %vm790_vm2, %v3815_v1, 0.0 }
 0xbae   : > { %v7682_v51 = vadd.f32 %v3622_v36, %v7519_v41  ;;  %3837 = vadd.xlane.f32.xlu0 %v3836_v4  ;;  %3834 = vadd.xlane.f32.xlu1 %v3833_v39  ;;  %v3820_v41 = vmul.f32 %v6468_v21, %v7679_v56 }
 0xbaf   : > { %v3655_v0 = vpop.trf.xlu1 }
 0xbb0   : > { %v3818_v15 = vmul.f32 %v6468_v21, %v7682_v51  ;;  %v7687_v26 = vadd.f32 %v3655_v0, %v7534_v46  ;;  %v3848_v23 = vsel %vm790_vm2, %v3820_v41, 0.0 }
 0xbb1   : > { %v3623_v19 = vpop.trf.xlu0 }
 0xbb2   : > { %v7691_v10 = vadd.f32 %v3623_v19, %v7531_v8  ;;  %3840 = vadd.xlane.f32.xlu1 %v3839_v57  ;;  %v3842_v32 = vsel %vm790_vm2, %v3818_v15, 0.0  ;;  %v3821_v46 = vmul.f32 %v6468_v21, %v7687_v26 }
 0xbb3   : > { %v3718_v59 = vpop.trf.xlu1  ;;  %3843 = vadd.xlane.f32.xlu0 %v3842_v32 }
 0xbb4   : > { %v3819_v53 = vmul.f32 %v6468_v21, %v7691_v10  ;;  %v7701_v40 = vadd.f32 %v3718_v59, %v7546_v28  ;;  %v3851_v33 = vsel %vm790_vm2, %v3821_v46, 0.0 }
 0xbb5   : > { %v3686_v60 = vpop.trf.xlu0 }
 0xbb6   : > { %v7704_v8 = vadd.f32 %v3686_v60, %v7543_v38  ;;  %v3845_v24 = vsel %vm790_vm2, %v3819_v53, 0.0  ;;  %v3824_v31 = vmul.f32 %v6468_v21, %v7701_v40 }
 0xbb7   : > { %v3719_v30 = vpop.trf.xlu1  ;;  %3849 = vadd.xlane.f32.xlu0 %v3848_v23  ;;  %3846 = vadd.xlane.f32.xlu1 %v3845_v24 }
 0xbb8   : > { %v3822_v2 = vmul.f32 %v6468_v21, %v7704_v8  ;;  %v7712_v52 = vadd.f32 %v3719_v30, %v7558_v35  ;;  %v3860_v55 = vsel %vm790_vm2, %v3824_v31, 0.0 }
 0xbb9   : > { %v3687_v27 = vpop.trf.xlu0 }
 0xbba   : > { %v7715_v28 = vadd.f32 %v3687_v27, %v7555_v7  ;;  %v3854_v38 = vsel %vm790_vm2, %v3822_v2, 0.0  ;;  %v3825_v7 = vmul.f32 %v6468_v21, %v7712_v52 }
 0xbbb   : > { %3852 = vadd.xlane.f32.xlu1 %v3851_v33  ;;  %3855 = vadd.xlane.f32.xlu0 %v3854_v38 }
 0xbbc   : > { %v3782_v58 = vpop.trf.xlu1  ;;  %v3823_v47 = vmul.f32 %v6468_v21, %v7715_v28  ;;  %v3863_v22 = vsel %vm790_vm2, %v3825_v7, 0.0 }
 0xbbd   : > { %v7727_v42 = vadd.f32 %v3782_v58, %v7570_v9 }
 0xbbe   : > { %v3750_v11 = vpop.trf.xlu0  ;;  %v3857_v35 = vsel %vm790_vm2, %v3823_v47, 0.0 }
 0xbbf   : > { %v7730_v37 = vadd.f32 %v3750_v11, %v7567_v5  ;;  %3861 = vadd.xlane.f32.xlu0 %v3860_v55  ;;  %3858 = vadd.xlane.f32.xlu1 %v3857_v35  ;;  %v3828_v5 = vmul.f32 %v6468_v21, %v7727_v42 }
 0xbc0   : > { %v3783_v14 = vpop.trf.xlu1 }
 0xbc1   : > { %v3826_v44 = vmul.f32 %v6468_v21, %v7730_v37  ;;  %v7736_v61 = vadd.f32 %v3783_v14, %v7581_v48  ;;  %v3872_v18 = vsel %vm790_vm2, %v3828_v5, 0.0 }
 0xbc2   : > { %v3751_v34 = vpop.trf.xlu0 }
 0xbc3   : > { %v7739_v62 = vadd.f32 %v3751_v34, %v7578_v3  ;;  %3864 = vadd.xlane.f32.xlu1 %v3863_v22  ;;  %v3866_v9 = vsel %vm790_vm2, %v3826_v44, 0.0  ;;  %v3829_v50 = vmul.f32 %v6468_v21, %v7736_v61 }
 0xbc4   : > { %3867 = vadd.xlane.f32.xlu0 %v3866_v9 }
 0xbc5   : > { %v3827_v25 = vmul.f32 %v6468_v21, %v7739_v62  ;;  %v3875_v3 = vsel %vm790_vm2, %v3829_v50, 0.0 }
 0xbc7   : > { %v3869_v48 = vsel %vm790_vm2, %v3827_v25, 0.0 }
 0xbc8   : > { %3873 = vadd.xlane.f32.xlu0 %v3872_v18  ;;  %3870 = vadd.xlane.f32.xlu1 %v3869_v48 }
 0xbcc   : > { %3876 = vadd.xlane.f32.xlu1 %v3875_v3 }
 0xc33   : > { %v3832_v43 = vpop.xlane.xlu0 %3831 }
 0xc34   : > { %v3878_v54 = vmul.f32 0.071428575, %v3832_v43 }
 0xc36   : > { %v3894_v16 = vsub.f32 %v7659_v17, %v3878_v54 }
 0xc37   : > { %v3835_v45 = vpop.xlane.xlu1 %3834  ;;  %v3838_v1 = vpop.xlane.xlu0 %3837 }
 0xc38   : > { %v7753_v36 = vmul.f32 %v6468_v21, %v3894_v16  ;;  %v3879_v4 = vmul.f32 0.071428575, %v3835_v45  ;;  %v3880_v39 = vmul.f32 0.071428575, %v3838_v1  ;;  %v5929_v1 = vld [vmem:[%s8437_s9 + $0x8] sm:$0xff]  }
 0xc39   : > { %5711 = vmatprep.subr.bf16.mxu0 %v5929_v1 }
 0xc3a   : > { %v3895_v29 = vsub.f32 %v7667_v63, %v3879_v4  ;;  %v3896_v0 = vsub.f32 %v7656_v49, %v3880_v39  ;;  %v3926_v15 = vmul.f32 %v7753_v36, %v7753_v36  ;;  %5712 = vmatpush3.bf16.msra.mxu0 %v5929_v1 }
 0xc3b   : > { %v3841_v19 = vpop.xlane.xlu1 %3840  ;;  %5749 = vmatprep.subr.bf16.mxu0 %v6287_v20 }
 0xc3c   : > { %v7760_v57 = vmul.f32 %v6468_v21, %v3895_v29  ;;  %v7763_v17 = vmul.f32 %v6468_v21, %v3896_v0  ;;  %v3881_v32 = vmul.f32 0.071428575, %v3841_v19  ;;  %v3844_v41 = vpop.xlane.xlu0 %3843  ;;  %v3942_v59 = vsel %vm790_vm2, %v3926_v15, 0.0 }
 0xc3d   : > { %v3882_v53 = vmul.f32 0.071428575, %v3844_v41  ;;  %3943 = vadd.xlane.f32.xlu0 %v3942_v59 }
 0xc3e   : > { %v3897_v63 = vsub.f32 %v7664_v6, %v3881_v32  ;;  %v3927_v49 = vmul.f32 %v7760_v57, %v7760_v57  ;;  %v3928_v60 = vmul.f32 %v7763_v17, %v7763_v17 }
 0xc3f   : > { %v3898_v46 = vsub.f32 %v7682_v51, %v3882_v53 }
 0xc40   : > { %v7773_v23 = vmul.f32 %v6468_v21, %v3897_v63  ;;  %v3847_v24 = vpop.xlane.xlu1 %3846  ;;  %v3850_v30 = vpop.xlane.xlu0 %3849  ;;  %v3945_v2 = vsel %vm790_vm2, %v3927_v49, 0.0  ;;  %v3948_v27 = vsel %vm790_vm2, %v3928_v60, 0.0 }
 0xc41   : > { %v7778_v33 = vmul.f32 %v6468_v21, %v3898_v46  ;;  %v3883_v6 = vmul.f32 0.071428575, %v3847_v24  ;;  %v3884_v38 = vmul.f32 0.071428575, %v3850_v30  ;;  %3946 = vadd.xlane.f32.xlu1 %v3945_v2  ;;  %3949 = vadd.xlane.f32.xlu0 %v3948_v27 }
 0xc42   : > { %v3929_v31 = vmul.f32 %v7773_v23, %v7773_v23 }
 0xc43   : > { %v3899_v51 = vsub.f32 %v7691_v10, %v3883_v6  ;;  %v3900_v58 = vsub.f32 %v7679_v56, %v3884_v38  ;;  %v3930_v47 = vmul.f32 %v7778_v33, %v7778_v33 }
 0xc44   : > { %v3853_v11 = vpop.xlane.xlu1 %3852  ;;  %v3856_v55 = vpop.xlane.xlu0 %3855  ;;  %v3951_v35 = vsel %vm790_vm2, %v3929_v31, 0.0 }
 0xc45   : > { %v7788_v7 = vmul.f32 %v6468_v21, %v3899_v51  ;;  %v7791_v14 = vmul.f32 %v6468_v21, %v3900_v58  ;;  %v3885_v44 = vmul.f32 0.071428575, %v3853_v11  ;;  %v3886_v34 = vmul.f32 0.071428575, %v3856_v55  ;;  %3952 = vadd.xlane.f32.xlu1 %v3951_v35 }
 0xc46   : > { %v3954_v10 = vsel %vm790_vm2, %v3930_v47, 0.0 }
 0xc47   : > { %v3901_v56 = vsub.f32 %v7687_v26, %v3885_v44  ;;  %v3902_v22 = vsub.f32 %v7704_v8, %v3886_v34  ;;  %3955 = vadd.xlane.f32.xlu0 %v3954_v10  ;;  %v3931_v9 = vmul.f32 %v7788_v7, %v7788_v7  ;;  %v3932_v5 = vmul.f32 %v7791_v14, %v7791_v14 }
 0xc48   : > { %v3859_v25 = vpop.xlane.xlu1 %3858  ;;  %v3862_v50 = vpop.xlane.xlu0 %3861 }
 0xc49   : > { %v7801_v18 = vmul.f32 %v6468_v21, %v3901_v56  ;;  %v7804_v48 = vmul.f32 %v6468_v21, %v3902_v22  ;;  %v3887_v3 = vmul.f32 0.071428575, %v3859_v25  ;;  %v3888_v43 = vmul.f32 0.071428575, %v3862_v50 }
 0xc4a   : > { %v3957_v26 = vsel %vm790_vm2, %v3931_v9, 0.0  ;;  %v3960_v8 = vsel %vm790_vm2, %v3932_v5, 0.0  ;;  %v5930_v9 = vld [vmem:[%s8439_s11 + $0x18] sm:$0xff]  }
 0xc4b   : > { %v3903_v54 = vsub.f32 %v7715_v28, %v3887_v3  ;;  %v3904_v16 = vsub.f32 %v7701_v40, %v3888_v43  ;;  %3958 = vadd.xlane.f32.xlu1 %v3957_v26  ;;  %3961 = vadd.xlane.f32.xlu0 %v3960_v8  ;;  %v3933_v45 = vmul.f32 %v7801_v18, %v7801_v18 }
 0xc4c   : > { %v3865_v4 = vpop.xlane.xlu1 %3864  ;;  %v3934_v39 = vmul.f32 %v7804_v48, %v7804_v48  ;;  %5729 = vmatprep.subr.bf16.mxu1 %v5930_v9 }
 0xc4d   : > { %v7818_v29 = vmul.f32 %v6468_v21, %v3903_v54  ;;  %v7821_v28 = vmul.f32 %v6468_v21, %v3904_v16  ;;  %v3889_v40 = vmul.f32 0.071428575, %v3865_v4  ;;  %v3868_v0 = vpop.xlane.xlu0 %3867  ;;  %v3963_v15 = vsel %vm790_vm2, %v3933_v45, 0.0  ;;  %5730 = vmatpush3.bf16.msra.mxu1 %v5930_v9 }
 0xc4e   : > { %v3890_v19 = vmul.f32 0.071428575, %v3868_v0  ;;  %v3966_v32 = vsel %vm790_vm2, %v3934_v39, 0.0 }
 0xc4f   : > { %v3905_v41 = vsub.f32 %v7712_v52, %v3889_v40  ;;  %3964 = vadd.xlane.f32.xlu1 %v3963_v15  ;;  %3967 = vadd.xlane.f32.xlu0 %v3966_v32  ;;  %v3935_v59 = vmul.f32 %v7818_v29, %v7818_v29  ;;  %v3936_v53 = vmul.f32 %v7821_v28, %v7821_v28 }
 0xc50   : > { %v3906_v63 = vsub.f32 %v7730_v37, %v3890_v19 }
 0xc51   : > { %v7833_v49 = vmul.f32 %v6468_v21, %v3905_v41  ;;  %v3871_v60 = vpop.xlane.xlu1 %3870  ;;  %v3874_v46 = vpop.xlane.xlu0 %3873  ;;  %v3969_v24 = vsel %vm790_vm2, %v3935_v59, 0.0  ;;  %v3972_v52 = vsel %vm790_vm2, %v3936_v53, 0.0 }
 0xc52   : > { %v7838_v30 = vmul.f32 %v6468_v21, %v3906_v63  ;;  %v3891_v2 = vmul.f32 0.071428575, %v3871_v60  ;;  %v3892_v27 = vmul.f32 0.071428575, %v3874_v46 }
 0xc53   : > { %3970 = vadd.xlane.f32.xlu1 %v3969_v24  ;;  %3973 = vadd.xlane.f32.xlu0 %v3972_v52  ;;  %v3937_v37 = vmul.f32 %v7833_v49, %v7833_v49 }
 0xc54   : > { %v3907_v6 = vsub.f32 %v7739_v62, %v3891_v2  ;;  %v3908_v38 = vsub.f32 %v7727_v42, %v3892_v27  ;;  %v3938_v31 = vmul.f32 %v7838_v30, %v7838_v30 }
 0xc55   : > { %v3877_v51 = vpop.xlane.xlu1 %3876  ;;  %v3975_v58 = vsel %vm790_vm2, %v3937_v37, 0.0 }
 0xc56   : > { %v7848_v47 = vmul.f32 %v6468_v21, %v3907_v6  ;;  %v7851_v11 = vmul.f32 %v6468_v21, %v3908_v38  ;;  %v3893_v55 = vmul.f32 0.071428575, %v3877_v51  ;;  %v3978_v35 = vsel %vm790_vm2, %v3938_v31, 0.0 }
 0xc57   : > { %3976 = vadd.xlane.f32.xlu1 %v3975_v58  ;;  %3979 = vadd.xlane.f32.xlu0 %v3978_v35 }
 0xc58   : > { %v3909_v62 = vsub.f32 %v7736_v61, %v3893_v55  ;;  %v3939_v42 = vmul.f32 %v7848_v47, %v7848_v47  ;;  %v3940_v44 = vmul.f32 %v7851_v11, %v7851_v11 }
 0xc5a   : > { %v7860_v34 = vmul.f32 %v6468_v21, %v3909_v62  ;;  %v3981_v10 = vsel %vm790_vm2, %v3939_v42, 0.0  ;;  %v3984_v56 = vsel %vm790_vm2, %v3940_v44, 0.0  ;;  %v7876_v42 = vld [vmem:[%s8431_s3 + $0x1] ss:$0 sm:$0xff] }
 0xc5b   : > { %3982 = vadd.xlane.f32.xlu1 %v3981_v10  ;;  %3985 = vadd.xlane.f32.xlu0 %v3984_v56 }
 0xc5c   : > { %v3941_v22 = vmul.f32 %v7860_v34, %v7860_v34 }
 0xc5e   : > { %v3987_v61 = vsel %vm790_vm2, %v3941_v22, 0.0 }
 0xc5f   : > { %3988 = vadd.xlane.f32.xlu1 %v3987_v61 }
 0xcc6   : > { %v3944_v5 = vpop.xlane.xlu0 %3943 }
 0xcc7   : > { %v3990_v25 = vmul.f32 0.071428575, %v3944_v5 }
 0xcc9   : > { %v4006_v50 = vadd.f32 1e-05, %v3990_v25 }
 0xcca   : > { %v3947_v3 = vpop.xlane.xlu1 %3946  ;;  %v3950_v43 = vpop.xlane.xlu0 %3949 }
 0xccb   : > { %6125 = vrsqrt.f32 %v4006_v50  ;;  %v3991_v26 = vmul.f32 0.071428575, %v3947_v3  ;;  %v3992_v8 = vmul.f32 0.071428575, %v3950_v43  ;;  %v7885_v3 = vld [vmem:[%s8432_s4 + $0x1] ss:$0 sm:$0xff] }
 0xccd   : > { %v4007_v54 = vadd.f32 1e-05, %v3991_v26  ;;  %v4008_v16 = vadd.f32 1e-05, %v3992_v8 }
 0xcce   : > { %v3953_v45 = vpop.xlane.xlu1 %3952 }
 0xccf   : > { %6127 = vrsqrt.f32 %v4007_v54  ;;  %v3993_v1 = vmul.f32 0.071428575, %v3953_v45 }
 0xcd0   : > { %6129 = vrsqrt.f32 %v4008_v16  ;;  %v3956_v4 = vpop.xlane.xlu0 %3955 }
 0xcd1   : > { %v4009_v39 = vadd.f32 1e-05, %v3993_v1  ;;  %v3994_v40 = vmul.f32 0.071428575, %v3956_v4 }
 0xcd3   : > { %6131 = vrsqrt.f32 %v4009_v39  ;;  %v4010_v0 = vadd.f32 1e-05, %v3994_v40 }
 0xcd4   : > { %v3959_v15 = vpop.xlane.xlu1 %3958  ;;  %v3962_v19 = vpop.xlane.xlu0 %3961 }
 0xcd5   : > { %6133 = vrsqrt.f32 %v4010_v0  ;;  %v3995_v32 = vmul.f32 0.071428575, %v3959_v15  ;;  %v3996_v41 = vmul.f32 0.071428575, %v3962_v19 }
 0xcd7   : > { %v4011_v59 = vadd.f32 1e-05, %v3995_v32  ;;  %v4012_v53 = vadd.f32 1e-05, %v3996_v41 }
 0xcd8   : > { %v6126_v63 = vpop.eup %6125  ;;  %v3965_v60 = vpop.xlane.xlu1 %3964 }
 0xcd9   : > { %v3968_v46 = vpop.xlane.xlu0 %3967  ;;  %6135 = vrsqrt.f32 %v4011_v59  ;;  %v3997_v24 = vmul.f32 0.071428575, %v3965_v60  ;;  %v4038_v2 = vmul.f32 %v6126_v63, %v7753_v36 }
 0xcda   : > { %v3998_v52 = vmul.f32 0.071428575, %v3968_v46  ;;  %6137 = vrsqrt.f32 %v4012_v53 }
 0xcdb   : > { %v4013_v27 = vadd.f32 1e-05, %v3997_v24  ;;  %v4054_v36 = vmul.f32 %v7876_v42, %v4038_v2 }
 0xcdc   : > { %v4014_v37 = vadd.f32 1e-05, %v3998_v52  ;;  %v6128_v6 = vpop.eup %6127  ;;  %v3971_v38 = vpop.xlane.xlu1 %3970 }
 0xcdd   : > { %v3974_v31 = vpop.xlane.xlu0 %3973  ;;  %v6130_v51 = vpop.eup %6129  ;;  %6139 = vrsqrt.f32 %v4013_v27  ;;  %v3999_v58 = vmul.f32 0.071428575, %v3971_v38  ;;  %v4039_v35 = vmul.f32 %v6128_v6, %v7760_v57  ;;  %v7888_v43 = vadd.f32 %v7885_v3, %v4054_v36 }
 0xcde   : > { %v4000_v55 = vmul.f32 0.071428575, %v3974_v31  ;;  %v4040_v62 = vmul.f32 %v6130_v51, %v7763_v17  ;;  %6141 = vrsqrt.f32 %v4014_v37 }
 0xcdf   : > { %v4015_v44 = vadd.f32 1e-05, %v3999_v58  ;;  %v4055_v56 = vmul.f32 %v7876_v42, %v4039_v35 }
 0xce0   : > { %v4016_v10 = vadd.f32 1e-05, %v4000_v55  ;;  %v6132_v22 = vpop.eup %6131  ;;  %v4056_v61 = vmul.f32 %v7876_v42, %v4040_v62  ;;  %v3977_v9 = vpop.xlane.xlu1 %3976 }
 0xce1   : > { %v3980_v5 = vpop.xlane.xlu0 %3979  ;;  %v4041_v57 = vmul.f32 %v6132_v22, %v7773_v23  ;;  %6143 = vrsqrt.f32 %v4015_v44  ;;  %v4001_v17 = vmul.f32 0.071428575, %v3977_v9  ;;  %v7891_v26 = vadd.f32 %v7885_v3, %v4055_v56 }
 0xce2   : > { %v4002_v25 = vmul.f32 0.071428575, %v3980_v5  ;;  %v6134_v50 = vpop.eup %6133  ;;  %6145 = vrsqrt.f32 %v4016_v10  ;;  %v7898_v39 = vadd.f32 %v7885_v3, %v4056_v61 }
 0xce3   : > { %v4057_v8 = vmul.f32 %v7876_v42, %v4041_v57  ;;  %v4017_v54 = vadd.f32 1e-05, %v4001_v17  ;;  %v4042_v16 = vmul.f32 %v6134_v50, %v7778_v33  ;;  %v4086_v4 = vpack.c.bf16 %v7891_v26, %v7888_v43 }
 0xce4   : > { %v4018_v23 = vadd.f32 1e-05, %v4002_v25  ;;  %v3983_v45 = vpop.xlane.xlu1 %3982 }
 0xce5   : > { %v3986_v1 = vpop.xlane.xlu0 %3985  ;;  %6147 = vrsqrt.f32 %v4017_v54  ;;  %v4003_v40 = vmul.f32 0.071428575, %v3983_v45  ;;  %v7901_v15 = vadd.f32 %v7885_v3, %v4057_v8  ;;  %5713 = vmatprep.mubr.msk.bf16.mxu0 %vm790_vm2, %v4086_v4  ;;  %v4058_v33 = vmul.f32 %v7876_v42, %v4042_v16 }
 0xce6   : > { %v4004_v0 = vmul.f32 0.071428575, %v3986_v1  ;;  %v6136_v19 = vpop.eup %6135  ;;  %6149 = vrsqrt.f32 %v4018_v23 }
 0xce7   : > { %v6138_v32 = vpop.eup %6137  ;;  %v4019_v41 = vadd.f32 1e-05, %v4003_v40  ;;  %v4087_v53 = vpack.c.bf16 %v7901_v15, %v7898_v39  ;;  %v4043_v63 = vmul.f32 %v6136_v19, %v7788_v7  ;;  %v7912_v27 = vadd.f32 %v7885_v3, %v4058_v33 }
 0xce8   : > { %v4020_v59 = vadd.f32 1e-05, %v4004_v0  ;;  %v3989_v60 = vpop.xlane.xlu1 %3988  ;;  %v4044_v46 = vmul.f32 %v6138_v32, %v7791_v14 }
 0xce9   : > { %6151 = vrsqrt.f32 %v4019_v41  ;;  %v4005_v24 = vmul.f32 0.071428575, %v3989_v60  ;;  %5714 = vmatmul.mubr.msk.bf16.vlgmr.msra.gmra.mxu0 %vm790_vm2, %v4087_v53  ;;  %v4059_v52 = vmul.f32 %v7876_v42, %v4043_v63 }
 0xcea   : > { %v6140_v2 = vpop.eup %6139  ;;  %6153 = vrsqrt.f32 %v4020_v59  ;;  %v4060_v14 = vmul.f32 %v7876_v42, %v4044_v46 }
 0xceb   : > { %v6142_v37 = vpop.eup %6141  ;;  %v4021_v6 = vadd.f32 1e-05, %v4005_v24  ;;  %v7915_v38 = vadd.f32 %v7885_v3, %v4059_v52  ;;  %v4045_v7 = vmul.f32 %v6140_v2, %v7801_v18 }
 0xcec   : > { %v4046_v31 = vmul.f32 %v6142_v37, %v7804_v48  ;;  %v7925_v62 = vadd.f32 %v7885_v3, %v4060_v14 }
 0xced   : > { %6155 = vrsqrt.f32 %v4021_v6  ;;  %v4088_v51 = vpack.c.bf16 %v7915_v38, %v7912_v27  ;;  %v4061_v58 = vmul.f32 %v7876_v42, %v4045_v7 }
 0xcee   : > { %v6144_v55 = vpop.eup %6143  ;;  %v4062_v48 = vmul.f32 %v7876_v42, %v4046_v31 }
 0xcef   : > { %v6146_v35 = vpop.eup %6145  ;;  %5717 = vmatprep.mubr.msk.bf16.mxu0 %vm790_vm2, %v4088_v51  ;;  %v7928_v36 = vadd.f32 %v7885_v3, %v4061_v58  ;;  %v4047_v18 = vmul.f32 %v6144_v55, %v7818_v29 }
 0xcf0   : > { %v4048_v44 = vmul.f32 %v6146_v35, %v7821_v28  ;;  %v7938_v9 = vadd.f32 %v7885_v3, %v4062_v48 }
 0xcf1   : > { %v4089_v10 = vpack.c.bf16 %v7928_v36, %v7925_v62  ;;  %v4063_v56 = vmul.f32 %v7876_v42, %v4047_v18 }
 0xcf2   : > { %v6148_v22 = vpop.eup %6147  ;;  %v4064_v57 = vmul.f32 %v7876_v42, %v4048_v44 }
 0xcf3   : > { %v6150_v61 = vpop.eup %6149  ;;  %5718 = vmatmul.mubr.msk.bf16.gmra.mxu0 %vm790_vm2, %v4089_v10  ;;  %v7941_v5 = vadd.f32 %v7885_v3, %v4063_v56  ;;  %v4049_v29 = vmul.f32 %v6148_v22, %v7833_v49 }
 0xcf4   : > { %v4050_v28 = vmul.f32 %v6150_v61, %v7838_v30  ;;  %v7951_v54 = vadd.f32 %v7885_v3, %v4064_v57 }
 0xcf5   : > { %v4090_v17 = vpack.c.bf16 %v7941_v5, %v7938_v9  ;;  %v4065_v25 = vmul.f32 %v7876_v42, %v4049_v29 }
 0xcf6   : > { %v6152_v50 = vpop.eup %6151  ;;  %v4066_v16 = vmul.f32 %v7876_v42, %v4050_v28 }
 0xcf7   : > { %v6154_v8 = vpop.eup %6153  ;;  %5721 = vmatprep.mubr.msk.bf16.mxu0 %vm790_vm2, %v4090_v17  ;;  %v7954_v23 = vadd.f32 %v7885_v3, %v4065_v25  ;;  %v4051_v49 = vmul.f32 %v6152_v50, %v7848_v47 }
 0xcf8   : > { %v4052_v30 = vmul.f32 %v6154_v8, %v7851_v11  ;;  %v7964_v40 = vadd.f32 %v7885_v3, %v4066_v16 }
 0xcf9   : > { %v4091_v45 = vpack.c.bf16 %v7954_v23, %v7951_v54  ;;  %v4067_v1 = vmul.f32 %v7876_v42, %v4051_v49 }
 0xcfa   : > { %v6156_v4 = vpop.eup %6155  ;;  %v4068_v19 = vmul.f32 %v7876_v42, %v4052_v30 }
 0xcfb   : > { %5722 = vmatmul.mubr.msk.bf16.gmra.mxu0 %vm790_vm2, %v4091_v45  ;;  %v7967_v0 = vadd.f32 %v7885_v3, %v4067_v1  ;;  %v4053_v47 = vmul.f32 %v6156_v4, %v7860_v34  ;;  %v5931_v34 = vld [vmem:[%s8439_s11 + $0x10] sm:$0xff]  }
 0xcfc   : > { %v7976_v32 = vadd.f32 %v7885_v3, %v4068_v19  ;;  %5731 = vmatprep.subr.bf16.mxu1 %v5931_v34 }
 0xcfd   : > { %v4092_v11 = vpack.c.bf16 %v7967_v0, %v7964_v40  ;;  %v4069_v33 = vmul.f32 %v7876_v42, %v4053_v47  ;;  %5732 = vmatpush3.bf16.msra.mxu1 %v5931_v34  ;;  %v7990_v42 = vld [vmem:[%s8438_s10 + $0x1] ss:$0 sm:$0xff] }
 0xcff   : > { %5725 = vmatprep.mubr.msk.bf16.mxu0 %vm790_vm2, %v4092_v11  ;;  %v7979_v41 = vadd.f32 %v7885_v3, %v4069_v33 }
 0xd01   : > { %v4093_v59 = vpack.c.bf16 %v7979_v41, %v7976_v32 }
 0xd03   : > { %5726 = vmatmul.mubr.msk.bf16.gmra.mxu0 %vm790_vm2, %v4093_v59 }
 0xd04   : > { %5751 = vmatprep.mubr.msk.bf16.mxu0 %vm6288_vm4, %v6287_v20 }
 0xda9   : > { %v5715_v53 = vpop.f32.mrf.mxu0 }
 0xdaa   : > { %v4178_v3 = vadd.f32 %v5715_v53, %v7990_v42 }
 0xdab   : > { %v4169_v63 = vpop.f32.mrf.mxu0 }
 0xdac   : > { %v4170_v60 = vadd.f32 %v7990_v42, %v4169_v63  ;;  %v4250_v46 = vmul.f32 0.70710677, %v4178_v3 }
 0xdad   : > { %v5716_v24 = vpop.f32.mrf.mxu0 }
 0xdae   : > { %v4248_v52 = vmul.f32 0.70710677, %v4170_v60  ;;  %v4181_v2 = vadd.f32 %v5716_v24, %v7990_v42  ;;  %v4232_v19 = vmul.f32 0.5, %v4170_v60 }
 0xdaf   : > { %v4172_v37 = vpop.f32.mrf.mxu0 }
 0xdb0   : > { %6157 = verf.f32 %v4248_v52  ;;  %v4251_v6 = vmul.f32 0.70710677, %v4181_v2  ;;  %v4173_v7 = vadd.f32 %v7990_v42, %v4172_v37  ;;  %v4235_v11 = vmul.f32 0.5, %v4181_v2 }
 0xdb1   : > { %6159 = verf.f32 %v4250_v46  ;;  %v4234_v46 = vmul.f32 0.5, %v4178_v3 }
 0xdb2   : > { %6161 = verf.f32 %v4251_v6  ;;  %v4249_v14 = vmul.f32 0.70710677, %v4173_v7  ;;  %v4233_v34 = vmul.f32 0.5, %v4173_v7 }
 0xdb3   : > { %v5719_v31 = vpop.f32.mrf.mxu0 }
 0xdb4   : > { %6163 = verf.f32 %v4249_v14  ;;  %v7997_v51 = vadd.f32 %v5719_v31, %v7990_v42 }
 0xdb5   : > { %v4185_v58 = vpop.f32.mrf.mxu0 }
 0xdb6   : > { %v8000_v55 = vadd.f32 %v7990_v42, %v4185_v58  ;;  %v4254_v35 = vmul.f32 0.70710677, %v7997_v51 }
 0xdb7   : > { %v5720_v18 = vpop.f32.mrf.mxu0 }
 0xdb8   : > { %v4252_v48 = vmul.f32 0.70710677, %v8000_v55  ;;  %v4197_v44 = vadd.f32 %v5720_v18, %v7990_v42 }
 0xdb9   : > { %v4188_v10 = vpop.f32.mrf.mxu0 }
 0xdba   : > { %6165 = verf.f32 %v4252_v48  ;;  %v4255_v56 = vmul.f32 0.70710677, %v4197_v44  ;;  %v4189_v22 = vadd.f32 %v7990_v42, %v4188_v10 }
 0xdbb   : > { %6167 = verf.f32 %v4254_v35  ;;  %v5723_v61 = vpop.f32.mrf.mxu0 }
 0xdbc   : > { %6169 = verf.f32 %v4255_v56  ;;  %v4253_v29 = vmul.f32 0.70710677, %v4189_v22  ;;  %v8007_v28 = vadd.f32 %v5723_v61, %v7990_v42 }
 0xdbd   : > { %v6158_v57 = vpop.eup %6157  ;;  %v4201_v17 = vpop.f32.mrf.mxu0 }
 0xdbe   : > { %v6160_v25 = vpop.eup %6159  ;;  %6171 = verf.f32 %v4253_v29  ;;  %v8010_v50 = vadd.f32 %v7990_v42, %v4201_v17  ;;  %v4258_v49 = vmul.f32 0.70710677, %v8007_v28  ;;  %v4280_v30 = vadd.f32 1.0, %v6158_v57 }
 0xdbf   : > { %v6162_v8 = vpop.eup %6161  ;;  %v5724_v16 = vpop.f32.mrf.mxu0  ;;  %v4282_v47 = vadd.f32 1.0, %v6160_v25 }
 0xdc0   : > { %v4283_v45 = vadd.f32 1.0, %v6162_v8  ;;  %v4256_v1 = vmul.f32 0.70710677, %v8010_v50  ;;  %v4213_v33 = vadd.f32 %v5724_v16, %v7990_v42  ;;  %v4296_v6 = vmul.f32 %v4280_v30, %v4232_v19 }
 0xdc1   : > { %v6164_v4 = vpop.eup %6163  ;;  %v4204_v59 = vpop.f32.mrf.mxu0  ;;  %v4298_v58 = vmul.f32 %v4282_v47, %v4234_v46  ;;  %v4237_v47 = vmul.f32 0.5, %v4189_v22 }
 0xdc2   : > { %v4281_v53 = vadd.f32 1.0, %v6164_v4  ;;  %6173 = verf.f32 %v4256_v1  ;;  %v4205_v63 = vadd.f32 %v7990_v42, %v4204_v59  ;;  %v4299_v24 = vmul.f32 %v4283_v45, %v4235_v11 }
 0xdc3   : > { %6175 = verf.f32 %v4258_v49  ;;  %v4259_v52 = vmul.f32 0.70710677, %v4213_v33  ;;  %v5727_v37 = vpop.f32.mrf.mxu0  ;;  %v4239_v45 = vmul.f32 0.5, %v4197_v44  ;;  %v4236_v4 = vmul.f32 0.5, %v8000_v55 }
 0xdc4   : > { %v4297_v14 = vmul.f32 %v4281_v53, %v4233_v34  ;;  %v4257_v31 = vmul.f32 0.70710677, %v4205_v63  ;;  %v8017_v60 = vadd.f32 %v5727_v37, %v7990_v42  ;;  %v4313_v3 = vpack.c.bf16 %v4299_v24, %v4298_v58 }
 0xdc5   : > { %6177 = verf.f32 %v4259_v52  ;;  %v4217_v2 = vpop.f32.mrf.mxu0  ;;  %v4238_v59 = vmul.f32 0.5, %v7997_v51  ;;  %v4240_v51 = vmul.f32 0.5, %v8010_v50 }
 0xdc6   : > { %v4312_v35 = vpack.c.bf16 %v4297_v14, %v4296_v6  ;;  %6179 = verf.f32 %v4257_v31  ;;  %v8020_v7 = vadd.f32 %v7990_v42, %v4217_v2  ;;  %v4262_v48 = vmul.f32 0.70710677, %v8017_v60 }
 0xdc7   : > { %v6166_v18 = vpop.eup %6165  ;;  %v5728_v10 = vpop.f32.mrf.mxu0  ;;  %v4243_v31 = vmul.f32 0.5, %v4213_v33  ;;  %v4241_v2 = vmul.f32 0.5, %v4205_v63 }
 0xdc8   : > { %v6168_v56 = vpop.eup %6167  ;;  %v4260_v61 = vmul.f32 0.70710677, %v8020_v7  ;;  %5733 = vmatprep.mubr.msk.bf16.mxu1 %vm1566_vm3, %v4312_v35  ;;  %v4229_v57 = vadd.f32 %v5728_v10, %v7990_v42  ;;  %v4284_v25 = vadd.f32 1.0, %v6166_v18  ;;  %v4242_v18 = vmul.f32 0.5, %v8007_v28 }
 0xdc9   : > { %v6170_v29 = vpop.eup %6169  ;;  %v4220_v17 = vpop.f32.mrf.mxu0  ;;  %5734 = vmatmul.mubr.msk.bf16.vlgmr.msra.gmra.mxu1 %vm1566_vm3, %v4313_v3  ;;  %v4286_v30 = vadd.f32 1.0, %v6168_v56  ;;  %v4244_v28 = vmul.f32 0.5, %v8020_v7 }
 0xdca   : > { %v4287_v8 = vadd.f32 1.0, %v6170_v29  ;;  %6181 = verf.f32 %v4260_v61  ;;  %v4221_v49 = vadd.f32 %v7990_v42, %v4220_v17  ;;  %v4263_v1 = vmul.f32 0.70710677, %v4229_v57 }
 0xdcb   : > { %v6172_v16 = vpop.eup %6171  ;;  %6183 = verf.f32 %v4262_v48  ;;  %v4300_v53 = vmul.f32 %v4284_v25, %v4236_v4  ;;  %v4302_v52 = vmul.f32 %v4286_v30, %v4238_v59  ;;  %v4246_v4 = vmul.f32 0.5, %v8017_v60 }
 0xdcc   : > { %v4285_v19 = vadd.f32 1.0, %v6172_v16  ;;  %v4261_v11 = vmul.f32 0.70710677, %v4221_v49  ;;  %v4303_v34 = vmul.f32 %v4287_v8, %v4239_v45  ;;  %6185 = verf.f32 %v4263_v1 }
 0xdcd   : > { %v4247_v45 = vmul.f32 0.5, %v4229_v57  ;;  %v4245_v63 = vmul.f32 0.5, %v4221_v49  ;;  %v8043_v57 = vld [vmem:[%s8440_s12 + $0x1] ss:$0 sm:$0xff] }
 0xdce   : > { %v4301_v46 = vmul.f32 %v4285_v19, %v4237_v47  ;;  %6187 = verf.f32 %v4261_v11  ;;  %v4315_v6 = vpack.c.bf16 %v4303_v34, %v4302_v52 }
 0xdcf   : > { %v6174_v24 = vpop.eup %6173 }
 0xdd0   : > { %v6176_v42 = vpop.eup %6175  ;;  %v4314_v37 = vpack.c.bf16 %v4301_v46, %v4300_v53  ;;  %v4288_v14 = vadd.f32 1.0, %v6174_v24 }
 0xdd1   : > { %v4290_v22 = vadd.f32 1.0, %v6176_v42 }
 0xdd2   : > { %v6178_v44 = vpop.eup %6177  ;;  %5737 = vmatprep.mubr.msk.bf16.mxu1 %vm1566_vm3, %v4314_v37  ;;  %v4304_v48 = vmul.f32 %v4288_v14, %v4240_v51 }
 0xdd3   : > { %v6180_v55 = vpop.eup %6179  ;;  %v4291_v58 = vadd.f32 1.0, %v6178_v44  ;;  %5738 = vmatmul.mubr.msk.bf16.gmra.mxu1 %vm1566_vm3, %v4315_v6  ;;  %v4306_v61 = vmul.f32 %v4290_v22, %v4242_v18 }
 0xdd4   : > { %v4289_v35 = vadd.f32 1.0, %v6180_v55 }
 0xdd5   : > { %v4307_v3 = vmul.f32 %v4291_v58, %v4243_v31 }
 0xdd6   : > { %v4305_v10 = vmul.f32 %v4289_v35, %v4241_v2 }
 0xdd7   : > { %v6182_v56 = vpop.eup %6181  ;;  %v4317_v25 = vpack.c.bf16 %v4307_v3, %v4306_v61 }
 0xdd8   : > { %v6184_v29 = vpop.eup %6183  ;;  %v4316_v17 = vpack.c.bf16 %v4305_v10, %v4304_v48  ;;  %v4292_v16 = vadd.f32 1.0, %v6182_v56 }
 0xdd9   : > { %v6186_v8 = vpop.eup %6185  ;;  %v4294_v30 = vadd.f32 1.0, %v6184_v29 }
 0xdda   : > { %5741 = vmatprep.mubr.msk.bf16.mxu1 %vm1566_vm3, %v4316_v17  ;;  %v4295_v50 = vadd.f32 1.0, %v6186_v8  ;;  %v4308_v19 = vmul.f32 %v4292_v16, %v4244_v28 }
 0xddb   : > { %v6188_v33 = vpop.eup %6187  ;;  %5742 = vmatmul.mubr.msk.bf16.gmra.mxu1 %vm1566_vm3, %v4317_v25  ;;  %v4310_v59 = vmul.f32 %v4294_v30, %v4246_v4 }
 0xddc   : > { %v4293_v1 = vadd.f32 1.0, %v6188_v33  ;;  %v4311_v47 = vmul.f32 %v4295_v50, %v4247_v45 }
 0xdde   : > { %v4309_v11 = vmul.f32 %v4293_v1, %v4245_v63  ;;  %v4319_v53 = vpack.c.bf16 %v4311_v47, %v4310_v59 }
 0xde0   : > { %v4318_v34 = vpack.c.bf16 %v4309_v11, %v4308_v19 }
 0xde2   : > { %5745 = vmatprep.mubr.msk.bf16.mxu1 %vm1566_vm3, %v4318_v34 }
 0xde3   : > { %5746 = vmatmul.mubr.msk.bf16.gmra.mxu1 %vm1566_vm3, %v4319_v53 }
 0xe89   : > { %v5735_v7 = vpop.f32.mrf.mxu1 }
 0xe8a   : > { %v4412_v49 = vadd.f32 %v5735_v7, %v8043_v57 }
 0xe8b   : > { %v4403_v46 = vpop.f32.mrf.mxu1 }
 0xe8c   : > { %v8047_v60 = vadd.f32 %v4412_v49, %v7898_v39  ;;  %v4404_v24 = vadd.f32 %v8043_v57, %v4403_v46 }
 0xe8d   : > { %v5736_v52 = vpop.f32.mrf.mxu1 }
 0xe8e   : > { %v8051_v42 = vadd.f32 %v4404_v24, %v7888_v43  ;;  %v4415_v37 = vadd.f32 %v5736_v52, %v8043_v57  ;;  %v4486_v6 = vmul.f32 %v6468_v21, %v8047_v60 }
 0xe8f   : > { %v4406_v44 = vpop.f32.mrf.mxu1 }
 0xe90   : > { %v8057_v14 = vadd.f32 %v4415_v37, %v7901_v15  ;;  %v4407_v55 = vadd.f32 %v8043_v57, %v4406_v44  ;;  %v4506_v39 = vsel %vm790_vm2, %v4486_v6, 0.0  ;;  %v4484_v22 = vmul.f32 %v6468_v21, %v8051_v42 }
 0xe91   : > { %4507 = vadd.xlane.f32.xlu1 %v4506_v39 }
 0xe92   : > { %v8064_v43 = vadd.f32 %v4407_v55, %v7891_v26  ;;  %v4500_v31 = vsel %vm790_vm2, %v4484_v22, 0.0  ;;  %v4487_v58 = vmul.f32 %v6468_v21, %v8057_v14 }
 0xe93   : > { %v5739_v51 = vpop.f32.mrf.mxu1  ;;  %4501 = vadd.xlane.f32.xlu0 %v4500_v31 }
 0xe94   : > { %v4428_v15 = vadd.f32 %v5739_v51, %v8043_v57  ;;  %v4485_v2 = vmul.f32 %v6468_v21, %v8064_v43  ;;  %v4509_v48 = vsel %vm790_vm2, %v4487_v58, 0.0 }
 0xe95   : > { %v4419_v35 = vpop.f32.mrf.mxu1 }
 0xe96   : > { %v8073_v18 = vadd.f32 %v4428_v15, %v7925_v62  ;;  %v4420_v3 = vadd.f32 %v8043_v57, %v4419_v35  ;;  %v4503_v26 = vsel %vm790_vm2, %v4485_v2, 0.0 }
 0xe97   : > { %v5740_v10 = vpop.f32.mrf.mxu1  ;;  %4504 = vadd.xlane.f32.xlu1 %v4503_v26  ;;  %4510 = vadd.xlane.f32.xlu0 %v4509_v48 }
 0xe98   : > { %v8079_v56 = vadd.f32 %v4420_v3, %v7912_v27  ;;  %v4431_v61 = vadd.f32 %v5740_v10, %v8043_v57  ;;  %v4490_v29 = vmul.f32 %v6468_v21, %v8073_v18 }
 0xe99   : > { %v4422_v17 = vpop.f32.mrf.mxu1 }
 0xe9a   : > { %v8085_v62 = vadd.f32 %v4431_v61, %v7928_v36  ;;  %v4423_v25 = vadd.f32 %v8043_v57, %v4422_v17  ;;  %v4518_v8 = vsel %vm790_vm2, %v4490_v29, 0.0  ;;  %v4488_v16 = vmul.f32 %v6468_v21, %v8079_v56 }
 0xe9b   : > { %v5743_v33 = vpop.f32.mrf.mxu1  ;;  %4519 = vadd.xlane.f32.xlu1 %v4518_v8 }
 0xe9c   : > { %v8092_v27 = vadd.f32 %v4423_v25, %v7915_v38  ;;  %v4444_v30 = vadd.f32 %v5743_v33, %v8043_v57  ;;  %v4512_v45 = vsel %vm790_vm2, %v4488_v16, 0.0  ;;  %v4491_v36 = vmul.f32 %v6468_v21, %v8085_v62 }
 0xe9d   : > { %4513 = vadd.xlane.f32.xlu0 %v4512_v45  ;;  %v4435_v50 = vpop.f32.mrf.mxu1 }
 0xe9e   : > { %v8099_v28 = vadd.f32 %v4444_v30, %v7951_v54  ;;  %v4436_v63 = vadd.f32 %v8043_v57, %v4435_v50  ;;  %v4521_v4 = vsel %vm790_vm2, %v4491_v36, 0.0  ;;  %v4489_v11 = vmul.f32 %v6468_v21, %v8092_v27 }
 0xe9f   : > { %v5744_v1 = vpop.f32.mrf.mxu1 }
 0xea0   : > { %v8104_v38 = vadd.f32 %v4436_v63, %v7938_v9  ;;  %v4447_v47 = vadd.f32 %v5744_v1, %v8043_v57  ;;  %v4494_v19 = vmul.f32 %v6468_v21, %v8099_v28  ;;  %v4515_v24 = vsel %vm790_vm2, %v4489_v11, 0.0 }
 0xea1   : > { %4522 = vadd.xlane.f32.xlu0 %v4521_v4  ;;  %v4438_v59 = vpop.f32.mrf.mxu1 }
 0xea2   : > { %v8112_v54 = vadd.f32 %v4447_v47, %v7954_v23  ;;  %v4439_v34 = vadd.f32 %v8043_v57, %v4438_v59  ;;  %v4530_v53 = vsel %vm790_vm2, %v4494_v19, 0.0  ;;  %v4492_v9 = vmul.f32 %v6468_v21, %v8104_v38 }
 0xea3   : > { %4531 = vadd.xlane.f32.xlu1 %v4530_v53  ;;  %v5747_v7 = vpop.f32.mrf.mxu1 }
 0xea4   : > { %v8119_v49 = vadd.f32 %v4439_v34, %v7941_v5  ;;  %v4460_v46 = vadd.f32 %v5747_v7, %v8043_v57  ;;  %v4495_v23 = vmul.f32 %v6468_v21, %v8112_v54  ;;  %v4524_v44 = vsel %vm790_vm2, %v4492_v9, 0.0 }
 0xea5   : > { %4516 = vadd.xlane.f32.xlu0 %v4515_v24  ;;  %v4451_v52 = vpop.f32.mrf.mxu1 }
 0xea6   : > { %v8126_v37 = vadd.f32 %v4460_v46, %v7976_v32  ;;  %v4452_v6 = vadd.f32 %v8043_v57, %v4451_v52  ;;  %v4533_v5 = vsel %vm790_vm2, %v4495_v23, 0.0  ;;  %v4493_v32 = vmul.f32 %v6468_v21, %v8119_v49 }
 0xea7   : > { %4525 = vadd.xlane.f32.xlu1 %v4524_v44  ;;  %v5748_v55 = vpop.f32.mrf.mxu1 }
 0xea8   : > { %v8132_v39 = vadd.f32 %v4452_v6, %v7964_v40  ;;  %v4463_v22 = vadd.f32 %v5748_v55, %v8043_v57  ;;  %v4498_v31 = vmul.f32 %v6468_v21, %v8126_v37  ;;  %v4527_v3 = vsel %vm790_vm2, %v4493_v32, 0.0 }
 0xea9   : > { %4534 = vadd.xlane.f32.xlu0 %v4533_v5  ;;  %v4454_v58 = vpop.f32.mrf.mxu1 }
 0xeaa   : > { %v8140_v51 = vadd.f32 %v4463_v22, %v7979_v41  ;;  %v4455_v15 = vadd.f32 %v8043_v57, %v4454_v58  ;;  %v4542_v2 = vsel %vm790_vm2, %v4498_v31, 0.0  ;;  %v4496_v40 = vmul.f32 %v6468_v21, %v8132_v39 }
 0xeab   : > { %4543 = vadd.xlane.f32.xlu1 %v4542_v2 }
 0xeac   : > { %v8147_v35 = vadd.f32 %v4455_v15, %v7967_v0  ;;  %v4536_v26 = vsel %vm790_vm2, %v4496_v40, 0.0  ;;  %v4499_v57 = vmul.f32 %v6468_v21, %v8140_v51 }
 0xead   : > { %4528 = vadd.xlane.f32.xlu0 %v4527_v3 }
 0xeae   : > { %v4497_v41 = vmul.f32 %v6468_v21, %v8147_v35  ;;  %v4545_v10 = vsel %vm790_vm2, %v4499_v57, 0.0 }
 0xeaf   : > { %4537 = vadd.xlane.f32.xlu1 %v4536_v26 }
 0xeb0   : > { %v4539_v48 = vsel %vm790_vm2, %v4497_v41, 0.0 }
 0xeb1   : > { %4540 = vadd.xlane.f32.xlu0 %v4539_v48 }
 0xeb3   : > { %4546 = vadd.xlane.f32.xlu1 %v4545_v10 }
 0xf1a   : > { %v4508_v0 = vpop.xlane.xlu1 %4507 }
 0xf1b   : > { %v4550_v61 = vmul.f32 0.071428575, %v4508_v0 }
 0xf1c   : > { %v4502_v29 = vpop.xlane.xlu0 %4501 }
 0xf1d   : > { %v4566_v17 = vsub.f32 %v8047_v60, %v4550_v61  ;;  %v4548_v25 = vmul.f32 0.071428575, %v4502_v29 }
 0xf1f   : > { %v8159_v8 = vmul.f32 %v6468_v21, %v4566_v17  ;;  %v4564_v16 = vsub.f32 %v8051_v42, %v4548_v25 }
 0xf20   : > { %v4505_v33 = vpop.xlane.xlu1 %4504  ;;  %v4511_v30 = vpop.xlane.xlu0 %4510 }
 0xf21   : > { %v8163_v45 = vmul.f32 %v6468_v21, %v4564_v16  ;;  %v4549_v36 = vmul.f32 0.071428575, %v4505_v33  ;;  %v4551_v50 = vmul.f32 0.071428575, %v4511_v30  ;;  %v4598_v63 = vmul.f32 %v8159_v8, %v8159_v8 }
 0xf23   : > { %v4565_v1 = vsub.f32 %v8064_v43, %v4549_v36  ;;  %v4567_v60 = vsub.f32 %v8057_v14, %v4551_v50  ;;  %v4618_v4 = vsel %vm790_vm2, %v4598_v63, 0.0  ;;  %v4596_v47 = vmul.f32 %v8163_v45, %v8163_v45 }
 0xf24   : > { %v4520_v42 = vpop.xlane.xlu1 %4519  ;;  %4619 = vadd.xlane.f32.xlu1 %v4618_v4 }
 0xf25   : > { %v8173_v19 = vmul.f32 %v6468_v21, %v4565_v1  ;;  %v8176_v11 = vmul.f32 %v6468_v21, %v4567_v60  ;;  %v4554_v59 = vmul.f32 0.071428575, %v4520_v42  ;;  %v4612_v34 = vsel %vm790_vm2, %v4596_v47, 0.0 }
 0xf26   : > { %v4514_v53 = vpop.xlane.xlu0 %4513  ;;  %4613 = vadd.xlane.f32.xlu0 %v4612_v34 }
 0xf27   : > { %v4570_v14 = vsub.f32 %v8073_v18, %v4554_v59  ;;  %v4552_v43 = vmul.f32 0.071428575, %v4514_v53  ;;  %v4597_v9 = vmul.f32 %v8173_v19, %v8173_v19  ;;  %v4599_v7 = vmul.f32 %v8176_v11, %v8176_v11 }
 0xf29   : > { %v8185_v46 = vmul.f32 %v6468_v21, %v4570_v14  ;;  %v4568_v24 = vsub.f32 %v8079_v56, %v4552_v43  ;;  %v4615_v23 = vsel %vm790_vm2, %v4597_v9, 0.0  ;;  %v4621_v52 = vsel %vm790_vm2, %v4599_v7, 0.0 }
 0xf2a   : > { %v4523_v6 = vpop.xlane.xlu0 %4522  ;;  %4616 = vadd.xlane.f32.xlu1 %v4615_v23  ;;  %4622 = vadd.xlane.f32.xlu0 %v4621_v52 }
 0xf2b   : > { %v8191_v18 = vmul.f32 %v6468_v21, %v4568_v24  ;;  %v4555_v44 = vmul.f32 0.071428575, %v4523_v6  ;;  %v4602_v55 = vmul.f32 %v8185_v46, %v8185_v46 }
 0xf2c   : > { %v4532_v5 = vpop.xlane.xlu1 %4531 }
 0xf2d   : > { %v4571_v22 = vsub.f32 %v8085_v62, %v4555_v44  ;;  %v4558_v31 = vmul.f32 0.071428575, %v4532_v5  ;;  %v4630_v56 = vsel %vm790_vm2, %v4602_v55, 0.0  ;;  %v4600_v32 = vmul.f32 %v8191_v18, %v8191_v18 }
 0xf2e   : > { %v4517_v58 = vpop.xlane.xlu0 %4516  ;;  %4631 = vadd.xlane.f32.xlu1 %v4630_v56 }
 0xf2f   : > { %v8200_v15 = vmul.f32 %v6468_v21, %v4571_v22  ;;  %v4574_v2 = vsub.f32 %v8099_v28, %v4558_v31  ;;  %v4553_v40 = vmul.f32 0.071428575, %v4517_v58  ;;  %v4624_v3 = vsel %vm790_vm2, %v4600_v32, 0.0 }
 0xf30   : > { %v4526_v26 = vpop.xlane.xlu1 %4525  ;;  %4625 = vadd.xlane.f32.xlu0 %v4624_v3 }
 0xf31   : > { %v8205_v62 = vmul.f32 %v6468_v21, %v4574_v2  ;;  %v4569_v41 = vsub.f32 %v8092_v27, %v4553_v40  ;;  %v4556_v57 = vmul.f32 0.071428575, %v4526_v26  ;;  %v4603_v48 = vmul.f32 %v8200_v15, %v8200_v15 }
 0xf32   : > { %v4535_v10 = vpop.xlane.xlu0 %4534 }
 0xf33   : > { %v8211_v0 = vmul.f32 %v6468_v21, %v4569_v41  ;;  %v4572_v28 = vsub.f32 %v8104_v38, %v4556_v57  ;;  %v4559_v61 = vmul.f32 0.071428575, %v4535_v10  ;;  %v4633_v29 = vsel %vm790_vm2, %v4603_v48, 0.0 }
 0xf34   : > { %v4544_v17 = vpop.xlane.xlu1 %4543  ;;  %4634 = vadd.xlane.f32.xlu0 %v4633_v29  ;;  %v4606_v25 = vmul.f32 %v8205_v62, %v8205_v62 }
 0xf35   : > { %v8218_v27 = vmul.f32 %v6468_v21, %v4572_v28  ;;  %v4575_v16 = vsub.f32 %v8112_v54, %v4559_v61  ;;  %v4562_v33 = vmul.f32 0.071428575, %v4544_v17  ;;  %v4601_v30 = vmul.f32 %v8211_v0, %v8211_v0 }
 0xf36   : > { %v4642_v36 = vsel %vm790_vm2, %v4606_v25, 0.0  ;;  %v4529_v38 = vpop.xlane.xlu0 %4528 }
 0xf37   : > { %v8225_v50 = vmul.f32 %v6468_v21, %v4575_v16  ;;  %v4578_v63 = vsub.f32 %v8126_v37, %v4562_v33  ;;  %4643 = vadd.xlane.f32.xlu1 %v4642_v36  ;;  %v4557_v1 = vmul.f32 0.071428575, %v4529_v38  ;;  %v4627_v60 = vsel %vm790_vm2, %v4601_v30, 0.0 }
 0xf38   : > { %v4538_v4 = vpop.xlane.xlu1 %4537  ;;  %4628 = vadd.xlane.f32.xlu0 %v4627_v60  ;;  %v4604_v54 = vmul.f32 %v8218_v27, %v8218_v27 }
 0xf39   : > { %v8232_v47 = vmul.f32 %v6468_v21, %v4578_v63  ;;  %v4573_v42 = vsub.f32 %v8119_v49, %v4557_v1  ;;  %v4560_v59 = vmul.f32 0.071428575, %v4538_v4  ;;  %v4607_v34 = vmul.f32 %v8225_v50, %v8225_v50  ;;  %v8272_v4 = vld [vmem:[%s8441_s13] ss:$0 sm:$0xff] }
 0xf3a   : > { %v4636_v37 = vsel %vm790_vm2, %v4604_v54, 0.0  ;;  %v4541_v53 = vpop.xlane.xlu0 %4540 }
 0xf3b   : > { %v8239_v14 = vmul.f32 %v6468_v21, %v4573_v42  ;;  %v4576_v43 = vsub.f32 %v8132_v39, %v4560_v59  ;;  %4637 = vadd.xlane.f32.xlu1 %v4636_v37  ;;  %v4561_v9 = vmul.f32 0.071428575, %v4541_v53  ;;  %v4645_v7 = vsel %vm790_vm2, %v4607_v34, 0.0 }
 0xf3c   : > { %v4547_v24 = vpop.xlane.xlu1 %4546  ;;  %4646 = vadd.xlane.f32.xlu0 %v4645_v7  ;;  %v4610_v49 = vmul.f32 %v8232_v47, %v8232_v47 }
 0xf3d   : > { %v8246_v23 = vmul.f32 %v6468_v21, %v4576_v43  ;;  %v4577_v52 = vsub.f32 %v8147_v35, %v4561_v9  ;;  %v4563_v6 = vmul.f32 0.071428575, %v4547_v24  ;;  %v4605_v44 = vmul.f32 %v8239_v14, %v8239_v14  ;;  %v8278_v43 = vld [vmem:[%s8442_s14] ss:$0 sm:$0xff] }
 0xf3e   : > { %v4654_v39 = vsel %vm790_vm2, %v4610_v49, 0.0 }
 0xf3f   : > { %v8253_v55 = vmul.f32 %v6468_v21, %v4577_v52  ;;  %v4579_v5 = vsub.f32 %v8140_v51, %v4563_v6  ;;  %4655 = vadd.xlane.f32.xlu1 %v4654_v39  ;;  %v4639_v22 = vsel %vm790_vm2, %v4605_v44, 0.0  ;;  %v4608_v31 = vmul.f32 %v8246_v23, %v8246_v23 }
 0xf40   : > { %4640 = vadd.xlane.f32.xlu0 %v4639_v22 }
 0xf41   : > { %v8260_v35 = vmul.f32 %v6468_v21, %v4579_v5  ;;  %v4648_v56 = vsel %vm790_vm2, %v4608_v31, 0.0  ;;  %v4609_v32 = vmul.f32 %v8253_v55, %v8253_v55 }
 0xf43   : > { %4649 = vadd.xlane.f32.xlu1 %v4648_v56  ;;  %v4651_v58 = vsel %vm790_vm2, %v4609_v32, 0.0  ;;  %v4611_v51 = vmul.f32 %v8260_v35, %v8260_v35 }
 0xf44   : > { %4652 = vadd.xlane.f32.xlu0 %v4651_v58 }
 0xf45   : > { %v4657_v2 = vsel %vm790_vm2, %v4611_v51, 0.0 }
 0xf47   : > { %4658 = vadd.xlane.f32.xlu1 %v4657_v2 }
 0xfad   : > { %v4620_v40 = vpop.xlane.xlu1 %4619 }
 0xfae   : > { %v4662_v3 = vmul.f32 0.071428575, %v4620_v40 }
 0xfaf   : > { %v4614_v26 = vpop.xlane.xlu0 %4613 }
 0xfb0   : > { %v4678_v21 = vadd.f32 1e-05, %v4662_v3  ;;  %v4660_v41 = vmul.f32 0.071428575, %v4614_v26 }
 0xfb2   : > { %6189 = vrsqrt.f32 %v4678_v21  ;;  %v4676_v57 = vadd.f32 1e-05, %v4660_v41 }
 0xfb3   : > { %v4617_v48 = vpop.xlane.xlu1 %4616  ;;  %v4623_v10 = vpop.xlane.xlu0 %4622 }
 0xfb4   : > { %6191 = vrsqrt.f32 %v4676_v57  ;;  %v4661_v28 = vmul.f32 0.071428575, %v4617_v48  ;;  %v4663_v61 = vmul.f32 0.071428575, %v4623_v10 }
 0xfb6   : > { %v4677_v29 = vadd.f32 1e-05, %v4661_v28  ;;  %v4679_v17 = vadd.f32 1e-05, %v4663_v61 }
 0xfb7   : > { %v4632_v25 = vpop.xlane.xlu1 %4631 }
 0xfb8   : > { %6193 = vrsqrt.f32 %v4677_v29  ;;  %v4666_v16 = vmul.f32 0.071428575, %v4632_v25 }
 0xfb9   : > { %6195 = vrsqrt.f32 %v4679_v17  ;;  %v4626_v33 = vpop.xlane.xlu0 %4625 }
 0xfba   : > { %v4682_v30 = vadd.f32 1e-05, %v4666_v16  ;;  %v4664_v36 = vmul.f32 0.071428575, %v4626_v33 }
 0xfbc   : > { %6197 = vrsqrt.f32 %v4682_v30  ;;  %v4680_v38 = vadd.f32 1e-05, %v4664_v36 }
 0xfbd   : > { %v4635_v63 = vpop.xlane.xlu0 %4634 }
 0xfbe   : > { %6199 = vrsqrt.f32 %v4680_v38  ;;  %v4667_v1 = vmul.f32 0.071428575, %v4635_v63 }
 0xfbf   : > { %v6190_v60 = vpop.eup %6189 }
 0xfc0   : > { %v4683_v54 = vadd.f32 1e-05, %v4667_v1  ;;  %v4644_v42 = vpop.xlane.xlu1 %4643  ;;  %v4710_v59 = vmul.f32 %v6190_v60, %v8159_v8 }
 0xfc1   : > { %v6192_v34 = vpop.eup %6191  ;;  %v4670_v37 = vmul.f32 0.071428575, %v4644_v42  ;;  %v4629_v53 = vpop.xlane.xlu0 %4628 }
 0xfc2   : > { %6201 = vrsqrt.f32 %v4683_v54  ;;  %v4665_v9 = vmul.f32 0.071428575, %v4629_v53  ;;  %v4732_v7 = vmul.f32 %v8272_v4, %v4710_v59  ;;  %v4708_v24 = vmul.f32 %v6192_v34, %v8163_v45 }
 0xfc3   : > { %v4686_v49 = vadd.f32 1e-05, %v4670_v37 }
 0xfc4   : > { %v4681_v52 = vadd.f32 1e-05, %v4665_v9  ;;  %v4638_v6 = vpop.xlane.xlu1 %4637  ;;  %v4754_v44 = vadd.f32 %v8278_v43, %v4732_v7  ;;  %v4730_v8 = vmul.f32 %v8272_v4, %v4708_v24 }
 0xfc5   : > { %v6194_v39 = vpop.eup %6193  ;;  %6203 = vrsqrt.f32 %v4686_v49  ;;  %v4668_v5 = vmul.f32 0.071428575, %v4638_v6  ;;  %v4647_v22 = vpop.xlane.xlu0 %4646 }
 0xfc6   : > { %v6196_v31 = vpop.eup %6195  ;;  %6205 = vrsqrt.f32 %v4681_v52  ;;  %v4671_v56 = vmul.f32 0.071428575, %v4647_v22  ;;  %4800 = vxpose.xlu1.b32.start [1/2] (short) (narrow) %v4754_v44, 16  ;;  %v4752_v32 = vadd.f32 %v8278_v43, %v4730_v8  ;;  %v4709_v58 = vmul.f32 %v6194_v39, %v8173_v19 }
 0xfc7   : > { %v4684_v45 = vadd.f32 1e-05, %v4668_v5  ;;  %v4711_v51 = vmul.f32 %v6196_v31, %v8176_v11 }
 0xfc8   : > { %v4687_v2 = vadd.f32 1e-05, %v4671_v56  ;;  %v4656_v40 = vpop.xlane.xlu1 %4655  ;;  %4768 = vxpose.xlu0.b32.start [1/2] (short) (narrow) %v4752_v32, 16  ;;  %v4731_v3 = vmul.f32 %v8272_v4, %v4709_v58 }
 0xfc9   : > { %v6198_v26 = vpop.eup %6197  ;;  %6207 = vrsqrt.f32 %v4684_v45  ;;  %v4674_v21 = vmul.f32 0.071428575, %v4656_v40  ;;  %v4641_v41 = vpop.xlane.xlu0 %4640  ;;  %v4733_v57 = vmul.f32 %v8272_v4, %v4711_v51 }
 0xfca   : > { %6209 = vrsqrt.f32 %v4687_v2  ;;  %v4669_v48 = vmul.f32 0.071428575, %v4641_v41  ;;  %v4753_v10 = vadd.f32 %v8278_v43, %v4731_v3  ;;  %v4714_v19 = vmul.f32 %v6198_v26, %v8185_v46 }
 0xfcb   : > { %v6200_v28 = vpop.eup %6199  ;;  %v4690_v61 = vadd.f32 1e-05, %v4674_v21  ;;  %v4755_v11 = vadd.f32 %v8278_v43, %v4733_v57 }
 0xfcc   : > { %v4685_v29 = vadd.f32 1e-05, %v4669_v48  ;;  %v4650_v17 = vpop.xlane.xlu1 %4649  ;;  %4769 = vxpose.xlu0.b32.end [2/2] (short) (narrow) %v4753_v10, 16  ;;  %v4736_v25 = vmul.f32 %v8272_v4, %v4714_v19  ;;  %v4712_v16 = vmul.f32 %v6200_v28, %v8191_v18 }
 0xfcd   : > { %6211 = vrsqrt.f32 %v4690_v61  ;;  %v4672_v33 = vmul.f32 0.071428575, %v4650_v17  ;;  %v4653_v30 = vpop.xlane.xlu0 %4652  ;;  %4801 = vxpose.xlu1.b32.end [2/2] (short) (narrow) %v4755_v11, 16 }
 0xfce   : > { %6213 = vrsqrt.f32 %v4685_v29  ;;  %v4673_v36 = vmul.f32 0.071428575, %v4653_v30  ;;  %v4758_v38 = vadd.f32 %v8278_v43, %v4736_v25  ;;  %v4734_v46 = vmul.f32 %v8272_v4, %v4712_v16 }
 0xfcf   : > { %v6202_v63 = vpop.eup %6201  ;;  %v4688_v1 = vadd.f32 1e-05, %v4672_v33 }
 0xfd0   : > { %v4689_v60 = vadd.f32 1e-05, %v4673_v36  ;;  %v4659_v54 = vpop.xlane.xlu1 %4658  ;;  %v4756_v42 = vadd.f32 %v8278_v43, %v4734_v46  ;;  %v4715_v59 = vmul.f32 %v6202_v63, %v8200_v15 }
 0xfd1   : > { %6215 = vrsqrt.f32 %v4688_v1  ;;  %v4675_v18 = vmul.f32 0.071428575, %v4659_v54  ;;  %4864 = vxpose.xlu1.b32.start [1/2] (short) (narrow) %v4758_v38, 16 }
 0xfd2   : > { %v6204_v34 = vpop.eup %6203  ;;  %6217 = vrsqrt.f32 %v4689_v60  ;;  %4832 = vxpose.xlu0.b32.start [1/2] (short) (narrow) %v4756_v42, 16  ;;  %v4737_v37 = vmul.f32 %v8272_v4, %v4715_v59 }
 0xfd3   : > { %v6206_v53 = vpop.eup %6205  ;;  %v4691_v9 = vadd.f32 1e-05, %v4675_v18  ;;  %v4718_v7 = vmul.f32 %v6204_v34, %v8205_v62 }
 0xfd4   : > { %v4759_v24 = vadd.f32 %v8278_v43, %v4737_v37  ;;  %v4713_v49 = vmul.f32 %v6206_v53, %v8211_v0 }
 0xfd5   : > { %6219 = vrsqrt.f32 %v4691_v9  ;;  %v4740_v52 = vmul.f32 %v8272_v4, %v4718_v7 }
 0xfd6   : > { %v6208_v15 = vpop.eup %6207  ;;  %4865 = vxpose.xlu1.b32.end [2/2] (short) (narrow) %v4759_v24, 16  ;;  %v4735_v6 = vmul.f32 %v8272_v4, %v4713_v49 }
 0xfd7   : > { %v6210_v44 = vpop.eup %6209  ;;  %v4716_v8 = vmul.f32 %v6208_v15, %v8218_v27  ;;  %v4762_v39 = vadd.f32 %v8278_v43, %v4740_v52 }
 0xfd8   : > { %v4757_v5 = vadd.f32 %v8278_v43, %v4735_v6  ;;  %v4719_v62 = vmul.f32 %v6210_v44, %v8225_v50  ;;  %v5932_v44 = vld [vmem:[%s8443_s15] sm:$0xff]  }
 0xfd9   : > { %v4738_v22 = vmul.f32 %v8272_v4, %v4716_v8  ;;  %5750 = vmatpush3.bf16.msra.mxu0 %v5932_v44 }
 0xfda   : > { %v6212_v31 = vpop.eup %6211  ;;  %4928 = vxpose.xlu1.b32.start [1/2] (short) (narrow) %v4762_v39, 16  ;;  %4833 = vxpose.xlu0.b32.end [2/2] (short) (narrow) %v4757_v5, 16  ;;  %v4741_v0 = vmul.f32 %v8272_v4, %v4719_v62 }
 0xfdb   : > { %v6214_v56 = vpop.eup %6213  ;;  %v4722_v32 = vmul.f32 %v6212_v31, %v8232_v47  ;;  %v4760_v58 = vadd.f32 %v8278_v43, %v4738_v22 }
 0xfdc   : > { %v4763_v27 = vadd.f32 %v8278_v43, %v4741_v0  ;;  %v4717_v45 = vmul.f32 %v6214_v56, %v8239_v14 }
 0xfdd   : > { %v4744_v51 = vmul.f32 %v8272_v4, %v4722_v32 }
 0xfde   : > { %v6216_v2 = vpop.eup %6215  ;;  %4896 = vxpose.xlu0.b32.start [1/2] (short) (narrow) %v4760_v58, 16  ;;  %4929 = vxpose.xlu1.b32.end [2/2] (short) (narrow) %v4763_v27, 16  ;;  %v4739_v50 = vmul.f32 %v8272_v4, %v4717_v45 }
 0xfdf   : > { %v6218_v40 = vpop.eup %6217  ;;  %v4720_v3 = vmul.f32 %v6216_v2, %v8246_v23  ;;  %v4766_v26 = vadd.f32 %v8278_v43, %v4744_v51 }
 0xfe0   : > { %v4761_v47 = vadd.f32 %v8278_v43, %v4739_v50  ;;  %v4721_v21 = vmul.f32 %v6218_v40, %v8253_v55  ;;  %v5130_v50 = vshrl.u32 %v550_v12, 7  ;;  %v5133_v40 = vadd.s32 4294967288, %v6453_v13 }
 0xfe1   : > { %v4742_v41 = vmul.f32 %v8272_v4, %v4720_v3 }
 0xfe2   : > { %v6220_v57 = vpop.eup %6219  ;;  %4992 = vxpose.xlu1.b32.start [1/2] (short) (narrow) %v4766_v26, 16  ;;  %4897 = vxpose.xlu0.b32.end [2/2] (short) (narrow) %v4761_v47, 16  ;;  %v4743_v10 = vmul.f32 %v8272_v4, %v4721_v21 }
 0xfe3   : > { %v4723_v14 = vmul.f32 %v6220_v57, %v8260_v35  ;;  %v4764_v48 = vadd.f32 %v8278_v43, %v4742_v41 }
 0xfe4   : > { %v4765_v28 = vadd.f32 %v8278_v43, %v4743_v10  ;;  %v8352_v10 = vsub.s32 %v5133_v40, %v5130_v50 }
 0xfe5   : > { %v4745_v19 = vmul.f32 %v8272_v4, %v4723_v14 }
 0xfe6   : > { %4960 = vxpose.xlu0.b32.start [1/2] (short) (narrow) %v4764_v48, 16  ;;  %v8350_v48 = vsub.s32 %v6453_v13, %v5130_v50 }
 0xfe7   : > { %v4767_v23 = vadd.f32 %v8278_v43, %v4745_v19 }
 0xfe9   : > { %4993 = vxpose.xlu1.b32.end [2/2] (short) (narrow) %v4767_v23, 16 }
 0xfea   : > { %4961 = vxpose.xlu0.b32.end [2/2] (short) (narrow) %v4765_v28, 16 }
0x1044   : > { %v4784_v55 = vpop.trf.xlu0 }
0x1045   : > { %v4816_v61 = vpop.trf.xlu1  ;;  %v5024_v35 = vsel %vm790_vm2, %v4784_v55, 0.0 }
0x1046   : > { %v5030_v11 = vsel %vm790_vm2, %v4816_v61, 0.0 }
0x1047   : > { %5031 = vadd.xlane.f32.xlu0 %v5030_v11 }
0x1048   : > { %v4785_v17 = vpop.trf.xlu0 }
0x1049   : > { %v4817_v29 = vpop.trf.xlu1  ;;  %v5027_v4 = vsel %vm790_vm2, %v4785_v17, 0.0 }
0x104a   : > { %v5033_v25 = vsel %vm790_vm2, %v4817_v29, 0.0 }
0x104b   : > { %5034 = vadd.xlane.f32.xlu1 %v5033_v25  ;;  %5025 = vadd.xlane.f32.xlu0 %v5024_v35 }
0x104e   : > { %v4880_v16 = vpop.trf.xlu1 }
0x104f   : > { %v5042_v43 = vsel %vm790_vm2, %v4880_v16, 0.0  ;;  %5028 = vadd.xlane.f32.xlu1 %v5027_v4 }
0x1050   : > { %5043 = vadd.xlane.f32.xlu0 %v5042_v43 }
0x1052   : > { %v4881_v33 = vpop.trf.xlu1  ;;  %v4848_v30 = vpop.trf.xlu0 }
0x1053   : > { %v5045_v36 = vsel %vm790_vm2, %v4881_v33, 0.0  ;;  %v5036_v38 = vsel %vm790_vm2, %v4848_v30, 0.0 }
0x1054   : > { %5046 = vadd.xlane.f32.xlu1 %v5045_v36  ;;  %5037 = vadd.xlane.f32.xlu0 %v5036_v38 }
0x1056   : > { %v4944_v46 = vpop.trf.xlu1  ;;  %v4849_v63 = vpop.trf.xlu0 }
0x1057   : > { %v5054_v1 = vsel %vm790_vm2, %v4944_v46, 0.0  ;;  %v5039_v60 = vsel %vm790_vm2, %v4849_v63, 0.0 }
0x1058   : > { %5055 = vadd.xlane.f32.xlu0 %v5054_v1  ;;  %5040 = vadd.xlane.f32.xlu1 %v5039_v60 }
0x105a   : > { %v4945_v54 = vpop.trf.xlu1  ;;  %v4912_v42 = vpop.trf.xlu0 }
0x105b   : > { %v5057_v59 = vsel %vm790_vm2, %v4945_v54, 0.0  ;;  %v5048_v18 = vsel %vm790_vm2, %v4912_v42, 0.0 }
0x105c   : > { %5058 = vadd.xlane.f32.xlu1 %v5057_v59  ;;  %5049 = vadd.xlane.f32.xlu0 %v5048_v18 }
0x105e   : > { %v4913_v34 = vpop.trf.xlu0 }
0x105f   : > { %v5051_v37 = vsel %vm790_vm2, %v4913_v34, 0.0 }
0x1060   : > { %5052 = vadd.xlane.f32.xlu1 %v5051_v37 }
0x1061   : > { %v5008_v53 = vpop.trf.xlu1 }
0x1062   : > { %v4976_v9 = vpop.trf.xlu0  ;;  %v5066_v24 = vsel %vm790_vm2, %v5008_v53, 0.0 }
0x1063   : > { %v5060_v7 = vsel %vm790_vm2, %v4976_v9, 0.0 }
0x1064   : > { %5061 = vadd.xlane.f32.xlu0 %v5060_v7 }
0x1065   : > { %v5009_v52 = vpop.trf.xlu1 }
0x1066   : > { %v4977_v49 = vpop.trf.xlu0  ;;  %v5069_v6 = vsel %vm790_vm2, %v5009_v52, 0.0 }
0x1067   : > { %v5063_v15 = vsel %vm790_vm2, %v4977_v49, 0.0 }
0x1068   : > { %5067 = vadd.xlane.f32.xlu0 %v5066_v24  ;;  %5064 = vadd.xlane.f32.xlu1 %v5063_v15 }
0x106c   : > { %5070 = vadd.xlane.f32.xlu1 %v5069_v6 }
0x10d0   : > { %v5032_v8 = vpop.xlane.xlu0 %5031 }
0x10d1   : > { %v5074_v56 = vmul.f32 0.0625, %v5032_v8 }
0x10d4   : > { %v5035_v39 = vpop.xlane.xlu1 %5034  ;;  %v5026_v5 = vpop.xlane.xlu0 %5025 }
0x10d5   : > { %v5075_v32 = vmul.f32 0.0625, %v5035_v39  ;;  %v5072_v2 = vmul.f32 0.0625, %v5026_v5 }
0x10d7   : > { %v5089_v3 = vpack.c.bf16 %v5075_v32, %v5074_v56 }
0x10d8   : > { %v5029_v62 = vpop.xlane.xlu1 %5028 }
0x10d9   : > { %v5044_v22 = vpop.xlane.xlu0 %5043  ;;  %v5073_v58 = vmul.f32 0.0625, %v5029_v62  ;;  %v5115_v19 = vunpack.c.l.b16 %v5089_v3  ;;  %v5116_v23 = vunpack.c.h.b16 %v5089_v3 }
0x10da   : > { %v5078_v47 = vmul.f32 0.0625, %v5044_v22 }
0x10db   : > { %v5088_v26 = vpack.c.bf16 %v5073_v58, %v5072_v2  ;;  %v5143_v43 = vrot.slane %v5115_v19, %v8350_v48  ;;  %v5147_v13 = vrot.slane %v5116_v23, %v8352_v10 }
0x10dd   : > { %v5047_v31 = vpop.xlane.xlu1 %5046  ;;  %v5038_v0 = vpop.xlane.xlu0 %5037  ;;  %v5113_v28 = vunpack.c.l.b16 %v5088_v26  ;;  %v5114_v55 = vunpack.c.h.b16 %v5088_v26  ;;  %v5148_v59 = vsel %vm5138_vm5, %v5147_v13, %v5143_v43 }
0x10de   : > { %v5076_v20 = vmul.f32 0.0625, %v5038_v0  ;;  %v5079_v21 = vmul.f32 0.0625, %v5047_v31 }
0x10df   : > { %v5132_v33 = vrot.slane %v5113_v28, %v8350_v48  ;;  %v5137_v30 = vrot.slane %v5114_v55, %v8352_v10 }
0x10e0   : > { %v5091_v12 = vpack.c.bf16 %v5079_v21, %v5078_v47 }
0x10e1   : > { %v5041_v27 = vpop.xlane.xlu1 %5040  ;;  %v5056_v45 = vpop.xlane.xlu0 %5055  ;;  %v5139_v18 = vsel %vm5138_vm5, %v5137_v30, %v5132_v33 }
0x10e2   : > { %v5077_v51 = vmul.f32 0.0625, %v5041_v27  ;;  %v5082_v25 = vmul.f32 0.0625, %v5056_v45  ;;  %v5119_v38 = vunpack.c.l.b16 %v5091_v12  ;;  %v5120_v1 = vunpack.c.h.b16 %v5091_v12  ;;  %v5476_v12 = vld [vmem:[%s8444_s16] ss:$0 sm:$0xff] }
0x10e3   : > { %v5204_v44 = vsel %vm5203_vm6, %v5148_v59, %v5139_v18 }
0x10e4   : > { %v5090_v57 = vpack.c.bf16 %v5077_v51, %v5076_v20  ;;  %v5161_v37 = vrot.slane %v5119_v38, %v8350_v48  ;;  %v5165_v24 = vrot.slane %v5120_v1, %v8352_v10 }
0x10e5   : > { %v5059_v41 = vpop.xlane.xlu1 %5058  ;;  %v5050_v14 = vpop.xlane.xlu0 %5049 }
0x10e6   : > { %v5117_v11 = vunpack.c.l.b16 %v5090_v57  ;;  %v5118_v35 = vunpack.c.h.b16 %v5090_v57  ;;  %v5080_v29 = vmul.f32 0.0625, %v5050_v14  ;;  %v5083_v4 = vmul.f32 0.0625, %v5059_v41 }
0x10e7   : > { %v5166_v32 = vsel %vm5138_vm5, %v5165_v24, %v5161_v37 }
0x10e8   : > { %v5152_v46 = vrot.slane %v5117_v11, %v8350_v48  ;;  %v5156_v63 = vrot.slane %v5118_v35, %v8352_v10  ;;  %v5093_v60 = vpack.c.bf16 %v5083_v4, %v5082_v25 }
0x10e9   : > { %v5053_v61 = vpop.xlane.xlu1 %5052 }
0x10ea   : > { %v5081_v17 = vmul.f32 0.0625, %v5053_v61  ;;  %v5157_v53 = vsel %vm5138_vm5, %v5156_v63, %v5152_v46  ;;  %v5123_v49 = vunpack.c.l.b16 %v5093_v60  ;;  %v5124_v8 = vunpack.c.h.b16 %v5093_v60 }
0x10eb   : > { %v5206_v5 = vsel %vm5205_vm7, %v5157_v53, %v5204_v44 }
0x10ec   : > { %v5092_v16 = vpack.c.bf16 %v5081_v17, %v5080_v29  ;;  %v5179_v58 = vrot.slane %v5123_v49, %v8350_v48  ;;  %v5183_v45 = vrot.slane %v5124_v8, %v8352_v10  ;;  %v5208_v40 = vsel %vm5207_vm8, %v5166_v32, %v5206_v5 }
0x10ed   : > { %v5062_v36 = vpop.xlane.xlu0 %5061 }
0x10ee   : > { %v5121_v54 = vunpack.c.l.b16 %v5092_v16  ;;  %v5122_v42 = vunpack.c.h.b16 %v5092_v16  ;;  %v5084_v9 = vmul.f32 0.0625, %v5062_v36  ;;  %v5184_v21 = vsel %vm5138_vm5, %v5183_v45, %v5179_v58 }
0x10f0   : > { %v5170_v52 = vrot.slane %v5121_v54, %v8350_v48  ;;  %v5174_v15 = vrot.slane %v5122_v42, %v8352_v10 }
0x10f1   : > { %v5065_v34 = vpop.xlane.xlu1 %5064  ;;  %v5068_v6 = vpop.xlane.xlu0 %5067 }
0x10f2   : > { %v5085_v7 = vmul.f32 0.0625, %v5065_v34  ;;  %v5086_v0 = vmul.f32 0.0625, %v5068_v6  ;;  %v5175_v27 = vsel %vm5138_vm5, %v5174_v15, %v5170_v52 }
0x10f3   : > { %v5210_v3 = vsel %vm5209_vm9, %v5175_v27, %v5208_v40 }
0x10f4   : > { %v5094_v39 = vpack.c.bf16 %v5085_v7, %v5084_v9  ;;  %v5212_v14 = vsel %vm5211_vm10, %v5184_v21, %v5210_v3 }
0x10f5   : > { %v5071_v62 = vpop.xlane.xlu1 %5070 }
0x10f6   : > { %v5125_v22 = vunpack.c.l.b16 %v5094_v39  ;;  %v5126_v31 = vunpack.c.h.b16 %v5094_v39  ;;  %v5087_v56 = vmul.f32 0.0625, %v5071_v62 }
0x10f8   : > { %v5188_v51 = vrot.slane %v5125_v22, %v8350_v48  ;;  %v5192_v2 = vrot.slane %v5126_v31, %v8352_v10  ;;  %v5095_v50 = vpack.c.bf16 %v5087_v56, %v5086_v0 }
0x10fa   : > { %v5127_v20 = vunpack.c.l.b16 %v5095_v50  ;;  %v5128_v26 = vunpack.c.h.b16 %v5095_v50  ;;  %v5193_v47 = vsel %vm5138_vm5, %v5192_v2, %v5188_v51 }
0x10fb   : > { %v5214_v19 = vsel %vm5213_vm11, %v5193_v47, %v5212_v14 }
0x10fc   : > { %v5197_v41 = vrot.slane %v5127_v20, %v8350_v48  ;;  %v5201_v57 = vrot.slane %v5128_v26, %v8352_v10 }
0x10fe   : > { %v5202_v23 = vsel %vm5138_vm5, %v5201_v57, %v5197_v41 }
0x10ff   : > { %v5216_v28 = vsel %vm5215_vm12, %v5202_v23, %v5214_v19 }
0x1100   : > { %v5217_v55 = vpack.c.b16 %v5216_v28, %v5216_v28 }
0x1102   : > { %5752 = vmatmul.mubr.msk.bf16.vlgmr.msra.gmra.mxu0 %vm790_vm2, %v5217_v55 }
0x11c2   : > { %v5261_v48 = vpop.f32.mrf.mxu0 }
0x11c3   : > { %v5262_v10 = vadd.f32 %v5476_v12, %v5261_v48 }
0x11c4   : > { %v5753_v61 = vpop.f32.mrf.mxu0 }
0x11c5   : > { %5267 = vst [vmem:[%s542_s18] sm:$0xff] %v5262_v10 }
0x11c6   : > { %v5264_v11 = vpop.f32.mrf.mxu0 }
0x11c7   : > { %6238 = shalt.err (!%p6235_p3)
}
0x11c8   : > { %s6239_s30 = scalar_lea.hbm %s8387_s19, 128  ;;  %s6243_s24 = scalar_lea.hbm %s8445_s17, 256 }
0x11c9   : > { %p6240_p4 = scmp.ne.s32.totalorder %s8387_s19, %s6239_s30  ;;  %p6244_p9 = scmp.lt.s32.totalorder %s8387_s19, %s8445_s17 }
0x11ca   : > { %p6245_p10 = scmp.lt.s32.totalorder %s6243_s24, %s6239_s30 }
0x11cb   : > { %p6241_p7 = pnand %p6240_p4, %p6418_p5 }
0x11cc   : > { %p6246_p11 = por %p6245_p10, %p6244_p9 }
0x11cd   : > { %p6242_p8 = pneg %p6241_p7 }
0x11cf   : > { %p6247_p12 = pnand %p6246_p11, %p6242_p8 }
0x11d1   : > { %6250 = shalt.err (!%p6247_p12)
}
0x11d2   : > { %5755 = dma.vmem_to_hbm [thread:$0]  (%p6418_p5), %s8389_s26, 128, %s8387_s19, %s5269_s21   ;;  %v5754_v35 = vpop.f32.mrf.mxu0 }
0x11d3 PF: > { %s8465_s22 = sld [smem:[#allocation5_spill]]  ;;  %p5761_p13 = scmp.ge.s32.totalorder %s6285_s27, 2 }
0x11d5   : > { %p5758_p0 = pnand %p5761_p13, %p6422_p6 }
0x11d7   : > { %p5759_p1 = pneg %p5758_p0 }
0x11d9   : > { %s5294_s0 = sand.u32 1, %s8465_s22  }
0x11da   : > { %s5295_s2 = scalar_lea.sflag [#allocation3], %s5294_s0 }
0x11db   : > { %6268 = dma.done.wait (%p5759_p1), %s5295_s2, 128  }
0x11dc   : > { %6270 = vsyncadd (%p5759_p1), %s5295_s2, 4294967168  ;;  %s8467_s27 = sld [smem:[#allocation7_spill]]  ;;  %s8470_s24 = smov %s6277_s25 }
0x11dd   : > { %s8468_s30 = sld [smem:[#allocation6_spill]] }
0x11de   : > { %s8469_s26 = sld [smem:[#allocation8_spill]] }
0x11e2   : > { %p27_p2 = scmp.ge.s32.totalorder %s8467_s27, 4  }
0x11e3   : > { %s8471_s25 = smov %s8468_s30 }
0x11e4   :  { %29 = sbr.rel (!%p27_p2) target bundleno = 7 (0x7), region = 131 }
0x11e9   :  { %5300 = vsyncpa [#allocation3], 1 }
0x11ea   :  { %5302 = vsyncpa [#allocation3 + $0x1], 1 }

</bundles_post_ra>
